<compile_context>
chip_gen: v7x
topology: tpu7x:2x2x1
jax: 0.10.0
libtpu: 0.0.40
codegen_flags: <defaults>
</compile_context>

<pallas_src>
import functools

import jax
import jax.numpy as jnp
import numpy as np
from jax import lax
from jax.experimental import pallas as pl
from jax.experimental.pallas import tpu as pltpu

VOCAB_SIZE = 65
VOCAB_PAD = 128          # lane-dense padded vocab for embedding select + lm_head store
N_EMBD = 128
N_HEAD = 4
HEAD_SIZE = N_EMBD // N_HEAD
BLOCK_SIZE = 32
N_LAYER = 2
LN_EPS = 1e-5            # PyTorch nn.LayerNorm default eps
PARAMS_PER_LAYER = 11    # ln1_g, ln1_b, Wqkv, Wo, bo, ln2_g, ln2_b, W1, b1, W2, b2
NEG_INF = -1e9


def _layernorm(x, gamma, beta):
    """LayerNorm over the last axis in f32; gamma/beta are (1, C) rows."""
    mu = jnp.mean(x, axis=-1, keepdims=True)
    var = jnp.mean((x - mu) ** 2, axis=-1, keepdims=True)
    return (x - mu) * lax.rsqrt(var + LN_EPS) * gamma + beta


def _make_forward_kernel(b_blk, seq_len):
    """Kernel for one batch-block: embedding + N_LAYER Blocks + ln_f + lm_head."""
    rows_total = b_blk * seq_len
    # NOTE: the PyTorch Head scales by C**-0.5 with C = n_embd (not head_size).
    scale = float(N_EMBD) ** -0.5

    def kernel(idx_ref, tok_ref, pos_ref, *refs):
        *param_refs, o_ref = refs
        n_lp = PARAMS_PER_LAYER * N_LAYER
        layer_refs = param_refs[:n_lp]
        lnf_g, lnf_b, wlm, blm = param_refs[n_lp:]

        # ---- fused embedding: exact one-hot row-select (f32 MXU) + positions ----
        idx_col = idx_ref[...]                                           # (R, 1) i32
        onehot = (idx_col ==
                  lax.broadcasted_iota(jnp.int32, (rows_total, VOCAB_PAD), 1)
                  ).astype(jnp.float32)                                  # (R, Vp)
        x = jnp.dot(onehot, tok_ref[...],
                    preferred_element_type=jnp.float32)                  # (R, C) f32
        pos = pos_ref[0:seq_len, :]                                      # (T, C) f32
        x = x + jnp.concatenate([pos] * b_blk, axis=0)

        # ---- in-kernel causal additive bias: 0 / -1e9 (VPU slack is free) ----
        r_i = lax.broadcasted_iota(jnp.int32, (seq_len, seq_len), 0)
        c_i = lax.broadcasted_iota(jnp.int32, (seq_len, seq_len), 1)
        bias = jnp.where(r_i >= c_i, 0.0, NEG_INF).astype(jnp.float32)   # (T, T)

        for li in range(N_LAYER):
            (ln1_g, ln1_b, wqkv, wo, bo, ln2_g, ln2_b, w1, b1, w2, b2) = \
                layer_refs[li * PARAMS_PER_LAYER:(li + 1) * PARAMS_PER_LAYER]

            # ---- self-attention branch: x + proj(MHA(ln1(x))) + bo ----
            h = _layernorm(x, ln1_g[...], ln1_b[...]).astype(jnp.bfloat16)
            qkv = jnp.dot(h, wqkv[...],
                          preferred_element_type=jnp.float32)            # (R, 3C) f32

            att_rows = []
            for b in range(b_blk):
                rlo = b * seq_len
                head_outs = []
                for hd in range(N_HEAD):
                    lo = hd * HEAD_SIZE
                    qh = qkv[rlo:rlo + seq_len,
                             lo:lo + HEAD_SIZE].astype(jnp.bfloat16)
                    kh = qkv[rlo:rlo + seq_len,
                             N_EMBD + lo:N_EMBD + lo + HEAD_SIZE].astype(jnp.bfloat16)
                    vh = qkv[rlo:rlo + seq_len,
                             2 * N_EMBD + lo:2 * N_EMBD + lo + HEAD_SIZE].astype(jnp.bfloat16)

                    # q @ k^T via dot_general (no k.T materialization).
                    s = lax.dot_general(qh, kh, (((1,), (1,)), ((), ())),
                                        preferred_element_type=jnp.float32)
                    w = s * scale + bias
                    w = w - jnp.max(w, axis=-1, keepdims=True)
                    e = jnp.exp(w)
                    p = e * pl.reciprocal(jnp.sum(e, axis=-1, keepdims=True),
                                          approx=True)
                    # attention dropout (p=0.2) == identity in eval mode
                    head_outs.append(jnp.dot(p.astype(jnp.bfloat16), vh,
                                             preferred_element_type=jnp.float32))
                att_rows.append(jnp.concatenate(head_outs, axis=-1))      # (T, C)
            att = jnp.concatenate(att_rows, axis=0).astype(jnp.bfloat16)  # (R, C)
            # single merged projection matmul (K=128) instead of 4 K=32 matmuls
            x = x + jnp.dot(att, wo[...],
                            preferred_element_type=jnp.float32) + bo[...]

            # ---- feed-forward branch: x + W2(relu(W1 ln2(x) + b1)) + b2 ----
            h2 = _layernorm(x, ln2_g[...], ln2_b[...]).astype(jnp.bfloat16)
            f = jnp.dot(h2, w1[...], preferred_element_type=jnp.float32) + b1[...]
            f = jnp.maximum(f, 0.0).astype(jnp.bfloat16)                  # ReLU
            # ffwd dropout (p=0.2) == identity in eval mode
            x = x + jnp.dot(f, w2[...], preferred_element_type=jnp.float32) + b2[...]

        # ---- final LayerNorm + lm_head (lane-padded vocab, dense store) ----
        hf = _layernorm(x, lnf_g[...], lnf_b[...]).astype(jnp.bfloat16)
        o_ref[...] = jnp.dot(hf, wlm[...],
                             preferred_element_type=jnp.float32) + blm[...]

    return kernel


def _full_spec(shape):
    nd = len(shape)
    return pl.BlockSpec(shape, lambda i, _nd=nd: (0,) * _nd)


def _pick_batch_block(batch, max_blk=8):
    """Largest divisor of `batch` <= max_blk (keeps blocks even, grid splittable)."""
    for cand in range(min(batch, max_blk), 0, -1):
        if batch % cand == 0:
            return cand
    return 1


def bigram_lm_forward(idx, tok_tab, pos_tab, layers, final):
    """Equivalent of BigramLanguageModel.forward(idx, targets=None) -> logits."""
    B, T = idx.shape
    C = N_EMBD
    assert T <= BLOCK_SIZE
    b_blk = _pick_batch_block(B)
    n_blocks = B // b_blk
    R = b_blk * T

    # Lane-pad vocab-sized tensors once (weight-sized, tiny).
    tok_pad = jnp.zeros((VOCAB_PAD, C), jnp.float32).at[:VOCAB_SIZE, :].set(
        tok_tab.astype(jnp.float32))
    lnf_g, lnf_b, wlm, blm = final
    wlm_pad = jnp.zeros((C, VOCAB_PAD), jnp.bfloat16).at[:, :VOCAB_SIZE].set(wlm)
    blm_pad = jnp.zeros((1, VOCAB_PAD), jnp.float32).at[:, :VOCAB_SIZE].set(blm)

    idx_col = idx.reshape(B * T, 1).astype(jnp.int32)

    flat_params = [p for layer in layers for p in layer] + \
                  [lnf_g, lnf_b, wlm_pad, blm_pad]

    in_specs = [
        pl.BlockSpec((R, 1), lambda i: (i, 0)),            # token ids (per block)
        _full_spec(tok_pad.shape),                          # token table (resident)
        _full_spec(pos_tab.shape),                          # position table (resident)
    ] + [_full_spec(p.shape) for p in flat_params]          # resident weights
    # TODO(synk): at the full 384/256/6 config, single-buffer the constant weight
    # specs (pipeline_mode=pl.Buffered(1)) and tile T flash-style to fit v7x VMEM.

    logits_pad = pl.pallas_call(
        _make_forward_kernel(b_blk, T),
        out_shape=jax.ShapeDtypeStruct((B * T, VOCAB_PAD), jnp.float32),
        grid=(n_blocks,),
        in_specs=in_specs,
        out_specs=pl.BlockSpec((R, VOCAB_PAD), lambda i: (i, 0)),
        compiler_params=pltpu.CompilerParams(
            dimension_semantics=("parallel",),              # v7x: TCs split batch blocks
            vmem_limit_bytes=32 * 1024 * 1024),
    )(idx_col, tok_pad, pos_tab, *flat_params)

    # TODO(synk): cross-entropy loss path (targets is not None) and generate()'s
    # torch.multinomial sampling are not implemented in-kernel.
    return logits_pad.reshape(B, T, VOCAB_PAD)[..., :VOCAB_SIZE]


# ----------------------------- pure-JAX reference -----------------------------

def _layernorm_ref(x, gamma, beta):
    mu = jnp.mean(x, axis=-1, keepdims=True)
    var = jnp.mean((x - mu) ** 2, axis=-1, keepdims=True)
    return (x - mu) * lax.rsqrt(var + LN_EPS) * gamma + beta


def reference_forward(idx, tok_tab, pos_tab, layers, final):
    B, T = idx.shape
    x = tok_tab[idx].astype(jnp.float32) + pos_tab[:T][None, :, :]
    mask = jnp.tril(jnp.ones((T, T), dtype=bool))
    scale = float(N_EMBD) ** -0.5
    for (ln1_g, ln1_b, wqkv, wo, bo, ln2_g, ln2_b, w1, b1, w2, b2) in layers:
        h = _layernorm_ref(x, ln1_g, ln1_b)
        qkv = h @ wqkv.astype(jnp.float32)
        q, k, v = jnp.split(qkv, 3, axis=-1)
        outs = []
        for hd in range(N_HEAD):
            lo = hd * HEAD_SIZE
            qh, kh, vh = (q[..., lo:lo + HEAD_SIZE], k[..., lo:lo + HEAD_SIZE],
                          v[..., lo:lo + HEAD_SIZE])
            s = jnp.einsum('btd,bsd->bts', qh, kh) * scale
            s = jnp.where(mask[None], s, -jnp.inf)
            p = jax.nn.softmax(s, axis=-1)
            outs.append(jnp.einsum('bts,bsd->btd', p, vh))
        att = jnp.concatenate(outs, axis=-1)
        x = x + att @ wo.astype(jnp.float32) + bo
        h2 = _layernorm_ref(x, ln2_g, ln2_b)
        f = jnp.maximum(h2 @ w1.astype(jnp.float32) + b1, 0.0)
        x = x + f @ w2.astype(jnp.float32) + b2
    lnf_g, lnf_b, wlm, blm = final
    hf = _layernorm_ref(x, lnf_g, lnf_b)
    return hf @ wlm.astype(jnp.float32) + blm


# --------------------------------- weights ------------------------------------

def init_params(key):
    """Deterministic synthetic weights matching the module's parameter shapes."""
    def nrm(k, shape, scale=0.02):
        return (scale * jax.random.normal(k, shape)).astype(jnp.float32)

    keys = jax.random.split(key, 3 + N_LAYER)
    tok_tab = nrm(keys[0], (VOCAB_SIZE, N_EMBD))
    pos_tab = nrm(keys[1], (BLOCK_SIZE, N_EMBD))

    layers = []
    for li in range(N_LAYER):
        ks = jax.random.split(keys[2 + li], 12)
        wq = nrm(ks[0], (N_EMBD, N_EMBD))
        wk = nrm(ks[1], (N_EMBD, N_EMBD))
        wv = nrm(ks[2], (N_EMBD, N_EMBD))
        w_qkv = jnp.concatenate([wq, wk, wv], axis=1).astype(jnp.bfloat16)   # (C, 3C)
        layer = [
            1.0 + 0.1 * nrm(ks[8], (1, N_EMBD), 1.0),            # ln1 gamma
            0.02 * nrm(ks[9], (1, N_EMBD), 1.0),                 # ln1 beta
            w_qkv,                                                # Wqkv (bf16)
            nrm(ks[3], (N_EMBD, N_EMBD)).astype(jnp.bfloat16),    # Wo (proj)
            nrm(ks[4], (1, N_EMBD)),                              # bo
            1.0 + 0.1 * nrm(ks[10], (1, N_EMBD), 1.0),            # ln2 gamma
            0.02 * nrm(ks[11], (1, N_EMBD), 1.0),                 # ln2 beta
            nrm(ks[5], (N_EMBD, N_EMBD)).astype(jnp.bfloat16),    # ff W1
            nrm(ks[6], (1, N_EMBD)),                              # ff b1
            nrm(ks[7], (N_EMBD, N_EMBD)).astype(jnp.bfloat16),    # ff W2
            nrm(ks[6], (1, N_EMBD)),                              # ff b2
        ]
        layers.append(layer)

    kf = jax.random.split(keys[2 + N_LAYER], 4)
    final = [
        1.0 + 0.1 * nrm(kf[2], (1, N_EMBD), 1.0),                 # ln_f gamma
        0.02 * nrm(kf[3], (1, N_EMBD), 1.0),                      # ln_f beta
        nrm(kf[0], (N_EMBD, VOCAB_SIZE)).astype(jnp.bfloat16),    # lm_head W (in, out)
        nrm(kf[1], (1, VOCAB_SIZE)),                              # lm_head bias
    ]
    return tok_tab, pos_tab, layers, final


if __name__ == "__main__":
    key = jax.random.PRNGKey(0)
    pkey, dkey = jax.random.split(key)
    tok_tab, pos_tab, layers, final = init_params(pkey)

    B, T = 2, 16                                                  # T <= block_size
    idx = jax.random.randint(dkey, (B, T), 0, VOCAB_SIZE, dtype=jnp.int32)

    fwd = jax.jit(bigram_lm_forward)
    logits = jax.block_until_ready(fwd(idx, tok_tab, pos_tab, layers, final))

    assert logits.shape == (B, T, VOCAB_SIZE), logits.shape
    assert logits.dtype == jnp.float32
    assert bool(jnp.all(jnp.isfinite(logits)))

    ref = reference_forward(idx, tok_tab, pos_tab, layers, final)
    np.testing.assert_allclose(np.asarray(logits), np.asarray(ref),
                               rtol=3e-2, atol=3e-2)
    print("KERNEL_OK")
</pallas_src>

<mosaic_0001>
module attributes {stable_mosaic.version = 11 : i64} {
  func.func @kernel(%arg0: i32, %arg1: memref<32x1xi32, #tpu.memory_space<vmem>>, %arg2: memref<128x128xf32, #tpu.memory_space<vmem>>, %arg3: memref<32x128xf32, #tpu.memory_space<vmem>>, %arg4: memref<1x128xf32, #tpu.memory_space<vmem>>, %arg5: memref<1x128xf32, #tpu.memory_space<vmem>>, %arg6: memref<128x384xbf16, #tpu.memory_space<vmem>>, %arg7: memref<128x128xbf16, #tpu.memory_space<vmem>>, %arg8: memref<1x128xf32, #tpu.memory_space<vmem>>, %arg9: memref<1x128xf32, #tpu.memory_space<vmem>>, %arg10: memref<1x128xf32, #tpu.memory_space<vmem>>, %arg11: memref<128x128xbf16, #tpu.memory_space<vmem>>, %arg12: memref<1x128xf32, #tpu.memory_space<vmem>>, %arg13: memref<128x128xbf16, #tpu.memory_space<vmem>>, %arg14: memref<1x128xf32, #tpu.memory_space<vmem>>, %arg15: memref<1x128xf32, #tpu.memory_space<vmem>>, %arg16: memref<1x128xf32, #tpu.memory_space<vmem>>, %arg17: memref<128x384xbf16, #tpu.memory_space<vmem>>, %arg18: memref<128x128xbf16, #tpu.memory_space<vmem>>, %arg19: memref<1x128xf32, #tpu.memory_space<vmem>>, %arg20: memref<1x128xf32, #tpu.memory_space<vmem>>, %arg21: memref<1x128xf32, #tpu.memory_space<vmem>>, %arg22: memref<128x128xbf16, #tpu.memory_space<vmem>>, %arg23: memref<1x128xf32, #tpu.memory_space<vmem>>, %arg24: memref<128x128xbf16, #tpu.memory_space<vmem>>, %arg25: memref<1x128xf32, #tpu.memory_space<vmem>>, %arg26: memref<1x128xf32, #tpu.memory_space<vmem>>, %arg27: memref<1x128xf32, #tpu.memory_space<vmem>>, %arg28: memref<128x128xbf16, #tpu.memory_space<vmem>>, %arg29: memref<1x128xf32, #tpu.memory_space<vmem>>, %arg30: memref<32x128xf32, #tpu.memory_space<vmem>>) attributes {dimension_semantics = [#tpu.dimension_semantics<parallel>], iteration_bounds = array<i64: 1>, scalar_prefetch = 0 : i64, scratch_operands = 0 : i64, tpu.core_type = #tpu.core_type<tc>, window_params = [{transform_indices = @transform_0, window_bounds = array<i64: 32, 1>}, {pipeline_mode = #tpu.pipeline_mode<synchronous>, transform_indices = @transform_1, window_bounds = array<i64: 128, 128>}, {pipeline_mode = #tpu.pipeline_mode<synchronous>, transform_indices = @transform_2, window_bounds = array<i64: 32, 128>}, {pipeline_mode = #tpu.pipeline_mode<synchronous>, transform_indices = @transform_3, window_bounds = array<i64: 1, 128>}, {pipeline_mode = #tpu.pipeline_mode<synchronous>, transform_indices = @transform_4, window_bounds = array<i64: 1, 128>}, {pipeline_mode = #tpu.pipeline_mode<synchronous>, transform_indices = @transform_5, window_bounds = array<i64: 128, 384>}, {pipeline_mode = #tpu.pipeline_mode<synchronous>, transform_indices = @transform_6, window_bounds = array<i64: 128, 128>}, {pipeline_mode = #tpu.pipeline_mode<synchronous>, transform_indices = @transform_7, window_bounds = array<i64: 1, 128>}, {pipeline_mode = #tpu.pipeline_mode<synchronous>, transform_indices = @transform_8, window_bounds = array<i64: 1, 128>}, {pipeline_mode = #tpu.pipeline_mode<synchronous>, transform_indices = @transform_9, window_bounds = array<i64: 1, 128>}, {pipeline_mode = #tpu.pipeline_mode<synchronous>, transform_indices = @transform_10, window_bounds = array<i64: 128, 128>}, {pipeline_mode = #tpu.pipeline_mode<synchronous>, transform_indices = @transform_11, window_bounds = array<i64: 1, 128>}, {pipeline_mode = #tpu.pipeline_mode<synchronous>, transform_indices = @transform_12, window_bounds = array<i64: 128, 128>}, {pipeline_mode = #tpu.pipeline_mode<synchronous>, transform_indices = @transform_13, window_bounds = array<i64: 1, 128>}, {pipeline_mode = #tpu.pipeline_mode<synchronous>, transform_indices = @transform_14, window_bounds = array<i64: 1, 128>}, {pipeline_mode = #tpu.pipeline_mode<synchronous>, transform_indices = @transform_15, window_bounds = array<i64: 1, 128>}, {pipeline_mode = #tpu.pipeline_mode<synchronous>, transform_indices = @transform_16, window_bounds = array<i64: 128, 384>}, {pipeline_mode = #tpu.pipeline_mode<synchronous>, transform_indices = @transform_17, window_bounds = array<i64: 128, 128>}, {pipeline_mode = #tpu.pipeline_mode<synchronous>, transform_indices = @transform_18, window_bounds = array<i64: 1, 128>}, {pipeline_mode = #tpu.pipeline_mode<synchronous>, transform_indices = @transform_19, window_bounds = array<i64: 1, 128>}, {pipeline_mode = #tpu.pipeline_mode<synchronous>, transform_indices = @transform_20, window_bounds = array<i64: 1, 128>}, {pipeline_mode = #tpu.pipeline_mode<synchronous>, transform_indices = @transform_21, window_bounds = array<i64: 128, 128>}, {pipeline_mode = #tpu.pipeline_mode<synchronous>, transform_indices = @transform_22, window_bounds = array<i64: 1, 128>}, {pipeline_mode = #tpu.pipeline_mode<synchronous>, transform_indices = @transform_23, window_bounds = array<i64: 128, 128>}, {pipeline_mode = #tpu.pipeline_mode<synchronous>, transform_indices = @transform_24, window_bounds = array<i64: 1, 128>}, {pipeline_mode = #tpu.pipeline_mode<synchronous>, transform_indices = @transform_25, window_bounds = array<i64: 1, 128>}, {pipeline_mode = #tpu.pipeline_mode<synchronous>, transform_indices = @transform_26, window_bounds = array<i64: 1, 128>}, {pipeline_mode = #tpu.pipeline_mode<synchronous>, transform_indices = @transform_27, window_bounds = array<i64: 128, 128>}, {pipeline_mode = #tpu.pipeline_mode<synchronous>, transform_indices = @transform_28, window_bounds = array<i64: 1, 128>}, {transform_indices = @transform_29, window_bounds = array<i64: 32, 128>}]} {
    %c0 = arith.constant 0 : index
    %c0_0 = arith.constant 0 : index
    %0 = vector.load %arg1[%c0, %c0_0] : memref<32x1xi32, #tpu.memory_space<vmem>>, vector<32x1xi32>
    %1 = tpu.iota {dimensions = array<i32: 1>} : vector<32x128xi32>
    %2 = vector.broadcast %0 : vector<32x1xi32> to vector<32x128xi32>
    %3 = arith.cmpi eq, %2, %1 : vector<32x128xi32>
    %4 = arith.extui %3 : vector<32x128xi1> to vector<32x128xi32>
    %5 = arith.sitofp %4 : vector<32x128xi32> to vector<32x128xf32>
    %c0_1 = arith.constant 0 : index
    %c0_2 = arith.constant 0 : index
    %6 = vector.load %arg2[%c0_1, %c0_2] : memref<128x128xf32, #tpu.memory_space<vmem>>, vector<128x128xf32>
    %cst = arith.constant dense<0.000000e+00> : vector<32x128xf32>
    %7 = tpu.matmul %5, %6, %cst {dimension_numbers = #tpu.dot_dimension_numbers<[1], [0], [0], [1], [0, 0, 1, 1], [], []>} : vector<32x128xf32>, vector<128x128xf32>, vector<32x128xf32> -> vector<32x128xf32>
    %c0_3 = arith.constant 0 : index
    %c0_4 = arith.constant 0 : index
    %8 = vector.load %arg3[%c0_3, %c0_4] : memref<32x128xf32, #tpu.memory_space<vmem>>, vector<16x128xf32>
    %9 = tpu.concatenate %8, %8 in 0 : vector<16x128xf32>, vector<16x128xf32> -> vector<32x128xf32>
    %10 = arith.addf %7, %9 : vector<32x128xf32>
    %11 = tpu.iota {dimensions = array<i32: 0>} : vector<16x16xi32>
    %12 = tpu.iota {dimensions = array<i32: 1>} : vector<16x16xi32>
    %13 = arith.cmpi sge, %11, %12 : vector<16x16xi32>
    %cst_5 = arith.constant 0.000000e+00 : f32
    %cst_6 = arith.constant -1.000000e+09 : f32
    %14 = vector.broadcast %cst_5 : f32 to vector<16x16xf32>
    %15 = vector.broadcast %cst_6 : f32 to vector<16x16xf32>
    %16 = arith.select %13, %14, %15 : vector<16x16xi1>, vector<16x16xf32>
    %c0_7 = arith.constant 0 : index
    %c0_8 = arith.constant 0 : index
    %17 = vector.load %arg4[%c0_7, %c0_8] : memref<1x128xf32, #tpu.memory_space<vmem>>, vector<1x128xf32>
    %c0_9 = arith.constant 0 : index
    %c0_10 = arith.constant 0 : index
    %18 = vector.load %arg5[%c0_9, %c0_10] : memref<1x128xf32, #tpu.memory_space<vmem>>, vector<1x128xf32>
    %cst_11 = arith.constant dense<0.000000e+00> : vector<32xf32>
    %19 = vector.multi_reduction <add>, %10, %cst_11 [1] : vector<32x128xf32> to vector<32xf32>
    %20 = vector.shape_cast %19 : vector<32xf32> to vector<32x1xf32>
    %cst_12 = arith.constant 1.280000e+02 : f32
    %21 = vector.broadcast %cst_12 : f32 to vector<32x1xf32>
    %22 = arith.divf %20, %21 : vector<32x1xf32>
    %23 = vector.broadcast %22 : vector<32x1xf32> to vector<32x128xf32>
    %24 = arith.subf %10, %23 : vector<32x128xf32>
    %25 = arith.mulf %24, %24 : vector<32x128xf32>
    %cst_13 = arith.constant dense<0.000000e+00> : vector<32xf32>
    %26 = vector.multi_reduction <add>, %25, %cst_13 [1] : vector<32x128xf32> to vector<32xf32>
    %27 = vector.shape_cast %26 : vector<32xf32> to vector<32x1xf32>
    %cst_14 = arith.constant 1.280000e+02 : f32
    %28 = vector.broadcast %cst_14 : f32 to vector<32x1xf32>
    %29 = arith.divf %27, %28 : vector<32x1xf32>
    %30 = vector.broadcast %22 : vector<32x1xf32> to vector<32x128xf32>
    %31 = arith.subf %10, %30 : vector<32x128xf32>
    %cst_15 = arith.constant 9.99999974E-6 : f32
    %32 = vector.broadcast %cst_15 : f32 to vector<32x1xf32>
    %33 = arith.addf %29, %32 : vector<32x1xf32>
    %34 = math.rsqrt %33 : vector<32x1xf32>
    %35 = vector.broadcast %34 : vector<32x1xf32> to vector<32x128xf32>
    %36 = arith.mulf %31, %35 : vector<32x128xf32>
    %37 = vector.broadcast %17 : vector<1x128xf32> to vector<32x128xf32>
    %38 = arith.mulf %36, %37 : vector<32x128xf32>
    %39 = vector.broadcast %18 : vector<1x128xf32> to vector<32x128xf32>
    %40 = arith.addf %38, %39 : vector<32x128xf32>
    %41 = arith.truncf %40 : vector<32x128xf32> to vector<32x128xbf16>
    %c0_16 = arith.constant 0 : index
    %c0_17 = arith.constant 0 : index
    %42 = vector.load %arg6[%c0_16, %c0_17] : memref<128x384xbf16, #tpu.memory_space<vmem>>, vector<128x384xbf16>
    %cst_18 = arith.constant dense<0.000000e+00> : vector<32x384xf32>
    %43 = tpu.matmul %41, %42, %cst_18 {dimension_numbers = #tpu.dot_dimension_numbers<[1], [0], [0], [1], [0, 0, 1, 1], [], []>} : vector<32x128xbf16>, vector<128x384xbf16>, vector<32x384xf32> -> vector<32x384xf32>
    %44 = vector.extract_strided_slice %43 {offsets = [0, 0], sizes = [16, 32], strides = [1, 1]} : vector<32x384xf32> to vector<16x32xf32>
    %45 = arith.truncf %44 : vector<16x32xf32> to vector<16x32xbf16>
    %46 = vector.extract_strided_slice %43 {offsets = [0, 128], sizes = [16, 32], strides = [1, 1]} : vector<32x384xf32> to vector<16x32xf32>
    %47 = arith.truncf %46 : vector<16x32xf32> to vector<16x32xbf16>
    %48 = vector.extract_strided_slice %43 {offsets = [0, 256], sizes = [16, 32], strides = [1, 1]} : vector<32x384xf32> to vector<16x32xf32>
    %49 = arith.truncf %48 : vector<16x32xf32> to vector<16x32xbf16>
    %cst_19 = arith.constant dense<0.000000e+00> : vector<16x16xf32>
    %50 = tpu.matmul %45, %47, %cst_19 {dimension_numbers = #tpu.dot_dimension_numbers<[1], [1], [0], [0], [0, 0, 1, 0], [], []>} : vector<16x32xbf16>, vector<16x32xbf16>, vector<16x16xf32> -> vector<16x16xf32>
    %cst_20 = arith.constant 0.0883883461 : f32
    %51 = vector.broadcast %cst_20 : f32 to vector<16x16xf32>
    %52 = arith.mulf %50, %51 : vector<16x16xf32>
    %53 = arith.addf %52, %16 : vector<16x16xf32>
    %cst_21 = arith.constant dense<0xFF800000> : vector<16xf32>
    %54 = vector.multi_reduction <maximumf>, %53, %cst_21 [1] : vector<16x16xf32> to vector<16xf32>
    %55 = vector.shape_cast %54 : vector<16xf32> to vector<16x1xf32>
    %56 = vector.broadcast %55 : vector<16x1xf32> to vector<16x16xf32>
    %57 = arith.subf %53, %56 : vector<16x16xf32>
    %58 = math.exp %57 : vector<16x16xf32>
    %cst_22 = arith.constant dense<0.000000e+00> : vector<16xf32>
    %59 = vector.multi_reduction <add>, %58, %cst_22 [1] : vector<16x16xf32> to vector<16xf32>
    %60 = vector.shape_cast %59 : vector<16xf32> to vector<16x1xf32>
    %61 = tpu.reciprocal %60 {approx = true} : vector<16x1xf32> -> vector<16x1xf32>
    %62 = vector.broadcast %61 : vector<16x1xf32> to vector<16x16xf32>
    %63 = arith.mulf %58, %62 : vector<16x16xf32>
    %64 = arith.truncf %63 : vector<16x16xf32> to vector<16x16xbf16>
    %cst_23 = arith.constant dense<0.000000e+00> : vector<16x32xf32>
    %65 = tpu.matmul %64, %49, %cst_23 {dimension_numbers = #tpu.dot_dimension_numbers<[1], [0], [0], [1], [0, 0, 1, 1], [], []>} : vector<16x16xbf16>, vector<16x32xbf16>, vector<16x32xf32> -> vector<16x32xf32>
    %66 = vector.extract_strided_slice %43 {offsets = [0, 32], sizes = [16, 32], strides = [1, 1]} : vector<32x384xf32> to vector<16x32xf32>
    %67 = arith.truncf %66 : vector<16x32xf32> to vector<16x32xbf16>
    %68 = vector.extract_strided_slice %43 {offsets = [0, 160], sizes = [16, 32], strides = [1, 1]} : vector<32x384xf32> to vector<16x32xf32>
    %69 = arith.truncf %68 : vector<16x32xf32> to vector<16x32xbf16>
    %70 = vector.extract_strided_slice %43 {offsets = [0, 288], sizes = [16, 32], strides = [1, 1]} : vector<32x384xf32> to vector<16x32xf32>
    %71 = arith.truncf %70 : vector<16x32xf32> to vector<16x32xbf16>
    %cst_24 = arith.constant dense<0.000000e+00> : vector<16x16xf32>
    %72 = tpu.matmul %67, %69, %cst_24 {dimension_numbers = #tpu.dot_dimension_numbers<[1], [1], [0], [0], [0, 0, 1, 0], [], []>} : vector<16x32xbf16>, vector<16x32xbf16>, vector<16x16xf32> -> vector<16x16xf32>
    %cst_25 = arith.constant 0.0883883461 : f32
    %73 = vector.broadcast %cst_25 : f32 to vector<16x16xf32>
    %74 = arith.mulf %72, %73 : vector<16x16xf32>
    %75 = arith.addf %74, %16 : vector<16x16xf32>
    %cst_26 = arith.constant dense<0xFF800000> : vector<16xf32>
    %76 = vector.multi_reduction <maximumf>, %75, %cst_26 [1] : vector<16x16xf32> to vector<16xf32>
    %77 = vector.shape_cast %76 : vector<16xf32> to vector<16x1xf32>
    %78 = vector.broadcast %77 : vector<16x1xf32> to vector<16x16xf32>
    %79 = arith.subf %75, %78 : vector<16x16xf32>
    %80 = math.exp %79 : vector<16x16xf32>
    %cst_27 = arith.constant dense<0.000000e+00> : vector<16xf32>
    %81 = vector.multi_reduction <add>, %80, %cst_27 [1] : vector<16x16xf32> to vector<16xf32>
    %82 = vector.shape_cast %81 : vector<16xf32> to vector<16x1xf32>
    %83 = tpu.reciprocal %82 {approx = true} : vector<16x1xf32> -> vector<16x1xf32>
    %84 = vector.broadcast %83 : vector<16x1xf32> to vector<16x16xf32>
    %85 = arith.mulf %80, %84 : vector<16x16xf32>
    %86 = arith.truncf %85 : vector<16x16xf32> to vector<16x16xbf16>
    %cst_28 = arith.constant dense<0.000000e+00> : vector<16x32xf32>
    %87 = tpu.matmul %86, %71, %cst_28 {dimension_numbers = #tpu.dot_dimension_numbers<[1], [0], [0], [1], [0, 0, 1, 1], [], []>} : vector<16x16xbf16>, vector<16x32xbf16>, vector<16x32xf32> -> vector<16x32xf32>
    %88 = vector.extract_strided_slice %43 {offsets = [0, 64], sizes = [16, 32], strides = [1, 1]} : vector<32x384xf32> to vector<16x32xf32>
    %89 = arith.truncf %88 : vector<16x32xf32> to vector<16x32xbf16>
    %90 = vector.extract_strided_slice %43 {offsets = [0, 192], sizes = [16, 32], strides = [1, 1]} : vector<32x384xf32> to vector<16x32xf32>
    %91 = arith.truncf %90 : vector<16x32xf32> to vector<16x32xbf16>
    %92 = vector.extract_strided_slice %43 {offsets = [0, 320], sizes = [16, 32], strides = [1, 1]} : vector<32x384xf32> to vector<16x32xf32>
    %93 = arith.truncf %92 : vector<16x32xf32> to vector<16x32xbf16>
    %cst_29 = arith.constant dense<0.000000e+00> : vector<16x16xf32>
    %94 = tpu.matmul %89, %91, %cst_29 {dimension_numbers = #tpu.dot_dimension_numbers<[1], [1], [0], [0], [0, 0, 1, 0], [], []>} : vector<16x32xbf16>, vector<16x32xbf16>, vector<16x16xf32> -> vector<16x16xf32>
    %cst_30 = arith.constant 0.0883883461 : f32
    %95 = vector.broadcast %cst_30 : f32 to vector<16x16xf32>
    %96 = arith.mulf %94, %95 : vector<16x16xf32>
    %97 = arith.addf %96, %16 : vector<16x16xf32>
    %cst_31 = arith.constant dense<0xFF800000> : vector<16xf32>
    %98 = vector.multi_reduction <maximumf>, %97, %cst_31 [1] : vector<16x16xf32> to vector<16xf32>
    %99 = vector.shape_cast %98 : vector<16xf32> to vector<16x1xf32>
    %100 = vector.broadcast %99 : vector<16x1xf32> to vector<16x16xf32>
    %101 = arith.subf %97, %100 : vector<16x16xf32>
    %102 = math.exp %101 : vector<16x16xf32>
    %cst_32 = arith.constant dense<0.000000e+00> : vector<16xf32>
    %103 = vector.multi_reduction <add>, %102, %cst_32 [1] : vector<16x16xf32> to vector<16xf32>
    %104 = vector.shape_cast %103 : vector<16xf32> to vector<16x1xf32>
    %105 = tpu.reciprocal %104 {approx = true} : vector<16x1xf32> -> vector<16x1xf32>
    %106 = vector.broadcast %105 : vector<16x1xf32> to vector<16x16xf32>
    %107 = arith.mulf %102, %106 : vector<16x16xf32>
    %108 = arith.truncf %107 : vector<16x16xf32> to vector<16x16xbf16>
    %cst_33 = arith.constant dense<0.000000e+00> : vector<16x32xf32>
    %109 = tpu.matmul %108, %93, %cst_33 {dimension_numbers = #tpu.dot_dimension_numbers<[1], [0], [0], [1], [0, 0, 1, 1], [], []>} : vector<16x16xbf16>, vector<16x32xbf16>, vector<16x32xf32> -> vector<16x32xf32>
    %110 = vector.extract_strided_slice %43 {offsets = [0, 96], sizes = [16, 32], strides = [1, 1]} : vector<32x384xf32> to vector<16x32xf32>
    %111 = arith.truncf %110 : vector<16x32xf32> to vector<16x32xbf16>
    %112 = vector.extract_strided_slice %43 {offsets = [0, 224], sizes = [16, 32], strides = [1, 1]} : vector<32x384xf32> to vector<16x32xf32>
    %113 = arith.truncf %112 : vector<16x32xf32> to vector<16x32xbf16>
    %114 = vector.extract_strided_slice %43 {offsets = [0, 352], sizes = [16, 32], strides = [1, 1]} : vector<32x384xf32> to vector<16x32xf32>
    %115 = arith.truncf %114 : vector<16x32xf32> to vector<16x32xbf16>
    %cst_34 = arith.constant dense<0.000000e+00> : vector<16x16xf32>
    %116 = tpu.matmul %111, %113, %cst_34 {dimension_numbers = #tpu.dot_dimension_numbers<[1], [1], [0], [0], [0, 0, 1, 0], [], []>} : vector<16x32xbf16>, vector<16x32xbf16>, vector<16x16xf32> -> vector<16x16xf32>
    %cst_35 = arith.constant 0.0883883461 : f32
    %117 = vector.broadcast %cst_35 : f32 to vector<16x16xf32>
    %118 = arith.mulf %116, %117 : vector<16x16xf32>
    %119 = arith.addf %118, %16 : vector<16x16xf32>
    %cst_36 = arith.constant dense<0xFF800000> : vector<16xf32>
    %120 = vector.multi_reduction <maximumf>, %119, %cst_36 [1] : vector<16x16xf32> to vector<16xf32>
    %121 = vector.shape_cast %120 : vector<16xf32> to vector<16x1xf32>
    %122 = vector.broadcast %121 : vector<16x1xf32> to vector<16x16xf32>
    %123 = arith.subf %119, %122 : vector<16x16xf32>
    %124 = math.exp %123 : vector<16x16xf32>
    %cst_37 = arith.constant dense<0.000000e+00> : vector<16xf32>
    %125 = vector.multi_reduction <add>, %124, %cst_37 [1] : vector<16x16xf32> to vector<16xf32>
    %126 = vector.shape_cast %125 : vector<16xf32> to vector<16x1xf32>
    %127 = tpu.reciprocal %126 {approx = true} : vector<16x1xf32> -> vector<16x1xf32>
    %128 = vector.broadcast %127 : vector<16x1xf32> to vector<16x16xf32>
    %129 = arith.mulf %124, %128 : vector<16x16xf32>
    %130 = arith.truncf %129 : vector<16x16xf32> to vector<16x16xbf16>
    %cst_38 = arith.constant dense<0.000000e+00> : vector<16x32xf32>
    %131 = tpu.matmul %130, %115, %cst_38 {dimension_numbers = #tpu.dot_dimension_numbers<[1], [0], [0], [1], [0, 0, 1, 1], [], []>} : vector<16x16xbf16>, vector<16x32xbf16>, vector<16x32xf32> -> vector<16x32xf32>
    %132 = tpu.concatenate %65, %87, %109, %131 in 1 : vector<16x32xf32>, vector<16x32xf32>, vector<16x32xf32>, vector<16x32xf32> -> vector<16x128xf32>
    %133 = vector.extract_strided_slice %43 {offsets = [16, 0], sizes = [16, 32], strides = [1, 1]} : vector<32x384xf32> to vector<16x32xf32>
    %134 = arith.truncf %133 : vector<16x32xf32> to vector<16x32xbf16>
    %135 = vector.extract_strided_slice %43 {offsets = [16, 128], sizes = [16, 32], strides = [1, 1]} : vector<32x384xf32> to vector<16x32xf32>
    %136 = arith.truncf %135 : vector<16x32xf32> to vector<16x32xbf16>
    %137 = vector.extract_strided_slice %43 {offsets = [16, 256], sizes = [16, 32], strides = [1, 1]} : vector<32x384xf32> to vector<16x32xf32>
    %138 = arith.truncf %137 : vector<16x32xf32> to vector<16x32xbf16>
    %cst_39 = arith.constant dense<0.000000e+00> : vector<16x16xf32>
    %139 = tpu.matmul %134, %136, %cst_39 {dimension_numbers = #tpu.dot_dimension_numbers<[1], [1], [0], [0], [0, 0, 1, 0], [], []>} : vector<16x32xbf16>, vector<16x32xbf16>, vector<16x16xf32> -> vector<16x16xf32>
    %cst_40 = arith.constant 0.0883883461 : f32
    %140 = vector.broadcast %cst_40 : f32 to vector<16x16xf32>
    %141 = arith.mulf %139, %140 : vector<16x16xf32>
    %142 = arith.addf %141, %16 : vector<16x16xf32>
    %cst_41 = arith.constant dense<0xFF800000> : vector<16xf32>
    %143 = vector.multi_reduction <maximumf>, %142, %cst_41 [1] : vector<16x16xf32> to vector<16xf32>
    %144 = vector.shape_cast %143 : vector<16xf32> to vector<16x1xf32>
    %145 = vector.broadcast %144 : vector<16x1xf32> to vector<16x16xf32>
    %146 = arith.subf %142, %145 : vector<16x16xf32>
    %147 = math.exp %146 : vector<16x16xf32>
    %cst_42 = arith.constant dense<0.000000e+00> : vector<16xf32>
    %148 = vector.multi_reduction <add>, %147, %cst_42 [1] : vector<16x16xf32> to vector<16xf32>
    %149 = vector.shape_cast %148 : vector<16xf32> to vector<16x1xf32>
    %150 = tpu.reciprocal %149 {approx = true} : vector<16x1xf32> -> vector<16x1xf32>
    %151 = vector.broadcast %150 : vector<16x1xf32> to vector<16x16xf32>
    %152 = arith.mulf %147, %151 : vector<16x16xf32>
    %153 = arith.truncf %152 : vector<16x16xf32> to vector<16x16xbf16>
    %cst_43 = arith.constant dense<0.000000e+00> : vector<16x32xf32>
    %154 = tpu.matmul %153, %138, %cst_43 {dimension_numbers = #tpu.dot_dimension_numbers<[1], [0], [0], [1], [0, 0, 1, 1], [], []>} : vector<16x16xbf16>, vector<16x32xbf16>, vector<16x32xf32> -> vector<16x32xf32>
    %155 = vector.extract_strided_slice %43 {offsets = [16, 32], sizes = [16, 32], strides = [1, 1]} : vector<32x384xf32> to vector<16x32xf32>
    %156 = arith.truncf %155 : vector<16x32xf32> to vector<16x32xbf16>
    %157 = vector.extract_strided_slice %43 {offsets = [16, 160], sizes = [16, 32], strides = [1, 1]} : vector<32x384xf32> to vector<16x32xf32>
    %158 = arith.truncf %157 : vector<16x32xf32> to vector<16x32xbf16>
    %159 = vector.extract_strided_slice %43 {offsets = [16, 288], sizes = [16, 32], strides = [1, 1]} : vector<32x384xf32> to vector<16x32xf32>
    %160 = arith.truncf %159 : vector<16x32xf32> to vector<16x32xbf16>
    %cst_44 = arith.constant dense<0.000000e+00> : vector<16x16xf32>
    %161 = tpu.matmul %156, %158, %cst_44 {dimension_numbers = #tpu.dot_dimension_numbers<[1], [1], [0], [0], [0, 0, 1, 0], [], []>} : vector<16x32xbf16>, vector<16x32xbf16>, vector<16x16xf32> -> vector<16x16xf32>
    %cst_45 = arith.constant 0.0883883461 : f32
    %162 = vector.broadcast %cst_45 : f32 to vector<16x16xf32>
    %163 = arith.mulf %161, %162 : vector<16x16xf32>
    %164 = arith.addf %163, %16 : vector<16x16xf32>
    %cst_46 = arith.constant dense<0xFF800000> : vector<16xf32>
    %165 = vector.multi_reduction <maximumf>, %164, %cst_46 [1] : vector<16x16xf32> to vector<16xf32>
    %166 = vector.shape_cast %165 : vector<16xf32> to vector<16x1xf32>
    %167 = vector.broadcast %166 : vector<16x1xf32> to vector<16x16xf32>
    %168 = arith.subf %164, %167 : vector<16x16xf32>
    %169 = math.exp %168 : vector<16x16xf32>
    %cst_47 = arith.constant dense<0.000000e+00> : vector<16xf32>
    %170 = vector.multi_reduction <add>, %169, %cst_47 [1] : vector<16x16xf32> to vector<16xf32>
    %171 = vector.shape_cast %170 : vector<16xf32> to vector<16x1xf32>
    %172 = tpu.reciprocal %171 {approx = true} : vector<16x1xf32> -> vector<16x1xf32>
    %173 = vector.broadcast %172 : vector<16x1xf32> to vector<16x16xf32>
    %174 = arith.mulf %169, %173 : vector<16x16xf32>
    %175 = arith.truncf %174 : vector<16x16xf32> to vector<16x16xbf16>
    %cst_48 = arith.constant dense<0.000000e+00> : vector<16x32xf32>
    %176 = tpu.matmul %175, %160, %cst_48 {dimension_numbers = #tpu.dot_dimension_numbers<[1], [0], [0], [1], [0, 0, 1, 1], [], []>} : vector<16x16xbf16>, vector<16x32xbf16>, vector<16x32xf32> -> vector<16x32xf32>
    %177 = vector.extract_strided_slice %43 {offsets = [16, 64], sizes = [16, 32], strides = [1, 1]} : vector<32x384xf32> to vector<16x32xf32>
    %178 = arith.truncf %177 : vector<16x32xf32> to vector<16x32xbf16>
    %179 = vector.extract_strided_slice %43 {offsets = [16, 192], sizes = [16, 32], strides = [1, 1]} : vector<32x384xf32> to vector<16x32xf32>
    %180 = arith.truncf %179 : vector<16x32xf32> to vector<16x32xbf16>
    %181 = vector.extract_strided_slice %43 {offsets = [16, 320], sizes = [16, 32], strides = [1, 1]} : vector<32x384xf32> to vector<16x32xf32>
    %182 = arith.truncf %181 : vector<16x32xf32> to vector<16x32xbf16>
    %cst_49 = arith.constant dense<0.000000e+00> : vector<16x16xf32>
    %183 = tpu.matmul %178, %180, %cst_49 {dimension_numbers = #tpu.dot_dimension_numbers<[1], [1], [0], [0], [0, 0, 1, 0], [], []>} : vector<16x32xbf16>, vector<16x32xbf16>, vector<16x16xf32> -> vector<16x16xf32>
    %cst_50 = arith.constant 0.0883883461 : f32
    %184 = vector.broadcast %cst_50 : f32 to vector<16x16xf32>
    %185 = arith.mulf %183, %184 : vector<16x16xf32>
    %186 = arith.addf %185, %16 : vector<16x16xf32>
    %cst_51 = arith.constant dense<0xFF800000> : vector<16xf32>
    %187 = vector.multi_reduction <maximumf>, %186, %cst_51 [1] : vector<16x16xf32> to vector<16xf32>
    %188 = vector.shape_cast %187 : vector<16xf32> to vector<16x1xf32>
    %189 = vector.broadcast %188 : vector<16x1xf32> to vector<16x16xf32>
    %190 = arith.subf %186, %189 : vector<16x16xf32>
    %191 = math.exp %190 : vector<16x16xf32>
    %cst_52 = arith.constant dense<0.000000e+00> : vector<16xf32>
    %192 = vector.multi_reduction <add>, %191, %cst_52 [1] : vector<16x16xf32> to vector<16xf32>
    %193 = vector.shape_cast %192 : vector<16xf32> to vector<16x1xf32>
    %194 = tpu.reciprocal %193 {approx = true} : vector<16x1xf32> -> vector<16x1xf32>
    %195 = vector.broadcast %194 : vector<16x1xf32> to vector<16x16xf32>
    %196 = arith.mulf %191, %195 : vector<16x16xf32>
    %197 = arith.truncf %196 : vector<16x16xf32> to vector<16x16xbf16>
    %cst_53 = arith.constant dense<0.000000e+00> : vector<16x32xf32>
    %198 = tpu.matmul %197, %182, %cst_53 {dimension_numbers = #tpu.dot_dimension_numbers<[1], [0], [0], [1], [0, 0, 1, 1], [], []>} : vector<16x16xbf16>, vector<16x32xbf16>, vector<16x32xf32> -> vector<16x32xf32>
    %199 = vector.extract_strided_slice %43 {offsets = [16, 96], sizes = [16, 32], strides = [1, 1]} : vector<32x384xf32> to vector<16x32xf32>
    %200 = arith.truncf %199 : vector<16x32xf32> to vector<16x32xbf16>
    %201 = vector.extract_strided_slice %43 {offsets = [16, 224], sizes = [16, 32], strides = [1, 1]} : vector<32x384xf32> to vector<16x32xf32>
    %202 = arith.truncf %201 : vector<16x32xf32> to vector<16x32xbf16>
    %203 = vector.extract_strided_slice %43 {offsets = [16, 352], sizes = [16, 32], strides = [1, 1]} : vector<32x384xf32> to vector<16x32xf32>
    %204 = arith.truncf %203 : vector<16x32xf32> to vector<16x32xbf16>
    %cst_54 = arith.constant dense<0.000000e+00> : vector<16x16xf32>
    %205 = tpu.matmul %200, %202, %cst_54 {dimension_numbers = #tpu.dot_dimension_numbers<[1], [1], [0], [0], [0, 0, 1, 0], [], []>} : vector<16x32xbf16>, vector<16x32xbf16>, vector<16x16xf32> -> vector<16x16xf32>
    %cst_55 = arith.constant 0.0883883461 : f32
    %206 = vector.broadcast %cst_55 : f32 to vector<16x16xf32>
    %207 = arith.mulf %205, %206 : vector<16x16xf32>
    %208 = arith.addf %207, %16 : vector<16x16xf32>
    %cst_56 = arith.constant dense<0xFF800000> : vector<16xf32>
    %209 = vector.multi_reduction <maximumf>, %208, %cst_56 [1] : vector<16x16xf32> to vector<16xf32>
    %210 = vector.shape_cast %209 : vector<16xf32> to vector<16x1xf32>
    %211 = vector.broadcast %210 : vector<16x1xf32> to vector<16x16xf32>
    %212 = arith.subf %208, %211 : vector<16x16xf32>
    %213 = math.exp %212 : vector<16x16xf32>
    %cst_57 = arith.constant dense<0.000000e+00> : vector<16xf32>
    %214 = vector.multi_reduction <add>, %213, %cst_57 [1] : vector<16x16xf32> to vector<16xf32>
    %215 = vector.shape_cast %214 : vector<16xf32> to vector<16x1xf32>
    %216 = tpu.reciprocal %215 {approx = true} : vector<16x1xf32> -> vector<16x1xf32>
    %217 = vector.broadcast %216 : vector<16x1xf32> to vector<16x16xf32>
    %218 = arith.mulf %213, %217 : vector<16x16xf32>
    %219 = arith.truncf %218 : vector<16x16xf32> to vector<16x16xbf16>
    %cst_58 = arith.constant dense<0.000000e+00> : vector<16x32xf32>
    %220 = tpu.matmul %219, %204, %cst_58 {dimension_numbers = #tpu.dot_dimension_numbers<[1], [0], [0], [1], [0, 0, 1, 1], [], []>} : vector<16x16xbf16>, vector<16x32xbf16>, vector<16x32xf32> -> vector<16x32xf32>
    %221 = tpu.concatenate %154, %176, %198, %220 in 1 : vector<16x32xf32>, vector<16x32xf32>, vector<16x32xf32>, vector<16x32xf32> -> vector<16x128xf32>
    %222 = tpu.concatenate %132, %221 in 0 : vector<16x128xf32>, vector<16x128xf32> -> vector<32x128xf32>
    %223 = arith.truncf %222 : vector<32x128xf32> to vector<32x128xbf16>
    %c0_59 = arith.constant 0 : index
    %c0_60 = arith.constant 0 : index
    %224 = vector.load %arg7[%c0_59, %c0_60] : memref<128x128xbf16, #tpu.memory_space<vmem>>, vector<128x128xbf16>
    %cst_61 = arith.constant dense<0.000000e+00> : vector<32x128xf32>
    %225 = tpu.matmul %223, %224, %cst_61 {dimension_numbers = #tpu.dot_dimension_numbers<[1], [0], [0], [1], [0, 0, 1, 1], [], []>} : vector<32x128xbf16>, vector<128x128xbf16>, vector<32x128xf32> -> vector<32x128xf32>
    %226 = arith.addf %10, %225 : vector<32x128xf32>
    %c0_62 = arith.constant 0 : index
    %c0_63 = arith.constant 0 : index
    %227 = vector.load %arg8[%c0_62, %c0_63] : memref<1x128xf32, #tpu.memory_space<vmem>>, vector<1x128xf32>
    %228 = vector.broadcast %227 : vector<1x128xf32> to vector<32x128xf32>
    %229 = arith.addf %226, %228 : vector<32x128xf32>
    %c0_64 = arith.constant 0 : index
    %c0_65 = arith.constant 0 : index
    %230 = vector.load %arg9[%c0_64, %c0_65] : memref<1x128xf32, #tpu.memory_space<vmem>>, vector<1x128xf32>
    %c0_66 = arith.constant 0 : index
    %c0_67 = arith.constant 0 : index
    %231 = vector.load %arg10[%c0_66, %c0_67] : memref<1x128xf32, #tpu.memory_space<vmem>>, vector<1x128xf32>
    %cst_68 = arith.constant dense<0.000000e+00> : vector<32xf32>
    %232 = vector.multi_reduction <add>, %229, %cst_68 [1] : vector<32x128xf32> to vector<32xf32>
    %233 = vector.shape_cast %232 : vector<32xf32> to vector<32x1xf32>
    %cst_69 = arith.constant 1.280000e+02 : f32
    %234 = vector.broadcast %cst_69 : f32 to vector<32x1xf32>
    %235 = arith.divf %233, %234 : vector<32x1xf32>
    %236 = vector.broadcast %235 : vector<32x1xf32> to vector<32x128xf32>
    %237 = arith.subf %229, %236 : vector<32x128xf32>
    %238 = arith.mulf %237, %237 : vector<32x128xf32>
    %cst_70 = arith.constant dense<0.000000e+00> : vector<32xf32>
    %239 = vector.multi_reduction <add>, %238, %cst_70 [1] : vector<32x128xf32> to vector<32xf32>
    %240 = vector.shape_cast %239 : vector<32xf32> to vector<32x1xf32>
    %cst_71 = arith.constant 1.280000e+02 : f32
    %241 = vector.broadcast %cst_71 : f32 to vector<32x1xf32>
    %242 = arith.divf %240, %241 : vector<32x1xf32>
    %243 = vector.broadcast %235 : vector<32x1xf32> to vector<32x128xf32>
    %244 = arith.subf %229, %243 : vector<32x128xf32>
    %cst_72 = arith.constant 9.99999974E-6 : f32
    %245 = vector.broadcast %cst_72 : f32 to vector<32x1xf32>
    %246 = arith.addf %242, %245 : vector<32x1xf32>
    %247 = math.rsqrt %246 : vector<32x1xf32>
    %248 = vector.broadcast %247 : vector<32x1xf32> to vector<32x128xf32>
    %249 = arith.mulf %244, %248 : vector<32x128xf32>
    %250 = vector.broadcast %230 : vector<1x128xf32> to vector<32x128xf32>
    %251 = arith.mulf %249, %250 : vector<32x128xf32>
    %252 = vector.broadcast %231 : vector<1x128xf32> to vector<32x128xf32>
    %253 = arith.addf %251, %252 : vector<32x128xf32>
    %254 = arith.truncf %253 : vector<32x128xf32> to vector<32x128xbf16>
    %c0_73 = arith.constant 0 : index
    %c0_74 = arith.constant 0 : index
    %255 = vector.load %arg11[%c0_73, %c0_74] : memref<128x128xbf16, #tpu.memory_space<vmem>>, vector<128x128xbf16>
    %cst_75 = arith.constant dense<0.000000e+00> : vector<32x128xf32>
    %256 = tpu.matmul %254, %255, %cst_75 {dimension_numbers = #tpu.dot_dimension_numbers<[1], [0], [0], [1], [0, 0, 1, 1], [], []>} : vector<32x128xbf16>, vector<128x128xbf16>, vector<32x128xf32> -> vector<32x128xf32>
    %c0_76 = arith.constant 0 : index
    %c0_77 = arith.constant 0 : index
    %257 = vector.load %arg12[%c0_76, %c0_77] : memref<1x128xf32, #tpu.memory_space<vmem>>, vector<1x128xf32>
    %258 = vector.broadcast %257 : vector<1x128xf32> to vector<32x128xf32>
    %259 = arith.addf %256, %258 : vector<32x128xf32>
    %cst_78 = arith.constant 0.000000e+00 : f32
    %260 = vector.broadcast %cst_78 : f32 to vector<32x128xf32>
    %261 = arith.maximumf %259, %260 : vector<32x128xf32>
    %262 = arith.truncf %261 : vector<32x128xf32> to vector<32x128xbf16>
    %c0_79 = arith.constant 0 : index
    %c0_80 = arith.constant 0 : index
    %263 = vector.load %arg13[%c0_79, %c0_80] : memref<128x128xbf16, #tpu.memory_space<vmem>>, vector<128x128xbf16>
    %cst_81 = arith.constant dense<0.000000e+00> : vector<32x128xf32>
    %264 = tpu.matmul %262, %263, %cst_81 {dimension_numbers = #tpu.dot_dimension_numbers<[1], [0], [0], [1], [0, 0, 1, 1], [], []>} : vector<32x128xbf16>, vector<128x128xbf16>, vector<32x128xf32> -> vector<32x128xf32>
    %265 = arith.addf %229, %264 : vector<32x128xf32>
    %c0_82 = arith.constant 0 : index
    %c0_83 = arith.constant 0 : index
    %266 = vector.load %arg14[%c0_82, %c0_83] : memref<1x128xf32, #tpu.memory_space<vmem>>, vector<1x128xf32>
    %267 = vector.broadcast %266 : vector<1x128xf32> to vector<32x128xf32>
    %268 = arith.addf %265, %267 : vector<32x128xf32>
    %c0_84 = arith.constant 0 : index
    %c0_85 = arith.constant 0 : index
    %269 = vector.load %arg15[%c0_84, %c0_85] : memref<1x128xf32, #tpu.memory_space<vmem>>, vector<1x128xf32>
    %c0_86 = arith.constant 0 : index
    %c0_87 = arith.constant 0 : index
    %270 = vector.load %arg16[%c0_86, %c0_87] : memref<1x128xf32, #tpu.memory_space<vmem>>, vector<1x128xf32>
    %cst_88 = arith.constant dense<0.000000e+00> : vector<32xf32>
    %271 = vector.multi_reduction <add>, %268, %cst_88 [1] : vector<32x128xf32> to vector<32xf32>
    %272 = vector.shape_cast %271 : vector<32xf32> to vector<32x1xf32>
    %cst_89 = arith.constant 1.280000e+02 : f32
    %273 = vector.broadcast %cst_89 : f32 to vector<32x1xf32>
    %274 = arith.divf %272, %273 : vector<32x1xf32>
    %275 = vector.broadcast %274 : vector<32x1xf32> to vector<32x128xf32>
    %276 = arith.subf %268, %275 : vector<32x128xf32>
    %277 = arith.mulf %276, %276 : vector<32x128xf32>
    %cst_90 = arith.constant dense<0.000000e+00> : vector<32xf32>
    %278 = vector.multi_reduction <add>, %277, %cst_90 [1] : vector<32x128xf32> to vector<32xf32>
    %279 = vector.shape_cast %278 : vector<32xf32> to vector<32x1xf32>
    %cst_91 = arith.constant 1.280000e+02 : f32
    %280 = vector.broadcast %cst_91 : f32 to vector<32x1xf32>
    %281 = arith.divf %279, %280 : vector<32x1xf32>
    %282 = vector.broadcast %274 : vector<32x1xf32> to vector<32x128xf32>
    %283 = arith.subf %268, %282 : vector<32x128xf32>
    %cst_92 = arith.constant 9.99999974E-6 : f32
    %284 = vector.broadcast %cst_92 : f32 to vector<32x1xf32>
    %285 = arith.addf %281, %284 : vector<32x1xf32>
    %286 = math.rsqrt %285 : vector<32x1xf32>
    %287 = vector.broadcast %286 : vector<32x1xf32> to vector<32x128xf32>
    %288 = arith.mulf %283, %287 : vector<32x128xf32>
    %289 = vector.broadcast %269 : vector<1x128xf32> to vector<32x128xf32>
    %290 = arith.mulf %288, %289 : vector<32x128xf32>
    %291 = vector.broadcast %270 : vector<1x128xf32> to vector<32x128xf32>
    %292 = arith.addf %290, %291 : vector<32x128xf32>
    %293 = arith.truncf %292 : vector<32x128xf32> to vector<32x128xbf16>
    %c0_93 = arith.constant 0 : index
    %c0_94 = arith.constant 0 : index
    %294 = vector.load %arg17[%c0_93, %c0_94] : memref<128x384xbf16, #tpu.memory_space<vmem>>, vector<128x384xbf16>
    %cst_95 = arith.constant dense<0.000000e+00> : vector<32x384xf32>
    %295 = tpu.matmul %293, %294, %cst_95 {dimension_numbers = #tpu.dot_dimension_numbers<[1], [0], [0], [1], [0, 0, 1, 1], [], []>} : vector<32x128xbf16>, vector<128x384xbf16>, vector<32x384xf32> -> vector<32x384xf32>
    %296 = vector.extract_strided_slice %295 {offsets = [0, 0], sizes = [16, 32], strides = [1, 1]} : vector<32x384xf32> to vector<16x32xf32>
    %297 = arith.truncf %296 : vector<16x32xf32> to vector<16x32xbf16>
    %298 = vector.extract_strided_slice %295 {offsets = [0, 128], sizes = [16, 32], strides = [1, 1]} : vector<32x384xf32> to vector<16x32xf32>
    %299 = arith.truncf %298 : vector<16x32xf32> to vector<16x32xbf16>
    %300 = vector.extract_strided_slice %295 {offsets = [0, 256], sizes = [16, 32], strides = [1, 1]} : vector<32x384xf32> to vector<16x32xf32>
    %301 = arith.truncf %300 : vector<16x32xf32> to vector<16x32xbf16>
    %cst_96 = arith.constant dense<0.000000e+00> : vector<16x16xf32>
    %302 = tpu.matmul %297, %299, %cst_96 {dimension_numbers = #tpu.dot_dimension_numbers<[1], [1], [0], [0], [0, 0, 1, 0], [], []>} : vector<16x32xbf16>, vector<16x32xbf16>, vector<16x16xf32> -> vector<16x16xf32>
    %cst_97 = arith.constant 0.0883883461 : f32
    %303 = vector.broadcast %cst_97 : f32 to vector<16x16xf32>
    %304 = arith.mulf %302, %303 : vector<16x16xf32>
    %305 = arith.addf %304, %16 : vector<16x16xf32>
    %cst_98 = arith.constant dense<0xFF800000> : vector<16xf32>
    %306 = vector.multi_reduction <maximumf>, %305, %cst_98 [1] : vector<16x16xf32> to vector<16xf32>
    %307 = vector.shape_cast %306 : vector<16xf32> to vector<16x1xf32>
    %308 = vector.broadcast %307 : vector<16x1xf32> to vector<16x16xf32>
    %309 = arith.subf %305, %308 : vector<16x16xf32>
    %310 = math.exp %309 : vector<16x16xf32>
    %cst_99 = arith.constant dense<0.000000e+00> : vector<16xf32>
    %311 = vector.multi_reduction <add>, %310, %cst_99 [1] : vector<16x16xf32> to vector<16xf32>
    %312 = vector.shape_cast %311 : vector<16xf32> to vector<16x1xf32>
    %313 = tpu.reciprocal %312 {approx = true} : vector<16x1xf32> -> vector<16x1xf32>
    %314 = vector.broadcast %313 : vector<16x1xf32> to vector<16x16xf32>
    %315 = arith.mulf %310, %314 : vector<16x16xf32>
    %316 = arith.truncf %315 : vector<16x16xf32> to vector<16x16xbf16>
    %cst_100 = arith.constant dense<0.000000e+00> : vector<16x32xf32>
    %317 = tpu.matmul %316, %301, %cst_100 {dimension_numbers = #tpu.dot_dimension_numbers<[1], [0], [0], [1], [0, 0, 1, 1], [], []>} : vector<16x16xbf16>, vector<16x32xbf16>, vector<16x32xf32> -> vector<16x32xf32>
    %318 = vector.extract_strided_slice %295 {offsets = [0, 32], sizes = [16, 32], strides = [1, 1]} : vector<32x384xf32> to vector<16x32xf32>
    %319 = arith.truncf %318 : vector<16x32xf32> to vector<16x32xbf16>
    %320 = vector.extract_strided_slice %295 {offsets = [0, 160], sizes = [16, 32], strides = [1, 1]} : vector<32x384xf32> to vector<16x32xf32>
    %321 = arith.truncf %320 : vector<16x32xf32> to vector<16x32xbf16>
    %322 = vector.extract_strided_slice %295 {offsets = [0, 288], sizes = [16, 32], strides = [1, 1]} : vector<32x384xf32> to vector<16x32xf32>
    %323 = arith.truncf %322 : vector<16x32xf32> to vector<16x32xbf16>
    %cst_101 = arith.constant dense<0.000000e+00> : vector<16x16xf32>
    %324 = tpu.matmul %319, %321, %cst_101 {dimension_numbers = #tpu.dot_dimension_numbers<[1], [1], [0], [0], [0, 0, 1, 0], [], []>} : vector<16x32xbf16>, vector<16x32xbf16>, vector<16x16xf32> -> vector<16x16xf32>
    %cst_102 = arith.constant 0.0883883461 : f32
    %325 = vector.broadcast %cst_102 : f32 to vector<16x16xf32>
    %326 = arith.mulf %324, %325 : vector<16x16xf32>
    %327 = arith.addf %326, %16 : vector<16x16xf32>
    %cst_103 = arith.constant dense<0xFF800000> : vector<16xf32>
    %328 = vector.multi_reduction <maximumf>, %327, %cst_103 [1] : vector<16x16xf32> to vector<16xf32>
    %329 = vector.shape_cast %328 : vector<16xf32> to vector<16x1xf32>
    %330 = vector.broadcast %329 : vector<16x1xf32> to vector<16x16xf32>
    %331 = arith.subf %327, %330 : vector<16x16xf32>
    %332 = math.exp %331 : vector<16x16xf32>
    %cst_104 = arith.constant dense<0.000000e+00> : vector<16xf32>
    %333 = vector.multi_reduction <add>, %332, %cst_104 [1] : vector<16x16xf32> to vector<16xf32>
    %334 = vector.shape_cast %333 : vector<16xf32> to vector<16x1xf32>
    %335 = tpu.reciprocal %334 {approx = true} : vector<16x1xf32> -> vector<16x1xf32>
    %336 = vector.broadcast %335 : vector<16x1xf32> to vector<16x16xf32>
    %337 = arith.mulf %332, %336 : vector<16x16xf32>
    %338 = arith.truncf %337 : vector<16x16xf32> to vector<16x16xbf16>
    %cst_105 = arith.constant dense<0.000000e+00> : vector<16x32xf32>
    %339 = tpu.matmul %338, %323, %cst_105 {dimension_numbers = #tpu.dot_dimension_numbers<[1], [0], [0], [1], [0, 0, 1, 1], [], []>} : vector<16x16xbf16>, vector<16x32xbf16>, vector<16x32xf32> -> vector<16x32xf32>
    %340 = vector.extract_strided_slice %295 {offsets = [0, 64], sizes = [16, 32], strides = [1, 1]} : vector<32x384xf32> to vector<16x32xf32>
    %341 = arith.truncf %340 : vector<16x32xf32> to vector<16x32xbf16>
    %342 = vector.extract_strided_slice %295 {offsets = [0, 192], sizes = [16, 32], strides = [1, 1]} : vector<32x384xf32> to vector<16x32xf32>
    %343 = arith.truncf %342 : vector<16x32xf32> to vector<16x32xbf16>
    %344 = vector.extract_strided_slice %295 {offsets = [0, 320], sizes = [16, 32], strides = [1, 1]} : vector<32x384xf32> to vector<16x32xf32>
    %345 = arith.truncf %344 : vector<16x32xf32> to vector<16x32xbf16>
    %cst_106 = arith.constant dense<0.000000e+00> : vector<16x16xf32>
    %346 = tpu.matmul %341, %343, %cst_106 {dimension_numbers = #tpu.dot_dimension_numbers<[1], [1], [0], [0], [0, 0, 1, 0], [], []>} : vector<16x32xbf16>, vector<16x32xbf16>, vector<16x16xf32> -> vector<16x16xf32>
    %cst_107 = arith.constant 0.0883883461 : f32
    %347 = vector.broadcast %cst_107 : f32 to vector<16x16xf32>
    %348 = arith.mulf %346, %347 : vector<16x16xf32>
    %349 = arith.addf %348, %16 : vector<16x16xf32>
    %cst_108 = arith.constant dense<0xFF800000> : vector<16xf32>
    %350 = vector.multi_reduction <maximumf>, %349, %cst_108 [1] : vector<16x16xf32> to vector<16xf32>
    %351 = vector.shape_cast %350 : vector<16xf32> to vector<16x1xf32>
    %352 = vector.broadcast %351 : vector<16x1xf32> to vector<16x16xf32>
    %353 = arith.subf %349, %352 : vector<16x16xf32>
    %354 = math.exp %353 : vector<16x16xf32>
    %cst_109 = arith.constant dense<0.000000e+00> : vector<16xf32>
    %355 = vector.multi_reduction <add>, %354, %cst_109 [1] : vector<16x16xf32> to vector<16xf32>
    %356 = vector.shape_cast %355 : vector<16xf32> to vector<16x1xf32>
    %357 = tpu.reciprocal %356 {approx = true} : vector<16x1xf32> -> vector<16x1xf32>
    %358 = vector.broadcast %357 : vector<16x1xf32> to vector<16x16xf32>
    %359 = arith.mulf %354, %358 : vector<16x16xf32>
    %360 = arith.truncf %359 : vector<16x16xf32> to vector<16x16xbf16>
    %cst_110 = arith.constant dense<0.000000e+00> : vector<16x32xf32>
    %361 = tpu.matmul %360, %345, %cst_110 {dimension_numbers = #tpu.dot_dimension_numbers<[1], [0], [0], [1], [0, 0, 1, 1], [], []>} : vector<16x16xbf16>, vector<16x32xbf16>, vector<16x32xf32> -> vector<16x32xf32>
    %362 = vector.extract_strided_slice %295 {offsets = [0, 96], sizes = [16, 32], strides = [1, 1]} : vector<32x384xf32> to vector<16x32xf32>
    %363 = arith.truncf %362 : vector<16x32xf32> to vector<16x32xbf16>
    %364 = vector.extract_strided_slice %295 {offsets = [0, 224], sizes = [16, 32], strides = [1, 1]} : vector<32x384xf32> to vector<16x32xf32>
    %365 = arith.truncf %364 : vector<16x32xf32> to vector<16x32xbf16>
    %366 = vector.extract_strided_slice %295 {offsets = [0, 352], sizes = [16, 32], strides = [1, 1]} : vector<32x384xf32> to vector<16x32xf32>
    %367 = arith.truncf %366 : vector<16x32xf32> to vector<16x32xbf16>
    %cst_111 = arith.constant dense<0.000000e+00> : vector<16x16xf32>
    %368 = tpu.matmul %363, %365, %cst_111 {dimension_numbers = #tpu.dot_dimension_numbers<[1], [1], [0], [0], [0, 0, 1, 0], [], []>} : vector<16x32xbf16>, vector<16x32xbf16>, vector<16x16xf32> -> vector<16x16xf32>
    %cst_112 = arith.constant 0.0883883461 : f32
    %369 = vector.broadcast %cst_112 : f32 to vector<16x16xf32>
    %370 = arith.mulf %368, %369 : vector<16x16xf32>
    %371 = arith.addf %370, %16 : vector<16x16xf32>
    %cst_113 = arith.constant dense<0xFF800000> : vector<16xf32>
    %372 = vector.multi_reduction <maximumf>, %371, %cst_113 [1] : vector<16x16xf32> to vector<16xf32>
    %373 = vector.shape_cast %372 : vector<16xf32> to vector<16x1xf32>
    %374 = vector.broadcast %373 : vector<16x1xf32> to vector<16x16xf32>
    %375 = arith.subf %371, %374 : vector<16x16xf32>
    %376 = math.exp %375 : vector<16x16xf32>
    %cst_114 = arith.constant dense<0.000000e+00> : vector<16xf32>
    %377 = vector.multi_reduction <add>, %376, %cst_114 [1] : vector<16x16xf32> to vector<16xf32>
    %378 = vector.shape_cast %377 : vector<16xf32> to vector<16x1xf32>
    %379 = tpu.reciprocal %378 {approx = true} : vector<16x1xf32> -> vector<16x1xf32>
    %380 = vector.broadcast %379 : vector<16x1xf32> to vector<16x16xf32>
    %381 = arith.mulf %376, %380 : vector<16x16xf32>
    %382 = arith.truncf %381 : vector<16x16xf32> to vector<16x16xbf16>
    %cst_115 = arith.constant dense<0.000000e+00> : vector<16x32xf32>
    %383 = tpu.matmul %382, %367, %cst_115 {dimension_numbers = #tpu.dot_dimension_numbers<[1], [0], [0], [1], [0, 0, 1, 1], [], []>} : vector<16x16xbf16>, vector<16x32xbf16>, vector<16x32xf32> -> vector<16x32xf32>
    %384 = tpu.concatenate %317, %339, %361, %383 in 1 : vector<16x32xf32>, vector<16x32xf32>, vector<16x32xf32>, vector<16x32xf32> -> vector<16x128xf32>
    %385 = vector.extract_strided_slice %295 {offsets = [16, 0], sizes = [16, 32], strides = [1, 1]} : vector<32x384xf32> to vector<16x32xf32>
    %386 = arith.truncf %385 : vector<16x32xf32> to vector<16x32xbf16>
    %387 = vector.extract_strided_slice %295 {offsets = [16, 128], sizes = [16, 32], strides = [1, 1]} : vector<32x384xf32> to vector<16x32xf32>
    %388 = arith.truncf %387 : vector<16x32xf32> to vector<16x32xbf16>
    %389 = vector.extract_strided_slice %295 {offsets = [16, 256], sizes = [16, 32], strides = [1, 1]} : vector<32x384xf32> to vector<16x32xf32>
    %390 = arith.truncf %389 : vector<16x32xf32> to vector<16x32xbf16>
    %cst_116 = arith.constant dense<0.000000e+00> : vector<16x16xf32>
    %391 = tpu.matmul %386, %388, %cst_116 {dimension_numbers = #tpu.dot_dimension_numbers<[1], [1], [0], [0], [0, 0, 1, 0], [], []>} : vector<16x32xbf16>, vector<16x32xbf16>, vector<16x16xf32> -> vector<16x16xf32>
    %cst_117 = arith.constant 0.0883883461 : f32
    %392 = vector.broadcast %cst_117 : f32 to vector<16x16xf32>
    %393 = arith.mulf %391, %392 : vector<16x16xf32>
    %394 = arith.addf %393, %16 : vector<16x16xf32>
    %cst_118 = arith.constant dense<0xFF800000> : vector<16xf32>
    %395 = vector.multi_reduction <maximumf>, %394, %cst_118 [1] : vector<16x16xf32> to vector<16xf32>
    %396 = vector.shape_cast %395 : vector<16xf32> to vector<16x1xf32>
    %397 = vector.broadcast %396 : vector<16x1xf32> to vector<16x16xf32>
    %398 = arith.subf %394, %397 : vector<16x16xf32>
    %399 = math.exp %398 : vector<16x16xf32>
    %cst_119 = arith.constant dense<0.000000e+00> : vector<16xf32>
    %400 = vector.multi_reduction <add>, %399, %cst_119 [1] : vector<16x16xf32> to vector<16xf32>
    %401 = vector.shape_cast %400 : vector<16xf32> to vector<16x1xf32>
    %402 = tpu.reciprocal %401 {approx = true} : vector<16x1xf32> -> vector<16x1xf32>
    %403 = vector.broadcast %402 : vector<16x1xf32> to vector<16x16xf32>
    %404 = arith.mulf %399, %403 : vector<16x16xf32>
    %405 = arith.truncf %404 : vector<16x16xf32> to vector<16x16xbf16>
    %cst_120 = arith.constant dense<0.000000e+00> : vector<16x32xf32>
    %406 = tpu.matmul %405, %390, %cst_120 {dimension_numbers = #tpu.dot_dimension_numbers<[1], [0], [0], [1], [0, 0, 1, 1], [], []>} : vector<16x16xbf16>, vector<16x32xbf16>, vector<16x32xf32> -> vector<16x32xf32>
    %407 = vector.extract_strided_slice %295 {offsets = [16, 32], sizes = [16, 32], strides = [1, 1]} : vector<32x384xf32> to vector<16x32xf32>
    %408 = arith.truncf %407 : vector<16x32xf32> to vector<16x32xbf16>
    %409 = vector.extract_strided_slice %295 {offsets = [16, 160], sizes = [16, 32], strides = [1, 1]} : vector<32x384xf32> to vector<16x32xf32>
    %410 = arith.truncf %409 : vector<16x32xf32> to vector<16x32xbf16>
    %411 = vector.extract_strided_slice %295 {offsets = [16, 288], sizes = [16, 32], strides = [1, 1]} : vector<32x384xf32> to vector<16x32xf32>
    %412 = arith.truncf %411 : vector<16x32xf32> to vector<16x32xbf16>
    %cst_121 = arith.constant dense<0.000000e+00> : vector<16x16xf32>
    %413 = tpu.matmul %408, %410, %cst_121 {dimension_numbers = #tpu.dot_dimension_numbers<[1], [1], [0], [0], [0, 0, 1, 0], [], []>} : vector<16x32xbf16>, vector<16x32xbf16>, vector<16x16xf32> -> vector<16x16xf32>
    %cst_122 = arith.constant 0.0883883461 : f32
    %414 = vector.broadcast %cst_122 : f32 to vector<16x16xf32>
    %415 = arith.mulf %413, %414 : vector<16x16xf32>
    %416 = arith.addf %415, %16 : vector<16x16xf32>
    %cst_123 = arith.constant dense<0xFF800000> : vector<16xf32>
    %417 = vector.multi_reduction <maximumf>, %416, %cst_123 [1] : vector<16x16xf32> to vector<16xf32>
    %418 = vector.shape_cast %417 : vector<16xf32> to vector<16x1xf32>
    %419 = vector.broadcast %418 : vector<16x1xf32> to vector<16x16xf32>
    %420 = arith.subf %416, %419 : vector<16x16xf32>
    %421 = math.exp %420 : vector<16x16xf32>
    %cst_124 = arith.constant dense<0.000000e+00> : vector<16xf32>
    %422 = vector.multi_reduction <add>, %421, %cst_124 [1] : vector<16x16xf32> to vector<16xf32>
    %423 = vector.shape_cast %422 : vector<16xf32> to vector<16x1xf32>
    %424 = tpu.reciprocal %423 {approx = true} : vector<16x1xf32> -> vector<16x1xf32>
    %425 = vector.broadcast %424 : vector<16x1xf32> to vector<16x16xf32>
    %426 = arith.mulf %421, %425 : vector<16x16xf32>
    %427 = arith.truncf %426 : vector<16x16xf32> to vector<16x16xbf16>
    %cst_125 = arith.constant dense<0.000000e+00> : vector<16x32xf32>
    %428 = tpu.matmul %427, %412, %cst_125 {dimension_numbers = #tpu.dot_dimension_numbers<[1], [0], [0], [1], [0, 0, 1, 1], [], []>} : vector<16x16xbf16>, vector<16x32xbf16>, vector<16x32xf32> -> vector<16x32xf32>
    %429 = vector.extract_strided_slice %295 {offsets = [16, 64], sizes = [16, 32], strides = [1, 1]} : vector<32x384xf32> to vector<16x32xf32>
    %430 = arith.truncf %429 : vector<16x32xf32> to vector<16x32xbf16>
    %431 = vector.extract_strided_slice %295 {offsets = [16, 192], sizes = [16, 32], strides = [1, 1]} : vector<32x384xf32> to vector<16x32xf32>
    %432 = arith.truncf %431 : vector<16x32xf32> to vector<16x32xbf16>
    %433 = vector.extract_strided_slice %295 {offsets = [16, 320], sizes = [16, 32], strides = [1, 1]} : vector<32x384xf32> to vector<16x32xf32>
    %434 = arith.truncf %433 : vector<16x32xf32> to vector<16x32xbf16>
    %cst_126 = arith.constant dense<0.000000e+00> : vector<16x16xf32>
    %435 = tpu.matmul %430, %432, %cst_126 {dimension_numbers = #tpu.dot_dimension_numbers<[1], [1], [0], [0], [0, 0, 1, 0], [], []>} : vector<16x32xbf16>, vector<16x32xbf16>, vector<16x16xf32> -> vector<16x16xf32>
    %cst_127 = arith.constant 0.0883883461 : f32
    %436 = vector.broadcast %cst_127 : f32 to vector<16x16xf32>
    %437 = arith.mulf %435, %436 : vector<16x16xf32>
    %438 = arith.addf %437, %16 : vector<16x16xf32>
    %cst_128 = arith.constant dense<0xFF800000> : vector<16xf32>
    %439 = vector.multi_reduction <maximumf>, %438, %cst_128 [1] : vector<16x16xf32> to vector<16xf32>
    %440 = vector.shape_cast %439 : vector<16xf32> to vector<16x1xf32>
    %441 = vector.broadcast %440 : vector<16x1xf32> to vector<16x16xf32>
    %442 = arith.subf %438, %441 : vector<16x16xf32>
    %443 = math.exp %442 : vector<16x16xf32>
    %cst_129 = arith.constant dense<0.000000e+00> : vector<16xf32>
    %444 = vector.multi_reduction <add>, %443, %cst_129 [1] : vector<16x16xf32> to vector<16xf32>
    %445 = vector.shape_cast %444 : vector<16xf32> to vector<16x1xf32>
    %446 = tpu.reciprocal %445 {approx = true} : vector<16x1xf32> -> vector<16x1xf32>
    %447 = vector.broadcast %446 : vector<16x1xf32> to vector<16x16xf32>
    %448 = arith.mulf %443, %447 : vector<16x16xf32>
    %449 = arith.truncf %448 : vector<16x16xf32> to vector<16x16xbf16>
    %cst_130 = arith.constant dense<0.000000e+00> : vector<16x32xf32>
    %450 = tpu.matmul %449, %434, %cst_130 {dimension_numbers = #tpu.dot_dimension_numbers<[1], [0], [0], [1], [0, 0, 1, 1], [], []>} : vector<16x16xbf16>, vector<16x32xbf16>, vector<16x32xf32> -> vector<16x32xf32>
    %451 = vector.extract_strided_slice %295 {offsets = [16, 96], sizes = [16, 32], strides = [1, 1]} : vector<32x384xf32> to vector<16x32xf32>
    %452 = arith.truncf %451 : vector<16x32xf32> to vector<16x32xbf16>
    %453 = vector.extract_strided_slice %295 {offsets = [16, 224], sizes = [16, 32], strides = [1, 1]} : vector<32x384xf32> to vector<16x32xf32>
    %454 = arith.truncf %453 : vector<16x32xf32> to vector<16x32xbf16>
    %455 = vector.extract_strided_slice %295 {offsets = [16, 352], sizes = [16, 32], strides = [1, 1]} : vector<32x384xf32> to vector<16x32xf32>
    %456 = arith.truncf %455 : vector<16x32xf32> to vector<16x32xbf16>
    %cst_131 = arith.constant dense<0.000000e+00> : vector<16x16xf32>
    %457 = tpu.matmul %452, %454, %cst_131 {dimension_numbers = #tpu.dot_dimension_numbers<[1], [1], [0], [0], [0, 0, 1, 0], [], []>} : vector<16x32xbf16>, vector<16x32xbf16>, vector<16x16xf32> -> vector<16x16xf32>
    %cst_132 = arith.constant 0.0883883461 : f32
    %458 = vector.broadcast %cst_132 : f32 to vector<16x16xf32>
    %459 = arith.mulf %457, %458 : vector<16x16xf32>
    %460 = arith.addf %459, %16 : vector<16x16xf32>
    %cst_133 = arith.constant dense<0xFF800000> : vector<16xf32>
    %461 = vector.multi_reduction <maximumf>, %460, %cst_133 [1] : vector<16x16xf32> to vector<16xf32>
    %462 = vector.shape_cast %461 : vector<16xf32> to vector<16x1xf32>
    %463 = vector.broadcast %462 : vector<16x1xf32> to vector<16x16xf32>
    %464 = arith.subf %460, %463 : vector<16x16xf32>
    %465 = math.exp %464 : vector<16x16xf32>
    %cst_134 = arith.constant dense<0.000000e+00> : vector<16xf32>
    %466 = vector.multi_reduction <add>, %465, %cst_134 [1] : vector<16x16xf32> to vector<16xf32>
    %467 = vector.shape_cast %466 : vector<16xf32> to vector<16x1xf32>
    %468 = tpu.reciprocal %467 {approx = true} : vector<16x1xf32> -> vector<16x1xf32>
    %469 = vector.broadcast %468 : vector<16x1xf32> to vector<16x16xf32>
    %470 = arith.mulf %465, %469 : vector<16x16xf32>
    %471 = arith.truncf %470 : vector<16x16xf32> to vector<16x16xbf16>
    %cst_135 = arith.constant dense<0.000000e+00> : vector<16x32xf32>
    %472 = tpu.matmul %471, %456, %cst_135 {dimension_numbers = #tpu.dot_dimension_numbers<[1], [0], [0], [1], [0, 0, 1, 1], [], []>} : vector<16x16xbf16>, vector<16x32xbf16>, vector<16x32xf32> -> vector<16x32xf32>
    %473 = tpu.concatenate %406, %428, %450, %472 in 1 : vector<16x32xf32>, vector<16x32xf32>, vector<16x32xf32>, vector<16x32xf32> -> vector<16x128xf32>
    %474 = tpu.concatenate %384, %473 in 0 : vector<16x128xf32>, vector<16x128xf32> -> vector<32x128xf32>
    %475 = arith.truncf %474 : vector<32x128xf32> to vector<32x128xbf16>
    %c0_136 = arith.constant 0 : index
    %c0_137 = arith.constant 0 : index
    %476 = vector.load %arg18[%c0_136, %c0_137] : memref<128x128xbf16, #tpu.memory_space<vmem>>, vector<128x128xbf16>
    %cst_138 = arith.constant dense<0.000000e+00> : vector<32x128xf32>
    %477 = tpu.matmul %475, %476, %cst_138 {dimension_numbers = #tpu.dot_dimension_numbers<[1], [0], [0], [1], [0, 0, 1, 1], [], []>} : vector<32x128xbf16>, vector<128x128xbf16>, vector<32x128xf32> -> vector<32x128xf32>
    %478 = arith.addf %268, %477 : vector<32x128xf32>
    %c0_139 = arith.constant 0 : index
    %c0_140 = arith.constant 0 : index
    %479 = vector.load %arg19[%c0_139, %c0_140] : memref<1x128xf32, #tpu.memory_space<vmem>>, vector<1x128xf32>
    %480 = vector.broadcast %479 : vector<1x128xf32> to vector<32x128xf32>
    %481 = arith.addf %478, %480 : vector<32x128xf32>
    %c0_141 = arith.constant 0 : index
    %c0_142 = arith.constant 0 : index
    %482 = vector.load %arg20[%c0_141, %c0_142] : memref<1x128xf32, #tpu.memory_space<vmem>>, vector<1x128xf32>
    %c0_143 = arith.constant 0 : index
    %c0_144 = arith.constant 0 : index
    %483 = vector.load %arg21[%c0_143, %c0_144] : memref<1x128xf32, #tpu.memory_space<vmem>>, vector<1x128xf32>
    %cst_145 = arith.constant dense<0.000000e+00> : vector<32xf32>
    %484 = vector.multi_reduction <add>, %481, %cst_145 [1] : vector<32x128xf32> to vector<32xf32>
    %485 = vector.shape_cast %484 : vector<32xf32> to vector<32x1xf32>
    %cst_146 = arith.constant 1.280000e+02 : f32
    %486 = vector.broadcast %cst_146 : f32 to vector<32x1xf32>
    %487 = arith.divf %485, %486 : vector<32x1xf32>
    %488 = vector.broadcast %487 : vector<32x1xf32> to vector<32x128xf32>
    %489 = arith.subf %481, %488 : vector<32x128xf32>
    %490 = arith.mulf %489, %489 : vector<32x128xf32>
    %cst_147 = arith.constant dense<0.000000e+00> : vector<32xf32>
    %491 = vector.multi_reduction <add>, %490, %cst_147 [1] : vector<32x128xf32> to vector<32xf32>
    %492 = vector.shape_cast %491 : vector<32xf32> to vector<32x1xf32>
    %cst_148 = arith.constant 1.280000e+02 : f32
    %493 = vector.broadcast %cst_148 : f32 to vector<32x1xf32>
    %494 = arith.divf %492, %493 : vector<32x1xf32>
    %495 = vector.broadcast %487 : vector<32x1xf32> to vector<32x128xf32>
    %496 = arith.subf %481, %495 : vector<32x128xf32>
    %cst_149 = arith.constant 9.99999974E-6 : f32
    %497 = vector.broadcast %cst_149 : f32 to vector<32x1xf32>
    %498 = arith.addf %494, %497 : vector<32x1xf32>
    %499 = math.rsqrt %498 : vector<32x1xf32>
    %500 = vector.broadcast %499 : vector<32x1xf32> to vector<32x128xf32>
    %501 = arith.mulf %496, %500 : vector<32x128xf32>
    %502 = vector.broadcast %482 : vector<1x128xf32> to vector<32x128xf32>
    %503 = arith.mulf %501, %502 : vector<32x128xf32>
    %504 = vector.broadcast %483 : vector<1x128xf32> to vector<32x128xf32>
    %505 = arith.addf %503, %504 : vector<32x128xf32>
    %506 = arith.truncf %505 : vector<32x128xf32> to vector<32x128xbf16>
    %c0_150 = arith.constant 0 : index
    %c0_151 = arith.constant 0 : index
    %507 = vector.load %arg22[%c0_150, %c0_151] : memref<128x128xbf16, #tpu.memory_space<vmem>>, vector<128x128xbf16>
    %cst_152 = arith.constant dense<0.000000e+00> : vector<32x128xf32>
    %508 = tpu.matmul %506, %507, %cst_152 {dimension_numbers = #tpu.dot_dimension_numbers<[1], [0], [0], [1], [0, 0, 1, 1], [], []>} : vector<32x128xbf16>, vector<128x128xbf16>, vector<32x128xf32> -> vector<32x128xf32>
    %c0_153 = arith.constant 0 : index
    %c0_154 = arith.constant 0 : index
    %509 = vector.load %arg23[%c0_153, %c0_154] : memref<1x128xf32, #tpu.memory_space<vmem>>, vector<1x128xf32>
    %510 = vector.broadcast %509 : vector<1x128xf32> to vector<32x128xf32>
    %511 = arith.addf %508, %510 : vector<32x128xf32>
    %cst_155 = arith.constant 0.000000e+00 : f32
    %512 = vector.broadcast %cst_155 : f32 to vector<32x128xf32>
    %513 = arith.maximumf %511, %512 : vector<32x128xf32>
    %514 = arith.truncf %513 : vector<32x128xf32> to vector<32x128xbf16>
    %c0_156 = arith.constant 0 : index
    %c0_157 = arith.constant 0 : index
    %515 = vector.load %arg24[%c0_156, %c0_157] : memref<128x128xbf16, #tpu.memory_space<vmem>>, vector<128x128xbf16>
    %cst_158 = arith.constant dense<0.000000e+00> : vector<32x128xf32>
    %516 = tpu.matmul %514, %515, %cst_158 {dimension_numbers = #tpu.dot_dimension_numbers<[1], [0], [0], [1], [0, 0, 1, 1], [], []>} : vector<32x128xbf16>, vector<128x128xbf16>, vector<32x128xf32> -> vector<32x128xf32>
    %517 = arith.addf %481, %516 : vector<32x128xf32>
    %c0_159 = arith.constant 0 : index
    %c0_160 = arith.constant 0 : index
    %518 = vector.load %arg25[%c0_159, %c0_160] : memref<1x128xf32, #tpu.memory_space<vmem>>, vector<1x128xf32>
    %519 = vector.broadcast %518 : vector<1x128xf32> to vector<32x128xf32>
    %520 = arith.addf %517, %519 : vector<32x128xf32>
    %c0_161 = arith.constant 0 : index
    %c0_162 = arith.constant 0 : index
    %521 = vector.load %arg26[%c0_161, %c0_162] : memref<1x128xf32, #tpu.memory_space<vmem>>, vector<1x128xf32>
    %c0_163 = arith.constant 0 : index
    %c0_164 = arith.constant 0 : index
    %522 = vector.load %arg27[%c0_163, %c0_164] : memref<1x128xf32, #tpu.memory_space<vmem>>, vector<1x128xf32>
    %cst_165 = arith.constant dense<0.000000e+00> : vector<32xf32>
    %523 = vector.multi_reduction <add>, %520, %cst_165 [1] : vector<32x128xf32> to vector<32xf32>
    %524 = vector.shape_cast %523 : vector<32xf32> to vector<32x1xf32>
    %cst_166 = arith.constant 1.280000e+02 : f32
    %525 = vector.broadcast %cst_166 : f32 to vector<32x1xf32>
    %526 = arith.divf %524, %525 : vector<32x1xf32>
    %527 = vector.broadcast %526 : vector<32x1xf32> to vector<32x128xf32>
    %528 = arith.subf %520, %527 : vector<32x128xf32>
    %529 = arith.mulf %528, %528 : vector<32x128xf32>
    %cst_167 = arith.constant dense<0.000000e+00> : vector<32xf32>
    %530 = vector.multi_reduction <add>, %529, %cst_167 [1] : vector<32x128xf32> to vector<32xf32>
    %531 = vector.shape_cast %530 : vector<32xf32> to vector<32x1xf32>
    %cst_168 = arith.constant 1.280000e+02 : f32
    %532 = vector.broadcast %cst_168 : f32 to vector<32x1xf32>
    %533 = arith.divf %531, %532 : vector<32x1xf32>
    %534 = vector.broadcast %526 : vector<32x1xf32> to vector<32x128xf32>
    %535 = arith.subf %520, %534 : vector<32x128xf32>
    %cst_169 = arith.constant 9.99999974E-6 : f32
    %536 = vector.broadcast %cst_169 : f32 to vector<32x1xf32>
    %537 = arith.addf %533, %536 : vector<32x1xf32>
    %538 = math.rsqrt %537 : vector<32x1xf32>
    %539 = vector.broadcast %538 : vector<32x1xf32> to vector<32x128xf32>
    %540 = arith.mulf %535, %539 : vector<32x128xf32>
    %541 = vector.broadcast %521 : vector<1x128xf32> to vector<32x128xf32>
    %542 = arith.mulf %540, %541 : vector<32x128xf32>
    %543 = vector.broadcast %522 : vector<1x128xf32> to vector<32x128xf32>
    %544 = arith.addf %542, %543 : vector<32x128xf32>
    %545 = arith.truncf %544 : vector<32x128xf32> to vector<32x128xbf16>
    %c0_170 = arith.constant 0 : index
    %c0_171 = arith.constant 0 : index
    %546 = vector.load %arg28[%c0_170, %c0_171] : memref<128x128xbf16, #tpu.memory_space<vmem>>, vector<128x128xbf16>
    %cst_172 = arith.constant dense<0.000000e+00> : vector<32x128xf32>
    %547 = tpu.matmul %545, %546, %cst_172 {dimension_numbers = #tpu.dot_dimension_numbers<[1], [0], [0], [1], [0, 0, 1, 1], [], []>} : vector<32x128xbf16>, vector<128x128xbf16>, vector<32x128xf32> -> vector<32x128xf32>
    %c0_173 = arith.constant 0 : index
    %c0_174 = arith.constant 0 : index
    %548 = vector.load %arg29[%c0_173, %c0_174] : memref<1x128xf32, #tpu.memory_space<vmem>>, vector<1x128xf32>
    %549 = vector.broadcast %548 : vector<1x128xf32> to vector<32x128xf32>
    %550 = arith.addf %547, %549 : vector<32x128xf32>
    %c0_175 = arith.constant 0 : index
    %c0_176 = arith.constant 0 : index
    %551 = vector.load %arg30[%c0_175, %c0_176] : memref<32x128xf32, #tpu.memory_space<vmem>>, vector<32x128xf32>
    tpu.vector_store %arg30[%c0_175, %c0_176], %550 {strides = array<i32>} : memref<32x128xf32, #tpu.memory_space<vmem>>, vector<32x128xf32>,
    return
  }
  func.func @transform_0(%arg0: i32) -> (i32, i32) {
    %c0_i32 = arith.constant 0 : i32
    %c0_i32_0 = arith.constant 0 : i32
    return %arg0, %c0_i32 : i32, i32
  }
  func.func @transform_1(%arg0: i32) -> (i32, i32) {
    %c0_i32 = arith.constant 0 : i32
    %c0_i32_0 = arith.constant 0 : i32
    %c0_i32_1 = arith.constant 0 : i32
    return %c0_i32, %c0_i32_0 : i32, i32
  }
  func.func @transform_2(%arg0: i32) -> (i32, i32) {
    %c0_i32 = arith.constant 0 : i32
    %c0_i32_0 = arith.constant 0 : i32
    %c0_i32_1 = arith.constant 0 : i32
    return %c0_i32, %c0_i32_0 : i32, i32
  }
  func.func @transform_3(%arg0: i32) -> (i32, i32) {
    %c0_i32 = arith.constant 0 : i32
    %c0_i32_0 = arith.constant 0 : i32
    %c0_i32_1 = arith.constant 0 : i32
    return %c0_i32, %c0_i32_0 : i32, i32
  }
  func.func @transform_4(%arg0: i32) -> (i32, i32) {
    %c0_i32 = arith.constant 0 : i32
    %c0_i32_0 = arith.constant 0 : i32
    %c0_i32_1 = arith.constant 0 : i32
    return %c0_i32, %c0_i32_0 : i32, i32
  }
  func.func @transform_5(%arg0: i32) -> (i32, i32) {
    %c0_i32 = arith.constant 0 : i32
    %c0_i32_0 = arith.constant 0 : i32
    %c0_i32_1 = arith.constant 0 : i32
    return %c0_i32, %c0_i32_0 : i32, i32
  }
  func.func @transform_6(%arg0: i32) -> (i32, i32) {
    %c0_i32 = arith.constant 0 : i32
    %c0_i32_0 = arith.constant 0 : i32
    %c0_i32_1 = arith.constant 0 : i32
    return %c0_i32, %c0_i32_0 : i32, i32
  }
  func.func @transform_7(%arg0: i32) -> (i32, i32) {
    %c0_i32 = arith.constant 0 : i32
    %c0_i32_0 = arith.constant 0 : i32
    %c0_i32_1 = arith.constant 0 : i32
    return %c0_i32, %c0_i32_0 : i32, i32
  }
  func.func @transform_8(%arg0: i32) -> (i32, i32) {
    %c0_i32 = arith.constant 0 : i32
    %c0_i32_0 = arith.constant 0 : i32
    %c0_i32_1 = arith.constant 0 : i32
    return %c0_i32, %c0_i32_0 : i32, i32
  }
  func.func @transform_9(%arg0: i32) -> (i32, i32) {
    %c0_i32 = arith.constant 0 : i32
    %c0_i32_0 = arith.constant 0 : i32
    %c0_i32_1 = arith.constant 0 : i32
    return %c0_i32, %c0_i32_0 : i32, i32
  }
  func.func @transform_10(%arg0: i32) -> (i32, i32) {
    %c0_i32 = arith.constant 0 : i32
    %c0_i32_0 = arith.constant 0 : i32
    %c0_i32_1 = arith.constant 0 : i32
    return %c0_i32, %c0_i32_0 : i32, i32
  }
  func.func @transform_11(%arg0: i32) -> (i32, i32) {
    %c0_i32 = arith.constant 0 : i32
    %c0_i32_0 = arith.constant 0 : i32
    %c0_i32_1 = arith.constant 0 : i32
    return %c0_i32, %c0_i32_0 : i32, i32
  }
  func.func @transform_12(%arg0: i32) -> (i32, i32) {
    %c0_i32 = arith.constant 0 : i32
    %c0_i32_0 = arith.constant 0 : i32
    %c0_i32_1 = arith.constant 0 : i32
    return %c0_i32, %c0_i32_0 : i32, i32
  }
  func.func @transform_13(%arg0: i32) -> (i32, i32) {
    %c0_i32 = arith.constant 0 : i32
    %c0_i32_0 = arith.constant 0 : i32
    %c0_i32_1 = arith.constant 0 : i32
    return %c0_i32, %c0_i32_0 : i32, i32
  }
  func.func @transform_14(%arg0: i32) -> (i32, i32) {
    %c0_i32 = arith.constant 0 : i32
    %c0_i32_0 = arith.constant 0 : i32
    %c0_i32_1 = arith.constant 0 : i32
    return %c0_i32, %c0_i32_0 : i32, i32
  }
  func.func @transform_15(%arg0: i32) -> (i32, i32) {
    %c0_i32 = arith.constant 0 : i32
    %c0_i32_0 = arith.constant 0 : i32
    %c0_i32_1 = arith.constant 0 : i32
    return %c0_i32, %c0_i32_0 : i32, i32
  }
  func.func @transform_16(%arg0: i32) -> (i32, i32) {
    %c0_i32 = arith.constant 0 : i32
    %c0_i32_0 = arith.constant 0 : i32
    %c0_i32_1 = arith.constant 0 : i32
    return %c0_i32, %c0_i32_0 : i32, i32
  }
  func.func @transform_17(%arg0: i32) -> (i32, i32) {
    %c0_i32 = arith.constant 0 : i32
    %c0_i32_0 = arith.constant 0 : i32
    %c0_i32_1 = arith.constant 0 : i32
    return %c0_i32, %c0_i32_0 : i32, i32
  }
  func.func @transform_18(%arg0: i32) -> (i32, i32) {
    %c0_i32 = arith.constant 0 : i32
    %c0_i32_0 = arith.constant 0 : i32
    %c0_i32_1 = arith.constant 0 : i32
    return %c0_i32, %c0_i32_0 : i32, i32
  }
  func.func @transform_19(%arg0: i32) -> (i32, i32) {
    %c0_i32 = arith.constant 0 : i32
    %c0_i32_0 = arith.constant 0 : i32
    %c0_i32_1 = arith.constant 0 : i32
    return %c0_i32, %c0_i32_0 : i32, i32
  }
  func.func @transform_20(%arg0: i32) -> (i32, i32) {
    %c0_i32 = arith.constant 0 : i32
    %c0_i32_0 = arith.constant 0 : i32
    %c0_i32_1 = arith.constant 0 : i32
    return %c0_i32, %c0_i32_0 : i32, i32
  }
  func.func @transform_21(%arg0: i32) -> (i32, i32) {
    %c0_i32 = arith.constant 0 : i32
    %c0_i32_0 = arith.constant 0 : i32
    %c0_i32_1 = arith.constant 0 : i32
    return %c0_i32, %c0_i32_0 : i32, i32
  }
  func.func @transform_22(%arg0: i32) -> (i32, i32) {
    %c0_i32 = arith.constant 0 : i32
    %c0_i32_0 = arith.constant 0 : i32
    %c0_i32_1 = arith.constant 0 : i32
    return %c0_i32, %c0_i32_0 : i32, i32
  }
  func.func @transform_23(%arg0: i32) -> (i32, i32) {
    %c0_i32 = arith.constant 0 : i32
    %c0_i32_0 = arith.constant 0 : i32
    %c0_i32_1 = arith.constant 0 : i32
    return %c0_i32, %c0_i32_0 : i32, i32
  }
  func.func @transform_24(%arg0: i32) -> (i32, i32) {
    %c0_i32 = arith.constant 0 : i32
    %c0_i32_0 = arith.constant 0 : i32
    %c0_i32_1 = arith.constant 0 : i32
    return %c0_i32, %c0_i32_0 : i32, i32
  }
  func.func @transform_25(%arg0: i32) -> (i32, i32) {
    %c0_i32 = arith.constant 0 : i32
    %c0_i32_0 = arith.constant 0 : i32
    %c0_i32_1 = arith.constant 0 : i32
    return %c0_i32, %c0_i32_0 : i32, i32
  }
  func.func @transform_26(%arg0: i32) -> (i32, i32) {
    %c0_i32 = arith.constant 0 : i32
    %c0_i32_0 = arith.constant 0 : i32
    %c0_i32_1 = arith.constant 0 : i32
    return %c0_i32, %c0_i32_0 : i32, i32
  }
  func.func @transform_27(%arg0: i32) -> (i32, i32) {
    %c0_i32 = arith.constant 0 : i32
    %c0_i32_0 = arith.constant 0 : i32
    %c0_i32_1 = arith.constant 0 : i32
    return %c0_i32, %c0_i32_0 : i32, i32
  }
  func.func @transform_28(%arg0: i32) -> (i32, i32) {
    %c0_i32 = arith.constant 0 : i32
    %c0_i32_0 = arith.constant 0 : i32
    %c0_i32_1 = arith.constant 0 : i32
    return %c0_i32, %c0_i32_0 : i32, i32
  }
  func.func @transform_29(%arg0: i32) -> (i32, i32) {
    %c0_i32 = arith.constant 0 : i32
    %c0_i32_0 = arith.constant 0 : i32
    return %arg0, %c0_i32 : i32, i32
  }
}

</mosaic_0001>

<bundles_post_ra>
// kernel: bigram_lm_forward.1
= control target key start
LH: loop header
LB: loop body
LE: loop exit
PB: predicated region body
PF: predicated region fallthrough
CT: control target
= control target key end

     0   :  { %s5894_s6 = smov 1   ;;  %s5895_s10 = smov 2   ;;  %s7045_s0 = inlined_call_operand.smem [shape: u32[30], index: -1, kind: input, shape index: {}] }
   0x1   :  { %s5957_s5 = sld [smem:[%s7045_s0]]   ;;  %s5896_s14 = smov 3  }
   0x2   :  { %s5962_s9 = sld [smem:[%s7045_s0 + %s5894_s6]]   ;;  %s5897_s18 = smov 4  }
   0x3   :  { %s5967_s13 = sld [smem:[%s7045_s0 + %s5895_s10]]   ;;  %s5898_s22 = smov 5  }
   0x4   :  { %s5972_s17 = sld [smem:[%s7045_s0 + %s5896_s14]]   ;;  %s5899_s26 = smov 6  }
   0x5   :  { %s5977_s21 = sld [smem:[%s7045_s0 + %s5897_s18]]   ;;  %s5900_s30 = smov 7  }
   0x6   :  { %s5982_s25 = sld [smem:[%s7045_s0 + %s5898_s22]]   ;;  %s5901_s4 = smov 8  }
   0x7   :  { %7053 = sst [smem:[#allocation35_spill]] %s5957_s5  ;;  %s5902_s10 = smov 9  }
   0x8   :  { %7054 = sst [smem:[#allocation36_spill]] %s5962_s9  ;;  %s5903_s15 = smov 10  }
   0x9   :  { %s5987_s29 = sld [smem:[%s7045_s0 + %s5899_s26]]   ;;  %s5904_s20 = smov 11  }
   0xa   :  { %7055 = sst [smem:[#allocation37_spill]] %s5972_s17  ;;  %s5905_s26 = smov 12  }
   0xb   :  { %7056 = sst [smem:[#allocation38_spill]] %s5977_s21  ;;  %s5906_s1 = smov 13  }
   0xc   :  { %7057 = sst [smem:[#allocation39_spill]] %s5982_s25  ;;  %s5907_s7 = smov 14  }
   0xd   :  { %s5992_s3 = sld [smem:[%s7045_s0 + %s5900_s30]]   ;;  %s5909_s22 = smov 16  }
   0xe   :  { %s5997_s8 = sld [smem:[%s7045_s0 + %s5901_s4]]   ;;  %s5910_s28 = smov 17  }
   0xf   :  { %7058 = sst [smem:[#allocation40_spill]] %s5987_s29 }
  0x10   :  { %s6002_s14 = sld [smem:[%s7045_s0 + %s5902_s10]]  }
  0x11   :  { %s6007_s19 = sld [smem:[%s7045_s0 + %s5903_s15]]   ;;  %s5908_s15 = smov 15  }
  0x12   :  { %s6012_s24 = sld [smem:[%s7045_s0 + %s5904_s20]]  }
  0x13   :  { %7059 = sst [smem:[#allocation41_spill]] %s5992_s3 }
  0x14   :  { %s6017_s30 = sld [smem:[%s7045_s0 + %s5905_s26]]  }
  0x15   :  { %s6022_s6 = sld [smem:[%s7045_s0 + %s5906_s1]]  }
  0x16   :  { %s6027_s12 = sld [smem:[%s7045_s0 + %s5907_s7]]   ;;  %s5911_s7 = smov 18  }
  0x17   :  { %7060 = sst [smem:[#allocation42_spill]] %s6007_s19 }
  0x18   :  { %s6032_s20 = sld [smem:[%s7045_s0 + %s5908_s15]]   ;;  %s5912_s15 = smov 19  }
  0x19   :  { %s6037_s27 = sld [smem:[%s7045_s0 + %s5909_s22]]   ;;  %s5913_s22 = smov 20  }
  0x1a   :  { %s6042_s4 = sld [smem:[%s7045_s0 + %s5910_s28]]   ;;  %s5914_s28 = smov 21  }
  0x1b   :  { %s6047_s19 = sld [smem:[%s7045_s0 + %s5911_s7]]   ;;  %s5915_s7 = smov 22  }
  0x1c   :  { %s6052_s3 = sld [smem:[%s7045_s0 + %s5912_s15]]   ;;  %s5916_s15 = smov 23  }
  0x1d   :  { %s6067_s29 = sld [smem:[%s7045_s0 + %s5915_s7]]   ;;  %s5919_s7 = smov 26  }
  0x1e   :  { %s6072_s21 = sld [smem:[%s7045_s0 + %s5916_s15]]   ;;  %s5920_s15 = smov 27  }
  0x1f   :  { %7061 = sst [smem:[#allocation43_spill]] %s6037_s27 }
  0x20   :  { %7062 = sst [smem:[#allocation44_spill]] %s6042_s4 }
  0x21   :  { %s6057_s27 = sld [smem:[%s7045_s0 + %s5913_s22]]   ;;  %s5917_s22 = smov 24  }
  0x22   :  { %s6062_s4 = sld [smem:[%s7045_s0 + %s5914_s28]]   ;;  %s5918_s28 = smov 25  }
  0x23   :  { %s6077_s17 = sld [smem:[%s7045_s0 + %s5917_s22]]   ;;  %s5921_s22 = smov 28  }
  0x24   :  { %s6082_s25 = sld [smem:[%s7045_s0 + %s5918_s28]]   ;;  %s5922_s28 = smov 29  }
  0x25   :  { %s6087_s9 = sld [smem:[%s7045_s0 + %s5919_s7]]  }
  0x26   :  { %s6092_s5 = sld [smem:[%s7045_s0 + %s5920_s15]]  }
  0x29   :  { %7063 = sst [smem:[#allocation45_spill]] %s6077_s17 }
  0x2a   :  { %7064 = sst [smem:[#allocation46_spill]] %s6082_s25 }
  0x2b   :  { %s6097_s17 = sld [smem:[%s7045_s0 + %s5921_s22]]  }
  0x2c   :  { %s6102_s25 = sld [smem:[%s7045_s0 + %s5922_s28]]  }
  0x2d   :  { %64 = vsyncpa [#allocation3], 0 }
  0x2e   :  { %65 = vsyncpa [#allocation6], 0 }
  0x2f   :  { %66 = vsyncpa [#allocation9], 0 }
  0x30   :  { %67 = vsyncpa [#allocation12], 0 }
  0x31   :  { %68 = vsyncpa [#allocation15], 0 }
  0x32   :  { %69 = vsyncpa [#allocation18], 0 }
  0x33   :  { %70 = vsyncpa [#allocation21], 0 }
  0x34   :  { %71 = vsyncpa [#allocation24], 0 }
  0x35   :  { %72 = vsyncpa [#allocation4], 0  ;;  %s5923_s7 = smov [#allocation5]   ;;  %s5924_s11 = smov [#allocation8]  }
  0x36   :  { %s105_s10 = sshll.u32 %s5923_s7, 4  ;;  %s127_s15 = sshll.u32 %s5924_s11, 4  ;;  %s106_s10 = int_to_ptr.vmem [resolvable:$true] %s105_s10  ;;  %s128_s15 = int_to_ptr.vmem [resolvable:$true] %s127_s15 }
  0x37   :  { %s5546_s0 = scalar_lea.hbm %s5997_s8, 16 }
  0x38   :  { %p5547_p0 = scmp.ne.s32.totalorder %s5997_s8, %s5546_s0  ;;  %p5550_p1 = scmp.lt.u32.totalorder %s5546_s0, %s5997_s8 }
  0x3a   :  { %p5552_p2 = pnand %p5550_p1, %p5547_p0 }
  0x3c   :  { %5555 = shalt.err (!%p5552_p2)
}
  0x3d   :  { %s5556_s16 = scalar_lea.vmem %s106_s10, 16  ;;  %s5560_s18 = scalar_lea.vmem %s106_s10, 32 }
  0x3e   :  { %p5557_p3 = scmp.ne.s32.totalorder %s106_s10, %s5556_s16  ;;  %p5561_p4 = scmp.lt.s32.totalorder %s106_s10, %s106_s10 }
  0x3f   :  { %p5562_p5 = scmp.lt.s32.totalorder %s5560_s18, %s5556_s16 }
  0x41   :  { %p5563_p6 = por %p5562_p5, %p5561_p4 }
  0x43   :  { %p5564_p7 = pnand %p5563_p6, %p5557_p3 }
  0x45   :  { %5567 = shalt.err (!%p5564_p7)
}
  0x46   :  { %108 = dma.hbm_to_vmem [thread:$0]  %s5997_s8, 16, %s106_s10, [#allocation6]  }
  0x47   :  { %s5568_s22 = scalar_lea.hbm %s6012_s24, 16 }
  0x48   :  { %p5569_p8 = scmp.ne.s32.totalorder %s6012_s24, %s5568_s22  ;;  %p5572_p9 = scmp.lt.u32.totalorder %s5568_s22, %s6012_s24 }
  0x4a   :  { %p5574_p10 = pnand %p5572_p9, %p5569_p8 }
  0x4c   :  { %5577 = shalt.err (!%p5574_p10)
}
  0x4d   :  { %s5578_s23 = scalar_lea.vmem %s128_s15, 16  ;;  %s5582_s26 = scalar_lea.vmem %s128_s15, 32 }
  0x4e   :  { %p5579_p11 = scmp.ne.s32.totalorder %s128_s15, %s5578_s23  ;;  %p5583_p12 = scmp.lt.s32.totalorder %s128_s15, %s128_s15 }
  0x4f   :  { %p5584_p13 = scmp.lt.s32.totalorder %s5582_s26, %s5578_s23 }
  0x51   :  { %p5585_p0 = por %p5584_p13, %p5583_p12 }
  0x53   :  { %p5586_p1 = pnand %p5585_p0, %p5579_p11 }
  0x55   :  { %5589 = shalt.err (!%p5586_p1)
}
  0x56   :  { %130 = dma.hbm_to_vmem [thread:$0]  %s6012_s24, 16, %s128_s15, [#allocation9]  }
  0x57   :  { %s5925_s28 = smov [#allocation11]   ;;  %s5926_s1 = smov [#allocation14]  }
  0x58   :  { %s149_s8 = sshll.u32 %s5925_s28, 4  ;;  %s169_s2 = sshll.u32 %s5926_s1, 4  ;;  %s150_s8 = int_to_ptr.vmem [resolvable:$true] %s149_s8  ;;  %s170_s2 = int_to_ptr.vmem [resolvable:$true] %s169_s2 }
  0x59   :  { %s5590_s7 = scalar_lea.hbm %s6022_s6, 16 }
  0x5a   :  { %p5591_p2 = scmp.ne.s32.totalorder %s6022_s6, %s5590_s7  ;;  %p5594_p3 = scmp.lt.u32.totalorder %s5590_s7, %s6022_s6 }
  0x5c   :  { %p5596_p4 = pnand %p5594_p3, %p5591_p2 }
  0x5e   :  { %5599 = shalt.err (!%p5596_p4)
}
  0x5f   :  { %s5600_s10 = scalar_lea.vmem %s150_s8, 16  ;;  %s5604_s11 = scalar_lea.vmem %s150_s8, 32 }
  0x60   :  { %p5601_p5 = scmp.ne.s32.totalorder %s150_s8, %s5600_s10  ;;  %p5605_p6 = scmp.lt.s32.totalorder %s150_s8, %s150_s8 }
  0x61   :  { %p5606_p7 = scmp.lt.s32.totalorder %s5604_s11, %s5600_s10 }
  0x63   :  { %p5607_p8 = por %p5606_p7, %p5605_p6 }
  0x65   :  { %p5608_p9 = pnand %p5607_p8, %p5601_p5 }
  0x67   :  { %5611 = shalt.err (!%p5608_p9)
}
  0x68   :  { %152 = dma.hbm_to_vmem [thread:$0]  %s6022_s6, 16, %s150_s8, [#allocation12]  }
  0x69   :  { %s5612_s24 = scalar_lea.hbm %s6032_s20, 16 }
  0x6a   :  { %p5613_p10 = scmp.ne.s32.totalorder %s6032_s20, %s5612_s24  ;;  %p5616_p11 = scmp.lt.u32.totalorder %s5612_s24, %s6032_s20 }
  0x6c   :  { %p5618_p12 = pnand %p5616_p11, %p5613_p10 }
  0x6e   :  { %5621 = shalt.err (!%p5618_p12)
}
  0x6f   :  { %s5622_s15 = scalar_lea.vmem %s170_s2, 16  ;;  %s5626_s0 = scalar_lea.vmem %s170_s2, 32 }
  0x70   :  { %p5623_p13 = scmp.ne.s32.totalorder %s170_s2, %s5622_s15  ;;  %p5627_p0 = scmp.lt.s32.totalorder %s170_s2, %s170_s2 }
  0x71   :  { %p5628_p1 = scmp.lt.s32.totalorder %s5626_s0, %s5622_s15 }
  0x73   :  { %p5629_p2 = por %p5628_p1, %p5627_p0 }
  0x75   :  { %p5630_p3 = pnand %p5629_p2, %p5623_p13 }
  0x77   :  { %5633 = shalt.err (!%p5630_p3)
}
  0x78   :  { %172 = dma.hbm_to_vmem [thread:$0]  %s6032_s20, 16, %s170_s2, [#allocation15]  }
  0x79   :  { %s5927_s16 = smov [#allocation17]   ;;  %s5634_s18 = scalar_lea.hbm %s6052_s3, 16 }
  0x7a   :  { %s193_s6 = sshll.u32 %s5927_s16, 4  ;;  %p5635_p4 = scmp.ne.s32.totalorder %s6052_s3, %s5634_s18  ;;  %s194_s6 = int_to_ptr.vmem [resolvable:$true] %s193_s6 }
  0x7b   :  { %p5638_p5 = scmp.lt.u32.totalorder %s5634_s18, %s6052_s3 }
  0x7d   :  { %p5640_p6 = pnand %p5638_p5, %p5635_p4 }
  0x7f   :  { %5643 = shalt.err (!%p5640_p6)
}
  0x80   :  { %s5644_s22 = scalar_lea.vmem %s194_s6, 16  ;;  %s5648_s23 = scalar_lea.vmem %s194_s6, 32 }
  0x81   :  { %p5645_p7 = scmp.ne.s32.totalorder %s194_s6, %s5644_s22  ;;  %p5649_p8 = scmp.lt.s32.totalorder %s194_s6, %s194_s6 }
  0x82   :  { %p5650_p9 = scmp.lt.s32.totalorder %s5648_s23, %s5644_s22 }
  0x84   :  { %p5651_p10 = por %p5650_p9, %p5649_p8 }
  0x86   :  { %p5652_p11 = pnand %p5651_p10, %p5645_p7 }
  0x88   :  { %5655 = shalt.err (!%p5652_p11)
}
  0x89   :  { %196 = dma.hbm_to_vmem [thread:$0]  %s6052_s3, 16, %s194_s6, [#allocation18]  }
  0x8a   :  { %s5928_s20 = smov [#allocation20]   ;;  %s5929_s28 = smov [#allocation2]  }
  0x8b   :  { %s212_s26 = sshll.u32 %s5928_s20, 4  ;;  %s82_s8 = sshll.u32 %s5929_s28, 4  ;;  %s213_s26 = int_to_ptr.vmem [resolvable:$true] %s212_s26  ;;  %s83_s8 = int_to_ptr.vmem [resolvable:$true] %s82_s8 }
  0x8c   :  { %s5656_s1 = scalar_lea.hbm %s6062_s4, 1024 }
  0x8d   :  { %p5657_p12 = scmp.ne.s32.totalorder %s6062_s4, %s5656_s1  ;;  %p5660_p13 = scmp.lt.u32.totalorder %s5656_s1, %s6062_s4 }
  0x8f   :  { %p5662_p0 = pnand %p5660_p13, %p5657_p12 }
  0x91   :  { %5665 = shalt.err (!%p5662_p0)
}
  0x92   :  { %s5666_s2 = scalar_lea.vmem %s213_s26, 1024  ;;  %p5671_p2 = scmp.lt.s32.totalorder %s213_s26, %s213_s26 }
  0x93   :  { %p5667_p1 = scmp.ne.s32.totalorder %s213_s26, %s5666_s2  ;;  %p5672_p3 = scmp.lt.s32.totalorder %s5666_s2, %s5666_s2 }
  0x95   :  { %p5673_p4 = por %p5672_p3, %p5671_p2 }
  0x97   :  { %p5674_p5 = pnand %p5673_p4, %p5667_p1 }
  0x99   :  { %5677 = shalt.err (!%p5674_p5)
}
  0x9a   :  { %s5930_s7 = smov 64   ;;  %s5931_s3 = smov 4  }
  0x9b   :  { %218 = dma.hbm_to_vmem [thread:$0]  %s6062_s4, 1024, %s213_s26, [#allocation21], %s5930_s7, %s5930_s7, %s5931_s3  }
  0x9c   :  { %s5678_s10 = scalar_lea.hbm %s5967_s13, 512 }
  0x9d   :  { %p5679_p6 = scmp.ne.s32.totalorder %s5967_s13, %s5678_s10  ;;  %p5682_p7 = scmp.lt.u32.totalorder %s5678_s10, %s5967_s13 }
  0x9f   :  { %p5684_p8 = pnand %p5682_p7, %p5679_p6 }
  0xa1   :  { %5687 = shalt.err (!%p5684_p8)
}
  0xa2   :  { %s5688_s11 = scalar_lea.vmem %s83_s8, 512  ;;  %p5693_p10 = scmp.lt.s32.totalorder %s83_s8, %s83_s8 }
  0xa3   :  { %p5689_p9 = scmp.ne.s32.totalorder %s83_s8, %s5688_s11  ;;  %p5694_p11 = scmp.lt.s32.totalorder %s5688_s11, %s5688_s11 }
  0xa5   :  { %p5695_p12 = por %p5694_p11, %p5693_p10 }
  0xa7   :  { %p5696_p13 = pnand %p5695_p12, %p5689_p9 }
  0xa9   :  { %5699 = shalt.err (!%p5696_p13)
}
  0xaa   :  { %s5932_s24 = smov 128   ;;  %s5933_s15 = smov 8  }
  0xab   :  { %88 = dma.hbm_to_vmem [thread:$0]  %s5967_s13, 512, %s83_s8, [#allocation3], %s5932_s24, %s5932_s24, %s5933_s15  }
  0xac   :  { %s5934_s4 = smov [#allocation7]   ;;  %s5935_s16 = smov [#allocation10]  }
  0xad   :  { %s115_s0 = sshll.u32 %s5934_s4, 4  ;;  %s136_s6 = sshll.u32 %s5935_s16, 4  ;;  %s116_s0 = int_to_ptr.vmem [resolvable:$true] %s115_s0  ;;  %s137_s6 = int_to_ptr.vmem [resolvable:$true] %s136_s6 }
  0xae   :  { %s5700_s18 = scalar_lea.hbm %s6002_s14, 16 }
  0xaf   :  { %p5701_p0 = scmp.ne.s32.totalorder %s6002_s14, %s5700_s18  ;;  %p5704_p1 = scmp.lt.u32.totalorder %s5700_s18, %s6002_s14 }
  0xb1   :  { %p5706_p2 = pnand %p5704_p1, %p5701_p0 }
  0xb3   :  { %5709 = shalt.err (!%p5706_p2)
}
  0xb4   :  { %s5710_s22 = scalar_lea.vmem %s116_s0, 16  ;;  %s5714_s23 = scalar_lea.vmem %s116_s0, 32 }
  0xb5   :  { %p5711_p3 = scmp.ne.s32.totalorder %s116_s0, %s5710_s22  ;;  %p5715_p4 = scmp.lt.s32.totalorder %s116_s0, %s116_s0 }
  0xb6   :  { %p5716_p5 = scmp.lt.s32.totalorder %s5714_s23, %s5710_s22 }
  0xb8   :  { %p5717_p6 = por %p5716_p5, %p5715_p4 }
  0xba   :  { %p5718_p7 = pnand %p5717_p6, %p5711_p3 }
  0xbc   :  { %5721 = shalt.err (!%p5718_p7)
}
  0xbd   :  { %118 = dma.hbm_to_vmem [thread:$0]  %s6002_s14, 16, %s116_s0, [#allocation6]  }
  0xbe   :  { %s5722_s13 = scalar_lea.hbm %s6017_s30, 1024 }
  0xbf   :  { %p5723_p8 = scmp.ne.s32.totalorder %s6017_s30, %s5722_s13  ;;  %p5726_p9 = scmp.lt.u32.totalorder %s5722_s13, %s6017_s30 }
  0xc1   :  { %p5728_p10 = pnand %p5726_p9, %p5723_p8 }
  0xc3   :  { %5731 = shalt.err (!%p5728_p10)
}
  0xc4   :  { %s5732_s20 = scalar_lea.vmem %s137_s6, 1024  ;;  %p5737_p12 = scmp.lt.s32.totalorder %s137_s6, %s137_s6 }
  0xc5   :  { %p5733_p11 = scmp.ne.s32.totalorder %s137_s6, %s5732_s20  ;;  %p5738_p13 = scmp.lt.s32.totalorder %s5732_s20, %s5732_s20 }
  0xc7   :  { %p5739_p0 = por %p5738_p13, %p5737_p12 }
  0xc9   :  { %p5740_p1 = pnand %p5739_p0, %p5733_p11 }
  0xcb   :  { %5743 = shalt.err (!%p5740_p1)
}
  0xcc   :  { %142 = dma.hbm_to_vmem [thread:$0]  %s6017_s30, 1024, %s137_s6, [#allocation9], %s5930_s7, %s5930_s7, %s5931_s3  }
  0xcd   :  { %s5936_s14 = smov [#allocation13]   ;;  %s5937_s28 = smov [#allocation16]  }
  0xce   :  { %s159_s26 = sshll.u32 %s5936_s14, 4  ;;  %s183_s8 = sshll.u32 %s5937_s28, 4  ;;  %s160_s26 = int_to_ptr.vmem [resolvable:$true] %s159_s26  ;;  %s184_s8 = int_to_ptr.vmem [resolvable:$true] %s183_s8 }
  0xcf   :  { %s5744_s1 = scalar_lea.hbm %s6027_s12, 16 }
  0xd0   :  { %p5745_p2 = scmp.ne.s32.totalorder %s6027_s12, %s5744_s1  ;;  %p5748_p3 = scmp.lt.u32.totalorder %s5744_s1, %s6027_s12 }
  0xd2   :  { %p5750_p4 = pnand %p5748_p3, %p5745_p2 }
  0xd4   :  { %5753 = shalt.err (!%p5750_p4)
}
  0xd5   :  { %s5754_s2 = scalar_lea.vmem %s160_s26, 16  ;;  %s5758_s10 = scalar_lea.vmem %s160_s26, 32 }
  0xd6   :  { %p5755_p5 = scmp.ne.s32.totalorder %s160_s26, %s5754_s2  ;;  %p5759_p6 = scmp.lt.s32.totalorder %s160_s26, %s160_s26 }
  0xd7   :  { %p5760_p7 = scmp.lt.s32.totalorder %s5758_s10, %s5754_s2 }
  0xd9   :  { %p5761_p8 = por %p5760_p7, %p5759_p6 }
  0xdb   :  { %p5762_p9 = pnand %p5761_p8, %p5755_p5 }
  0xdd   :  { %5765 = shalt.err (!%p5762_p9)
}
  0xde   :  { %162 = dma.hbm_to_vmem [thread:$0]  %s6027_s12, 16, %s160_s26, [#allocation12]  }
  0xdf   :  { %s5766_s30 = scalar_lea.hbm %s6047_s19, 16 }
  0xe0   :  { %p5767_p10 = scmp.ne.s32.totalorder %s6047_s19, %s5766_s30  ;;  %p5770_p11 = scmp.lt.u32.totalorder %s5766_s30, %s6047_s19 }
  0xe2   :  { %p5772_p12 = pnand %p5770_p11, %p5767_p10 }
  0xe4   :  { %5775 = shalt.err (!%p5772_p12)
}
  0xe5   :  { %s5776_s11 = scalar_lea.vmem %s184_s8, 16  ;;  %s5780_s4 = scalar_lea.vmem %s184_s8, 32 }
  0xe6   :  { %p5777_p13 = scmp.ne.s32.totalorder %s184_s8, %s5776_s11  ;;  %p5781_p0 = scmp.lt.s32.totalorder %s184_s8, %s184_s8 }
  0xe7   :  { %p5782_p1 = scmp.lt.s32.totalorder %s5780_s4, %s5776_s11 }
  0xe9   :  { %p5783_p2 = por %p5782_p1, %p5781_p0 }
  0xeb   :  { %p5784_p3 = pnand %p5783_p2, %p5777_p13 }
  0xed   :  { %5787 = shalt.err (!%p5784_p3)
}
  0xee   :  { %186 = dma.hbm_to_vmem [thread:$0]  %s6047_s19, 16, %s184_s8, [#allocation15]  }
  0xef   :  { %s5938_s12 = smov [#allocation19]   ;;  %s5939_s16 = smov [#allocation22]  }
  0xf0   :  { %s203_s0 = sshll.u32 %s5938_s12, 4  ;;  %s225_s6 = sshll.u32 %s5939_s16, 4  ;;  %s204_s0 = int_to_ptr.vmem [resolvable:$true] %s203_s0  ;;  %s226_s6 = int_to_ptr.vmem [resolvable:$true] %s225_s6 }
  0xf1   :  { %s5788_s18 = scalar_lea.hbm %s6057_s27, 16 }
  0xf2   :  { %p5789_p4 = scmp.ne.s32.totalorder %s6057_s27, %s5788_s18  ;;  %p5792_p5 = scmp.lt.u32.totalorder %s5788_s18, %s6057_s27 }
  0xf4   :  { %p5794_p6 = pnand %p5792_p5, %p5789_p4 }
  0xf6   :  { %5797 = shalt.err (!%p5794_p6)
}
  0xf7   :  { %s5798_s22 = scalar_lea.vmem %s204_s0, 16  ;;  %s5802_s23 = scalar_lea.vmem %s204_s0, 32 }
  0xf8   :  { %p5799_p7 = scmp.ne.s32.totalorder %s204_s0, %s5798_s22  ;;  %p5803_p8 = scmp.lt.s32.totalorder %s204_s0, %s204_s0 }
  0xf9   :  { %p5804_p9 = scmp.lt.s32.totalorder %s5802_s23, %s5798_s22 }
  0xfb   :  { %p5805_p10 = por %p5804_p9, %p5803_p8 }
  0xfd   :  { %p5806_p11 = pnand %p5805_p10, %p5799_p7 }
  0xff   :  { %5809 = shalt.err (!%p5806_p11)
}
 0x100   :  { %206 = dma.hbm_to_vmem [thread:$0]  %s6057_s27, 16, %s204_s0, [#allocation18]  }
 0x101   :  { %s5810_s19 = scalar_lea.hbm %s6067_s29, 16 }
 0x102   :  { %p5811_p12 = scmp.ne.s32.totalorder %s6067_s29, %s5810_s19  ;;  %p5814_p13 = scmp.lt.u32.totalorder %s5810_s19, %s6067_s29 }
 0x104   :  { %p5816_p0 = pnand %p5814_p13, %p5811_p12 }
 0x106   :  { %5819 = shalt.err (!%p5816_p0)
}
 0x107   :  { %s5820_s13 = scalar_lea.vmem %s226_s6, 16  ;;  %s5824_s20 = scalar_lea.vmem %s226_s6, 32 }
 0x108   :  { %p5821_p1 = scmp.ne.s32.totalorder %s226_s6, %s5820_s13  ;;  %p5825_p2 = scmp.lt.s32.totalorder %s226_s6, %s226_s6 }
 0x109   :  { %p5826_p3 = scmp.lt.s32.totalorder %s5824_s20, %s5820_s13 }
 0x10b   :  { %p5827_p4 = por %p5826_p3, %p5825_p2 }
 0x10d   :  { %p5828_p5 = pnand %p5827_p4, %p5821_p1 }
 0x10f   :  { %5831 = shalt.err (!%p5828_p5)
}
 0x110   :  { %228 = dma.hbm_to_vmem [thread:$0]  %s6067_s29, 16, %s226_s6, [#allocation21]  }
 0x111   :  { %s5940_s27 = smov [#allocation23]   ;;  %s5832_s26 = scalar_lea.hbm %s6072_s21, 1024 }
 0x112   :  { %s234_s14 = sshll.u32 %s5940_s27, 4  ;;  %p5833_p6 = scmp.ne.s32.totalorder %s6072_s21, %s5832_s26  ;;  %s235_s14 = int_to_ptr.vmem [resolvable:$true] %s234_s14 }
 0x113   :  { %p5836_p7 = scmp.lt.u32.totalorder %s5832_s26, %s6072_s21 }
 0x115   :  { %p5838_p8 = pnand %p5836_p7, %p5833_p6 }
 0x117   :  { %5841 = shalt.err (!%p5838_p8)
}
 0x118   :  { %s5842_s28 = scalar_lea.vmem %s235_s14, 1024  ;;  %p5847_p10 = scmp.lt.s32.totalorder %s235_s14, %s235_s14 }
 0x119   :  { %p5843_p9 = scmp.ne.s32.totalorder %s235_s14, %s5842_s28  ;;  %p5848_p11 = scmp.lt.s32.totalorder %s5842_s28, %s5842_s28 }
 0x11b   :  { %p5849_p12 = por %p5848_p11, %p5847_p10 }
 0x11d   :  { %p5850_p13 = pnand %p5849_p12, %p5843_p9 }
 0x11f   :  { %5853 = shalt.err (!%p5850_p13)
}
 0x120   :  { %240 = dma.hbm_to_vmem [thread:$0]  %s6072_s21, 1024, %s235_s14, [#allocation24], %s5930_s7, %s5930_s7, %s5931_s3  }
 0x121   :  { %5876 = dma.done.wait [#allocation3], 512  }
 0x122   :  { %5877 = vsyncadd [#allocation3], 4294966784 }
 0x123   :  { %5878 = dma.done.wait [#allocation6], 32  }
 0x124   :  { %5879 = vsyncadd [#allocation6], 4294967264 }
 0x125   :  { %5880 = dma.done.wait [#allocation9], 1040  }
 0x126   :  { %5881 = vsyncadd [#allocation9], 4294966256 }
 0x127   :  { %5882 = dma.done.wait [#allocation12], 32  }
 0x128   :  { %5883 = vsyncadd [#allocation12], 4294967264 }
 0x129   :  { %5884 = dma.done.wait [#allocation15], 32  }
 0x12a   :  { %5885 = vsyncadd [#allocation15], 4294967264 }
 0x12b   :  { %5886 = dma.done.wait [#allocation18], 32  }
 0x12c   :  { %5887 = vsyncadd [#allocation18], 4294967264 }
 0x12d   :  { %5888 = dma.done.wait [#allocation21], 1040  }
 0x12e   :  { %5889 = vsyncadd [#allocation21], 4294966256 }
 0x12f   :  { %5890 = dma.done.wait [#allocation24], 1024  }
 0x130   :  { %5891 = vsyncadd [#allocation24], 4294966272  ;;  %s7065_s29 = sld [smem:[#allocation35_spill]]  ;;  %s7066_s21 = sld [smem:[#allocation36_spill]]  ;;  %v5941_v0 = vmov 0   ;;  %v298_v29 = vlaneseq  ;;  %v5942_v33 = vmov 1.0  }
 0x131   :  { %5196 = vset.pattern.permute.xlu0 %v5941_v0  ;;  %5197 = vset.pattern.permute.xlu1 %v5941_v0  ;;  %s7067_s3 = sld [smem:[#allocation39_spill]]  ;;  %v341_v36 = vld [vmem:[#allocation2 + $0x8] sm:$0xff]  ;;  %v340_v37 = vld [vmem:[#allocation2] sm:$0xff]  ;;  %s7068_s8 = sld [smem:[#allocation37_spill]]  ;;  %vm5944_vm4 = vmmov 0   ;;  %vm768_vm5 = vcmask 261120  }
 0x132   :  { %695 = vmatprep.mubr.bf16.mxu1 %v5941_v0  ;;  %v6196_v30 = vand.u32 127, %v298_v29  ;;  %s7069_s1 = sld [smem:[#allocation38_spill]]  ;;  %vm820_vm8 = vcmask 130048   ;;  %s5946_s2 = smov 96   ;;  %vm1292_vm9 = vcmask 523264   ;;  %vm1295_vm10 = vcmask 785408  }
 0x133   :  { %s5947_s10 = smov 32   ;;  %s7070_s30 = sld [smem:[#allocation40_spill]] }
 0x134   :  { %s7071_s11 = sld [smem:[#allocation41_spill]]  ;;  %s7072_s4 = sld [smem:[#allocation42_spill]] }
 0x135   :  { %s7073_s12 = sld [smem:[#allocation43_spill]]  ;;  %s7074_s0 = sld [smem:[#allocation44_spill]] }
 0x136   :  { %v294_v1 = vld [vmem:[%s7065_s29] sm:$0xff]  ;;  %v296_v2 = vld [vmem:[%s7065_s29 + $0x10] sm:$0xff]  ;;  %v295_v3 = vld [vmem:[%s7065_s29 + $0x8] sm:$0xff]  ;;  %s7076_s16 = sld [smem:[#allocation46_spill]] }
 0x137   :  { %301 = vperm.xlu0 %5196, %v294_v1   ;;  %307 = vperm.xlu1 %5197, %v296_v2   ;;  %v324_v4 = vld [vmem:[%s7066_s21] sm:$0xff]  ;;  %v325_v5 = vld [vmem:[%s7066_s21 + $0x8] sm:$0xff]  ;;  %v297_v6 = vld [vmem:[%s7065_s29 + $0x18] sm:$0xff] }
 0x138   :  { %v5109_v7 = vpack.c.bf16 %v325_v5, %v324_v4  ;;  %v326_v8 = vld [vmem:[%s7066_s21 + $0x10] sm:$0xff]  ;;  %v327_v9 = vld [vmem:[%s7066_s21 + $0x18] sm:$0xff]  ;;  %v328_v11 = vld [vmem:[%s7066_s21 + $0x20] sm:$0xff] }
 0x139   :  { %v5113_v10 = vpack.c.bf16 %v327_v9, %v326_v8  ;;  %v329_v12 = vld [vmem:[%s7066_s21 + $0x28] sm:$0xff]  ;;  %v330_v13 = vld [vmem:[%s7066_s21 + $0x30] sm:$0xff]  ;;  %v331_v14 = vld [vmem:[%s7066_s21 + $0x38] sm:$0xff] }
 0x13a   :  { %5110 = vmatprep.subr.bf16.mxu0 %v5109_v7  ;;  %v5117_v15 = vpack.c.bf16 %v329_v12, %v328_v11  ;;  %v332_v16 = vld [vmem:[%s7066_s21 + $0x40] sm:$0xff]  ;;  %v333_v17 = vld [vmem:[%s7066_s21 + $0x48] sm:$0xff]  ;;  %v5121_v18 = vpack.c.bf16 %v331_v14, %v330_v13  ;;  %v334_v19 = vld [vmem:[%s7066_s21 + $0x50] sm:$0xff] }
 0x13b   :  { %304 = vperm.xlu0 %5196, %v295_v3   ;;  %310 = vperm.xlu1 %5197, %v297_v6   ;;  %v335_v20 = vld [vmem:[%s7066_s21 + $0x58] sm:$0xff]  ;;  %v5125_v21 = vpack.c.bf16 %v333_v17, %v332_v16  ;;  %v336_v22 = vld [vmem:[%s7066_s21 + $0x60] sm:$0xff]  ;;  %v337_v23 = vld [vmem:[%s7066_s21 + $0x68] sm:$0xff] }
 0x13c   :  { %5112 = vmatpush3.bf16.msra.mxu0 %v5109_v7  ;;  %v5129_v24 = vpack.c.bf16 %v335_v20, %v334_v19  ;;  %v338_v25 = vld [vmem:[%s7066_s21 + $0x70] sm:$0xff]  ;;  %v339_v26 = vld [vmem:[%s7066_s21 + $0x78] sm:$0xff]  ;;  %v5133_v27 = vpack.c.bf16 %v337_v23, %v336_v22  ;;  %v5260_v47 = vld [vmem:[%s7067_s3] ss:$12 sps:$4 sm:$0xff]  }
 0x13d   :  { %5114 = vmatprep.subr.bf16.mxu0 %v5113_v10  ;;  %v5137_v28 = vpack.c.bf16 %v339_v26, %v338_v25  ;;  %v5258_v46 = vld [vmem:[%s7067_s3 + $0x4] ss:$12 sps:$4 sm:$0xff]   ;;  %v5261_v48 = vld [vmem:[%s7067_s3 + $0x1c] ss:$12 sps:$4 sm:$0xff]   ;;  %v5264_v62 = vld [vmem:[%s7067_s3 + $0x34] ss:$12 sps:$4 sm:$0xff]  }
 0x13e   :  { %663 = vmatprep.subr.bf16.mxu1 %v5258_v46  ;;  %v5263_v61 = vld [vmem:[%s7067_s3 + $0x18] ss:$12 sps:$4 sm:$0xff]   ;;  %v5266_v63 = vld [vmem:[%s7067_s3 + $0x30] ss:$12 sps:$4 sm:$0xff]   ;;  %v5269_v2 = vld [vmem:[%s7067_s3 + $0x48] ss:$12 sps:$4 sm:$0xff]  }
 0x13f   :  { %664 = vmatpush1.bf16.msra.mxu1 %v5260_v47  ;;  %v5267_v1 = vld [vmem:[%s7067_s3 + $0x4c] ss:$12 sps:$4 sm:$0xff]   ;;  %v5270_v3 = vld [vmem:[%s7067_s3 + $0x64] ss:$12 sps:$4 sm:$0xff]   ;;  %v5273_v5 = vld [vmem:[%s7067_s3 + $0x7c] ss:$12 sps:$4 sm:$0xff]  }
 0x140   :  { %5116 = vmatpush3.bf16.msra.mxu0 %v5113_v10  ;;  %665 = vmatprep.subr.bf16.mxu1 %v5261_v48  ;;  %v5272_v4 = vld [vmem:[%s7067_s3 + $0x60] ss:$12 sps:$4 sm:$0xff]   ;;  %v5275_v6 = vld [vmem:[%s7067_s3 + $0x78] ss:$12 sps:$4 sm:$0xff]   ;;  %v5278_v8 = vld [vmem:[%s7067_s3 + $0x90] ss:$12 sps:$4 sm:$0xff]  }
 0x141   :  { %5118 = vmatprep.subr.bf16.mxu0 %v5117_v15  ;;  %v5276_v7 = vld [vmem:[%s7067_s3 + $0x94] ss:$12 sps:$4 sm:$0xff]   ;;  %v5279_v9 = vld [vmem:[%s7067_s3 + $0xac] ss:$12 sps:$4 sm:$0xff]   ;;  %v5943_v46 = vmov 0.0  }
 0x142   :  { %v5281_v10 = vld [vmem:[%s7067_s3 + $0xa8] ss:$12 sps:$4 sm:$0xff]   ;;  %v5283_v12 = vld [vmem:[%s7067_s3 + $0x20] ss:$12 sps:$4 sm:$0xff]   ;;  %v5284_v13 = vld [vmem:[%s7067_s3 + $0x38] ss:$12 sps:$4 sm:$0xff]  }
 0x143   :  { %666 = vmatpush1.bf16.msra.mxu1 %v5263_v61  ;;  %v5282_v11 = vld [vmem:[%s7067_s3 + $0x8] ss:$12 sps:$4 sm:$0xff]   ;;  %v4372_v26 = vld [vmem:[%s7068_s8] ss:$0 sm:$0xff] }
 0x144   :  { %5120 = vmatpush3.bf16.msra.mxu0 %v5117_v15  ;;  %667 = vmatprep.subr.bf16.mxu1 %v5264_v62 }
 0x145   :  { %5122 = vmatprep.subr.bf16.mxu0 %v5121_v18 }
 0x147   :  { %668 = vmatpush1.bf16.msra.mxu1 %v5266_v63 }
 0x148   :  { %5124 = vmatpush3.bf16.msra.mxu0 %v5121_v18  ;;  %669 = vmatprep.subr.bf16.mxu1 %v5267_v1 }
 0x149   :  { %5126 = vmatprep.subr.bf16.mxu0 %v5125_v21 }
 0x14b   :  { %670 = vmatpush1.bf16.msra.mxu1 %v5269_v2 }
 0x14c   :  { %5128 = vmatpush3.bf16.msra.mxu0 %v5125_v21  ;;  %671 = vmatprep.subr.bf16.mxu1 %v5270_v3 }
 0x14d   :  { %5130 = vmatprep.subr.bf16.mxu0 %v5129_v24 }
 0x14f   :  { %672 = vmatpush1.bf16.msra.mxu1 %v5272_v4 }
 0x150   :  { %5132 = vmatpush3.bf16.msra.mxu0 %v5129_v24  ;;  %673 = vmatprep.subr.bf16.mxu1 %v5273_v5 }
 0x151   :  { %5134 = vmatprep.subr.bf16.mxu0 %v5133_v27 }
 0x153   :  { %674 = vmatpush1.bf16.msra.mxu1 %v5275_v6 }
 0x154   :  { %5136 = vmatpush3.bf16.msra.mxu0 %v5133_v27  ;;  %675 = vmatprep.subr.bf16.mxu1 %v5276_v7 }
 0x155   :  { %5138 = vmatprep.subr.bf16.mxu0 %v5137_v28 }
 0x157   :  { %676 = vmatpush1.bf16.msra.mxu1 %v5278_v8 }
 0x158   :  { %5140 = vmatpush3.bf16.msra.mxu0 %v5137_v28  ;;  %677 = vmatprep.subr.bf16.mxu1 %v5279_v9 }
 0x159   :  { %4737 = vmatprep.subr.bf16.mxu0 %v5282_v11 }
 0x15b   :  { %678 = vmatpush1.bf16.msra.mxu1 %v5281_v10 }
 0x15c   :  { %4757 = vmatprep.subr.bf16.mxu1 %v5943_v46 }
 0x1b6   :  { %v302_v31 = vpop.permute.xlu0 %301  ;;  %v308_v32 = vpop.permute.xlu1 %307 }
 0x1b7   :  { %vm312_vm0 = vcmp.eq.s32.totalorder %v302_v31, %v6196_v30  ;;  %vm314_vm1 = vcmp.eq.s32.totalorder %v308_v32, %v6196_v30  ;;  %v4373_v32 = vld [vmem:[%s7069_s1] ss:$0 sm:$0xff] }
 0x1b8   :  { %4731 = vmatprep.mubr.msk.f32.mxu0 %vm312_vm0, %v5942_v33 }
 0x1ba   :  { %v305_v34 = vpop.permute.xlu0 %304  ;;  %v311_v35 = vpop.permute.xlu1 %310 }
 0x1bb   :  { %vm313_vm2 = vcmp.eq.s32.totalorder %v305_v34, %v6196_v30  ;;  %vm315_vm3 = vcmp.eq.s32.totalorder %v311_v35, %v6196_v30 }
 0x1bc   :  { %4732 = vmatmul.mubr.msk.f32.vlgmr.msra.gmra.mrb[0].mxu0 %vm313_vm2, %v5942_v33 }
 0x1bd   :  { %4734 = vmatprep.mubr.msk.f32.mxu0 %vm314_vm1, %v5942_v33  ;;  %4738 = vmatpush3.bf16.msra.mxu0 %v5282_v11 }
 0x1be   :  { %4739 = vmatprep.subr.bf16.mxu0 %v5283_v12 }
 0x1c0   :  { %4735 = vmatmul.mubr.msk.f32.gmra.mrb[2].mxu0 %vm315_vm3, %v5942_v33 }
 0x1c1   :  { %4740 = vmatpush3.bf16.msra.mxu0 %v5283_v12 }
 0x1c2   :  { %4741 = vmatprep.subr.bf16.mxu0 %v5284_v13 }
 0x1c5   :  { %4742 = vmatpush3.bf16.msra.mxu0 %v5284_v13 }
 0x28f   :  { %v4733_v38 = vpop.f32.mrb[0].mxu0 }
 0x290   :  { %v6202_v39 = vadd.f32 %v4733_v38, %v341_v36  ;;  %v408_v40 = vpop.f32.mrb[1].mxu0  ;;  %v5286_v38 = vld [vmem:[%s7067_s3 + $0x68] ss:$12 sps:$4 sm:$0xff]  }
 0x291   :  { %v6204_v41 = vadd.f32 %v408_v40, %v340_v37  ;;  %v5287_v40 = vld [vmem:[%s7067_s3 + $0x80] ss:$12 sps:$4 sm:$0xff]  }
 0x292   :  { %438 = vadd.xlane.f32.xlu1 %v6202_v39 }
 0x293   :  { %v4736_v42 = vpop.f32.mrb[2].mxu0  ;;  %436 = vadd.xlane.f32.xlu0 %v6204_v41 }
 0x294   :  { %v6208_v43 = vadd.f32 %v4736_v42, %v341_v36  ;;  %v418_v44 = vpop.f32.mrb[3].mxu0  ;;  %v5288_v42 = vld [vmem:[%s7067_s3 + $0x98] ss:$12 sps:$4 sm:$0xff]  }
 0x295   :  { %v6210_v45 = vadd.f32 %v418_v44, %v340_v37  ;;  %v5285_v37 = vld [vmem:[%s7067_s3 + $0x50] ss:$12 sps:$4 sm:$0xff]  }
 0x296   :  { %4743 = vmatprep.subr.bf16.mxu0 %v5285_v37  ;;  %v5289_v44 = vld [vmem:[%s7067_s3 + $0xb0] ss:$12 sps:$4 sm:$0xff]  }
 0x297   :  { %440 = vadd.xlane.f32.xlu1 %v6210_v45  ;;  %4744 = vmatpush3.bf16.msra.mxu0 %v5285_v37 }
 0x298   :  { %4745 = vmatprep.subr.bf16.mxu0 %v5286_v38 }
 0x29b   :  { %4746 = vmatpush3.bf16.msra.mxu0 %v5286_v38 }
 0x29c   :  { %4747 = vmatprep.subr.bf16.mxu0 %v5287_v40 }
 0x29f   :  { %4748 = vmatpush3.bf16.msra.mxu0 %v5287_v40 }
 0x2a0   :  { %4749 = vmatprep.subr.bf16.mxu0 %v5288_v42 }
 0x2a3   :  { %4750 = vmatpush3.bf16.msra.mxu0 %v5288_v42 }
 0x2a4   :  { %4751 = vmatprep.subr.bf16.mxu0 %v5289_v44 }
 0x2a7   :  { %4752 = vmatpush3.bf16.msra.mxu0 %v5289_v44 }
 0x2a8   :  { %4775 = vmatprep.subr.bf16.mxu0 %v5943_v46 }
 0x31f   :  { %v439_v49 = vpop.xlane.xlu1 %438 }
 0x320   :  { %v437_v50 = vpop.xlane.xlu0 %436  ;;  %v446_v51 = vmul.f32 0.0078125, %v439_v49 }
 0x321   :  { %v445_v52 = vmul.f32 0.0078125, %v437_v50 }
 0x322   :  { %v450_v57 = vsub.f32 %v6202_v39, %v446_v51 }
 0x323   :  { %v449_v53 = vsub.f32 %v6204_v41, %v445_v52 }
 0x324   :  { %v441_v54 = vpop.xlane.xlu1 %440  ;;  %v454_v60 = vmul.f32 %v450_v57, %v450_v57 }
 0x325   :  { %v447_v55 = vmul.f32 0.0078125, %v441_v54  ;;  %v453_v56 = vmul.f32 %v449_v53, %v449_v53 }
 0x327   :  { %457 = vadd.xlane.f32.xlu0 %v453_v56  ;;  %v6219_v58 = vsub.f32 %v6210_v45, %v447_v55 }
 0x329   :  { %v455_v59 = vmul.f32 %v6219_v58, %v6219_v58 }
 0x32b   :  { %461 = vadd.xlane.f32.xlu1 %v455_v59  ;;  %459 = vadd.xlane.f32.xlu0 %v454_v60 }
 0x32f   :  { %442 = vadd.xlane.f32.xlu0 %v6208_v43 }
 0x3b4   :  { %v458_v14 = vpop.xlane.xlu0 %457 }
 0x3b5   :  { %v465_v15 = vmul.f32 0.0078125, %v458_v14 }
 0x3b7   :  { %v469_v16 = vadd.f32 1e-05, %v465_v15 }
 0x3b8   :  { %v460_v17 = vpop.xlane.xlu0 %459  ;;  %v462_v47 = vpop.xlane.xlu1 %461 }
 0x3b9   :  { %5378 = vrsqrt.f32 %v469_v16  ;;  %v466_v18 = vmul.f32 0.0078125, %v460_v17  ;;  %v467_v48 = vmul.f32 0.0078125, %v462_v47 }
 0x3bb   :  { %v470_v19 = vadd.f32 1e-05, %v466_v18  ;;  %v471_v49 = vadd.f32 1e-05, %v467_v48  ;;  %v428_v18 = vshrl.u32 %v298_v29, 7 }
 0x3bc   :  { %v443_v20 = vpop.xlane.xlu0 %442 }
 0x3bd   :  { %v448_v21 = vmul.f32 0.0078125, %v443_v20  ;;  %5380 = vrsqrt.f32 %v470_v19  ;;  %v429_v19 = vadd.s32 8, %v428_v18  ;;  %vm430_vm6 = vcmp.ge.s32.totalorder %v428_v18, %v6196_v30 }
 0x3be   :  { %5382 = vrsqrt.f32 %v471_v49  ;;  %v5945_v20 = vmov -1e+09  }
 0x3bf   :  { %v452_v22 = vsub.f32 %v6208_v43, %v448_v21  ;;  %vm431_vm7 = vcmp.ge.s32.totalorder %v429_v19, %v6196_v30  ;;  %v6277_v21 = vsel %vm430_vm6, 0.0, %v5945_v20 }
 0x3c1   :  { %v456_v23 = vmul.f32 %v452_v22, %v452_v22 }
 0x3c3   :  { %v5379_v24 = vpop.eup %5378  ;;  %463 = vadd.xlane.f32.xlu0 %v456_v23 }
 0x3c4   :  { %v477_v25 = vmul.f32 %v5379_v24, %v449_v53 }
 0x3c6   :  { %v487_v31 = vmul.f32 %v4372_v26, %v477_v25  ;;  %v6279_v25 = vsel %vm431_vm7, 0.0, %v5945_v20 }
 0x3c7   :  { %v5381_v27 = vpop.eup %5380 }
 0x3c8   :  { %v478_v28 = vmul.f32 %v5381_v27, %v450_v57  ;;  %v497_v34 = vadd.f32 %v4373_v32, %v487_v31  ;;  %v5383_v53 = vpop.eup %5382 }
 0x3c9   :  { %v479_v54 = vmul.f32 %v5383_v53, %v6219_v58 }
 0x3ca   :  { %v488_v33 = vmul.f32 %v4372_v26, %v478_v28 }
 0x3cb   :  { %v489_v57 = vmul.f32 %v4372_v26, %v479_v54 }
 0x3cc   :  { %v498_v35 = vadd.f32 %v4373_v32, %v488_v33 }
 0x3cd   :  { %v499_v60 = vadd.f32 %v4373_v32, %v489_v57 }
 0x3ce   :  { %v501_v36 = vpack.c.bf16 %v498_v35, %v497_v34 }
 0x3d0   :  { %696 = vmatmul.mubr.bf16.vlgmr.msra.gmra.mrb[0].mxu1 %v501_v36  ;;  %4753 = vmatprep.mubr.bf16.mxu0 %v501_v36 }
 0x3d1   :  { %705 = vmatprep.mubr.bf16.mxu1 %v5941_v0 }
 0x450   :  { %v464_v50 = vpop.xlane.xlu0 %463 }
 0x451   :  { %v468_v51 = vmul.f32 0.0078125, %v464_v50 }
 0x453   :  { %v472_v52 = vadd.f32 1e-05, %v468_v51 }
 0x455   :  { %5384 = vrsqrt.f32 %v472_v52 }
 0x45f   :  { %v5385_v55 = vpop.eup %5384 }
 0x460   :  { %v480_v56 = vmul.f32 %v5385_v55, %v452_v22 }
 0x462   :  { %v490_v59 = vmul.f32 %v4372_v26, %v480_v56 }
 0x464   :  { %v500_v61 = vadd.f32 %v4373_v32, %v490_v59 }
 0x466   :  { %v502_v62 = vpack.c.bf16 %v500_v61, %v499_v60 }
 0x468   :  { %706 = vmatmul.mubr.bf16.gmra.mrb[4].mxu1 %v502_v62  ;;  %4754 = vmatmul.mubr.bf16.vlgmr.msra.gmra.mrb[4].mxu0 %v502_v62 }
 0x469   :  { %4759 = vmatprep.mubr.msk.bf16.mxu1 %vm5944_vm4, %v5943_v46  ;;  %4777 = vmatprep.mubr.msk.bf16.mxu0 %vm5944_vm4, %v5943_v46 }
 0x4a3   :  { %v697_v63 = vpop.f32.mrb[0].mxu1 }
 0x4a4   :  { %v699_v1 = vpop.f32.mrb[1].mxu1 }
 0x4a5   :  { %v701_v2 = vpop.f32.mrb[2].mxu1 }
 0x4a6   :  { %v6256_v58 = vpack.c.bf16 %v701_v2, %v697_v63  ;;  %v703_v3 = vpop.f32.mrb[3].mxu1 }
 0x4a7   :  { %v766_v4 = vpack.c.bf16 %v703_v3, %v699_v1 }
 0x4a9   :  { %v773_v5 = vsel %vm768_vm5, %v766_v4, 0 }
 0x4aa   :  { %4758 = vmatpush3.bf16.xpose.msra.mxu1 %v773_v5 }
 0x4ab   :  { %4763 = vmatprep.subr.bf16.mxu1 %v5943_v46 }
 0x4b1   :  { %4760 = vmatmul.mubr.msk.bf16.vlgmr.msra.gmra.mrb[8].mxu1 %vm768_vm5, %v6256_v58 }
 0x4b2   :  { %4765 = vmatprep.mubr.msk.bf16.mxu1 %vm5944_vm4, %v5943_v46 }
 0x53b   :  { %v707_v6 = vpop.f32.mrb[4].mxu1  ;;  %v4755_v7 = vpop.f32.mrb[4].mxu0 }
 0x53c   :  { %v709_v8 = vpop.f32.mrb[5].mxu1  ;;  %v750_v9 = vpop.f32.mrb[5].mxu0 }
 0x53d   :  { %v711_v10 = vpop.f32.mrb[6].mxu1  ;;  %v4756_v11 = vpop.f32.mrb[6].mxu0 }
 0x53e   :  { %v6264_v12 = vpack.c.bf16 %v711_v10, %v707_v6  ;;  %v6266_v13 = vpack.c.bf16 %v4756_v11, %v4755_v7  ;;  %v713_v14 = vpop.f32.mrb[7].mxu1  ;;  %v753_v15 = vpop.f32.mrb[7].mxu0 }
 0x53f   :  { %v6268_v16 = vpack.c.bf16 %v713_v14, %v709_v8  ;;  %v6270_v17 = vpack.c.bf16 %v753_v15, %v750_v9 }
 0x541   :  { %4764 = vmatpush3.bf16.msra.mxu1 %v6270_v17  ;;  %v1305_v2 = vsel %vm768_vm5, %v6268_v16, 0 }
 0x542   :  { %4769 = vmatprep.subr.bf16.mxu1 %v5943_v46 }
 0x584   :  { %v809_v22 = vpop.f32.mrb[8].mxu1 }
 0x585   :  { %v816_v23 = vmul.f32 0.088388346, %v809_v22  ;;  %v4761_v24 = vpop.f32.mrb[9].mxu1 }
 0x586   :  { %v812_v26 = vpop.f32.mrb[10].mxu1 }
 0x587   :  { %v817_v27 = vmul.f32 0.088388346, %v812_v26  ;;  %v4762_v28 = vpop.f32.mrb[11].mxu1  ;;  %v818_v31 = vadd.f32 %v816_v23, %v6277_v21 }
 0x589   :  { %v821_v29 = vsel %vm820_vm8, %v818_v31, -inf  ;;  %v819_v32 = vadd.f32 %v817_v27, %v6279_v25 }
 0x58a   :  { %822 = vmax.xlane.f32.xlu1 %v821_v29 }
 0x58b   :  { %v824_v30 = vsel %vm820_vm8, %v819_v32, -inf }
 0x58c   :  { %825 = vmax.xlane.f32.xlu0 %v824_v30 }
 0x617   :  { %v823_v33 = vpop.xlane.xlu1 %822 }
 0x618   :  { %v827_v34 = vsub.f32 %v818_v31, %v823_v33 }
 0x619   :  { %v826_v35 = vpop.xlane.xlu0 %825 }
 0x61a   :  { %v829_v36 = vmul.f32 1.442695, %v827_v34  ;;  %v828_v37 = vsub.f32 %v819_v32, %v826_v35 }
 0x61c   :  { %5386 = vpow2.f32 %v829_v36  ;;  %v831_v38 = vmul.f32 1.442695, %v828_v37 }
 0x61e   :  { %5388 = vpow2.f32 %v831_v38 }
 0x626   :  { %v5387_v40 = vpop.eup %5386 }
 0x627   :  { %v833_v42 = vsel %vm820_vm8, %v5387_v40, 0.0 }
 0x628   :  { %v5389_v44 = vpop.eup %5388  ;;  %834 = vadd.xlane.f32.xlu1 %v833_v42 }
 0x629   :  { %v836_v47 = vsel %vm820_vm8, %v5389_v44, 0.0 }
 0x62a   :  { %837 = vadd.xlane.f32.xlu0 %v836_v47 }
 0x639   :  { %892 = vrot.lane.b32.xlu1 %v766_v4, %s5946_s2 }
 0x63d   :  { %1018 = vrot.lane.b32.xlu1 %v766_v4, %s5930_s7 }
 0x640   :  { %889 = vrot.lane.b32.xlu0 %v6256_v58, %s5946_s2 }
 0x641   :  { %1016 = vrot.lane.b32.xlu1 %v6256_v58, %s5930_s7 }
 0x644   :  { %1143 = vrot.lane.b32.xlu0 %v766_v4, %s5947_s10 }
 0x645   :  { %1141 = vrot.lane.b32.xlu1 %v6256_v58, %s5947_s10 }
 0x648   :  { %1423 = vrot.lane.b32.xlu0 %v6268_v16, %s5946_s2 }
 0x649   :  { %1420 = vrot.lane.b32.xlu1 %v6264_v12, %s5946_s2 }
 0x64c   :  { %1549 = vrot.lane.b32.xlu0 %v6268_v16, %s5930_s7 }
 0x64d   :  { %1547 = vrot.lane.b32.xlu1 %v6264_v12, %s5930_s7 }
 0x650   :  { %1674 = vrot.lane.b32.xlu0 %v6268_v16, %s5947_s10 }
 0x651   :  { %1672 = vrot.lane.b32.xlu1 %v6264_v12, %s5947_s10 }
 0x6b5   :  { %v835_v48 = vpop.xlane.xlu1 %834 }
 0x6b6   :  { %5390 = vrcp.f32 %v835_v48 }
 0x6b7   :  { %v838_v49 = vpop.xlane.xlu0 %837 }
 0x6b8   :  { %5392 = vrcp.f32 %v838_v49 }
 0x6b9   :  { %v893_v54 = vpop.permute.xlu1 %892 }
 0x6ba   :  { %v898_v56 = vsel %vm768_vm5, %v893_v54, 0 }
 0x6bb   :  { %v890_v59 = vpop.permute.xlu0 %889 }
 0x6bd   :  { %v1019_v57 = vpop.permute.xlu1 %1018 }
 0x6be   :  { %v1024_v60 = vsel %vm768_vm5, %v1019_v57, 0 }
 0x6bf   :  { %v1144_v61 = vpop.permute.xlu0 %1143 }
 0x6c0   :  { %v5391_v50 = vpop.eup %5390  ;;  %v1149_v63 = vsel %vm768_vm5, %v1144_v61, 0 }
 0x6c1   :  { %v841_v52 = vmul.f32 %v5391_v50, %v5387_v40  ;;  %v1017_v62 = vpop.permute.xlu1 %1016 }
 0x6c2   :  { %v5393_v51 = vpop.eup %5392 }
 0x6c3   :  { %v842_v53 = vmul.f32 %v5393_v51, %v5389_v44  ;;  %v1424_v58 = vpop.permute.xlu0 %1423 }
 0x6c4   :  { %v1429_v3 = vsel %vm768_vm5, %v1424_v58, 0 }
 0x6c5   :  { %v843_v55 = vpack.c.bf16 %v842_v53, %v841_v52  ;;  %v1142_v1 = vpop.permute.xlu1 %1141 }
 0x6c7   :  { %4766 = vmatmul.mubr.msk.bf16.vlgmr.msra.gmra.mrb[12].mxu1 %vm820_vm8, %v843_v55  ;;  %v1550_v4 = vpop.permute.xlu0 %1549 }
 0x6c8   :  { %4770 = vmatpush3.bf16.xpose.msra.mxu1 %v898_v56  ;;  %4771 = vmatprep.mubr.msk.bf16.mxu1 %vm5944_vm4, %v5943_v46  ;;  %v1555_v6 = vsel %vm768_vm5, %v1550_v4, 0 }
 0x6c9   :  { %4781 = vmatprep.subr.bf16.mxu1 %v5943_v46  ;;  %v1421_v5 = vpop.permute.xlu1 %1420 }
 0x6cb   :  { %v1675_v7 = vpop.permute.xlu0 %1674 }
 0x6cc   :  { %v1680_v9 = vsel %vm768_vm5, %v1675_v7, 0 }
 0x6cd   :  { %v1548_v8 = vpop.permute.xlu1 %1547 }
 0x6cf   :  { %4772 = vmatmul.mubr.msk.bf16.vlgmr.msra.gmra.mrb[16].mxu1 %vm768_vm5, %v890_v59 }
 0x6d0   :  { %4782 = vmatpush3.bf16.xpose.msra.mxu1 %v1024_v60  ;;  %4783 = vmatprep.mubr.msk.bf16.mxu1 %vm5944_vm4, %v5943_v46 }
 0x6d1   :  { %4793 = vmatprep.subr.bf16.mxu1 %v5943_v46  ;;  %v1673_v10 = vpop.permute.xlu1 %1672 }
 0x6d7   :  { %4784 = vmatmul.mubr.msk.bf16.vlgmr.msra.gmra.mrb[20].mxu1 %vm768_vm5, %v1017_v62 }
 0x6d8   :  { %4794 = vmatpush3.bf16.xpose.msra.mxu1 %v1149_v63  ;;  %4795 = vmatprep.mubr.msk.bf16.mxu1 %vm5944_vm4, %v5943_v46 }
 0x6d9   :  { %4805 = vmatprep.subr.bf16.mxu1 %v5943_v46 }
 0x6df   :  { %4796 = vmatmul.mubr.msk.bf16.vlgmr.msra.gmra.mrb[24].mxu1 %vm768_vm5, %v1142_v1 }
 0x6e0   :  { %4806 = vmatpush3.bf16.xpose.msra.mxu1 %v1305_v2  ;;  %4807 = vmatprep.mubr.msk.bf16.mxu1 %vm5944_vm4, %v5943_v46 }
 0x6e1   :  { %4817 = vmatprep.subr.bf16.mxu1 %v5943_v46 }
 0x6e7   :  { %4808 = vmatmul.mubr.msk.bf16.vlgmr.msra.gmra.mrb[28].mxu1 %vm768_vm5, %v6264_v12 }
 0x6e8   :  { %4818 = vmatpush3.bf16.xpose.msra.mxu1 %v1429_v3  ;;  %4819 = vmatprep.mubr.msk.bf16.mxu1 %vm5944_vm4, %v5943_v46 }
 0x6e9   :  { %4829 = vmatprep.subr.bf16.mxu1 %v5943_v46 }
 0x6ef   :  { %4820 = vmatmul.mubr.msk.bf16.vlgmr.msra.gmra.mrb[32].mxu1 %vm768_vm5, %v1421_v5 }
 0x6f0   :  { %4830 = vmatpush3.bf16.xpose.msra.mxu1 %v1555_v6  ;;  %4831 = vmatprep.mubr.msk.bf16.mxu1 %vm5944_vm4, %v5943_v46 }
 0x6f1   :  { %4841 = vmatprep.subr.bf16.mxu1 %v5943_v46 }
 0x6f7   :  { %4832 = vmatmul.mubr.msk.bf16.vlgmr.msra.gmra.mrb[36].mxu1 %vm768_vm5, %v1548_v8 }
 0x6f8   :  { %4842 = vmatpush3.bf16.xpose.msra.mxu1 %v1680_v9  ;;  %4843 = vmatprep.mubr.msk.bf16.mxu1 %vm5944_vm4, %v5943_v46 }
 0x6ff   :  { %4844 = vmatmul.mubr.msk.bf16.vlgmr.msra.gmra.mrb[40].mxu1 %vm768_vm5, %v1673_v10 }
 0x79a   :  { %v6345_v11 = vpop.f32.mrb[12].mxu1 }
 0x79b   :  { %v4767_v12 = vpop.f32.mrb[13].mxu1 }
 0x79c   :  { %v6347_v14 = vpop.f32.mrb[14].mxu1 }
 0x79d   :  { %v4768_v15 = vpop.f32.mrb[15].mxu1 }
 0x7a2   :  { %v934_v16 = vpop.f32.mrb[16].mxu1 }
 0x7a3   :  { %v941_v18 = vmul.f32 0.088388346, %v934_v16  ;;  %v4773_v19 = vpop.f32.mrb[17].mxu1 }
 0x7a4   :  { %v937_v20 = vpop.f32.mrb[18].mxu1 }
 0x7a5   :  { %v942_v22 = vmul.f32 0.088388346, %v937_v20  ;;  %v4774_v23 = vpop.f32.mrb[19].mxu1  ;;  %v6350_v24 = vadd.f32 %v941_v18, %v6277_v21 }
 0x7a7   :  { %v945_v26 = vsel %vm820_vm8, %v6350_v24, -inf  ;;  %v6355_v27 = vadd.f32 %v942_v22, %v6279_v25 }
 0x7a8   :  { %946 = vmax.xlane.f32.xlu0 %v945_v26 }
 0x7a9   :  { %v948_v28 = vsel %vm820_vm8, %v6355_v27, -inf }
 0x7aa   :  { %949 = vmax.xlane.f32.xlu1 %v948_v28  ;;  %v1060_v31 = vpop.f32.mrb[20].mxu1 }
 0x7ab   :  { %v1067_v29 = vmul.f32 0.088388346, %v1060_v31  ;;  %v4785_v32 = vpop.f32.mrb[21].mxu1 }
 0x7ac   :  { %v1063_v30 = vpop.f32.mrb[22].mxu1 }
 0x7ad   :  { %v1068_v33 = vmul.f32 0.088388346, %v1063_v30  ;;  %v4786_v34 = vpop.f32.mrb[23].mxu1  ;;  %v6360_v35 = vadd.f32 %v1067_v29, %v6277_v21 }
 0x7af   :  { %v1071_v36 = vsel %vm820_vm8, %v6360_v35, -inf  ;;  %v6365_v37 = vadd.f32 %v1068_v33, %v6279_v25 }
 0x7b0   :  { %1072 = vmax.xlane.f32.xlu0 %v1071_v36 }
 0x7b1   :  { %v1074_v44 = vsel %vm820_vm8, %v6365_v37, -inf }
 0x7b2   :  { %v1185_v38 = vpop.f32.mrb[24].mxu1 }
 0x7b3   :  { %v1192_v40 = vmul.f32 0.088388346, %v1185_v38  ;;  %v4797_v42 = vpop.f32.mrb[25].mxu1 }
 0x7b4   :  { %1075 = vmax.xlane.f32.xlu0 %v1074_v44  ;;  %v1188_v47 = vpop.f32.mrb[26].mxu1 }
 0x7b5   :  { %v1193_v48 = vmul.f32 0.088388346, %v1188_v47  ;;  %v4798_v49 = vpop.f32.mrb[27].mxu1  ;;  %v6370_v50 = vadd.f32 %v1192_v40, %v6277_v21 }
 0x7b7   :  { %v1196_v51 = vsel %vm820_vm8, %v6370_v50, -inf  ;;  %v6375_v52 = vadd.f32 %v1193_v48, %v6279_v25 }
 0x7b8   :  { %1197 = vmax.xlane.f32.xlu1 %v1196_v51 }
 0x7b9   :  { %v1199_v53 = vsel %vm820_vm8, %v6375_v52, -inf }
 0x7ba   :  { %1200 = vmax.xlane.f32.xlu0 %v1199_v53  ;;  %v1341_v54 = vpop.f32.mrb[28].mxu1 }
 0x7bb   :  { %v1348_v55 = vmul.f32 0.088388346, %v1341_v54  ;;  %v4809_v56 = vpop.f32.mrb[29].mxu1 }
 0x7bc   :  { %v1344_v57 = vpop.f32.mrb[30].mxu1 }
 0x7bd   :  { %v1349_v59 = vmul.f32 0.088388346, %v1344_v57  ;;  %v4810_v60 = vpop.f32.mrb[31].mxu1  ;;  %v6380_v61 = vadd.f32 %v1348_v55, %v6277_v21 }
 0x7bf   :  { %v1352_v62 = vsel %vm820_vm8, %v6380_v61, -inf  ;;  %v6385_v63 = vadd.f32 %v1349_v59, %v6279_v25 }
 0x7c0   :  { %1353 = vmax.xlane.f32.xlu1 %v1352_v62 }
 0x7c1   :  { %v1355_v1 = vsel %vm820_vm8, %v6385_v63, -inf }
 0x7c2   :  { %1356 = vmax.xlane.f32.xlu0 %v1355_v1  ;;  %v1465_v2 = vpop.f32.mrb[32].mxu1 }
 0x7c3   :  { %v4821_v58 = vpop.f32.mrb[33].mxu1  ;;  %v1472_v29 = vmul.f32 0.088388346, %v1465_v2 }
 0x7c4   :  { %v1468_v3 = vpop.f32.mrb[34].mxu1 }
 0x7c5   :  { %v1473_v4 = vmul.f32 0.088388346, %v1468_v3  ;;  %v4822_v5 = vpop.f32.mrb[35].mxu1  ;;  %v6407_v30 = vadd.f32 %v1472_v29, %v6277_v21 }
 0x7c7   :  { %v6390_v6 = vadd.f32 %v1473_v4, %v6279_v25  ;;  %v1476_v34 = vsel %vm820_vm8, %v6407_v30, -inf }
 0x7c9   :  { %v1479_v7 = vsel %vm820_vm8, %v6390_v6, -inf }
 0x7ca   :  { %1480 = vmax.xlane.f32.xlu0 %v1479_v7  ;;  %v1591_v8 = vpop.f32.mrb[36].mxu1 }
 0x7cb   :  { %v4833_v9 = vpop.f32.mrb[37].mxu1  ;;  %v1598_v32 = vmul.f32 0.088388346, %v1591_v8 }
 0x7cc   :  { %v1594_v10 = vpop.f32.mrb[38].mxu1 }
 0x7cd   :  { %v1599_v12 = vmul.f32 0.088388346, %v1594_v10  ;;  %v4834_v15 = vpop.f32.mrb[39].mxu1  ;;  %v6412_v36 = vadd.f32 %v1598_v32, %v6277_v21 }
 0x7cf   :  { %v6395_v16 = vadd.f32 %v1599_v12, %v6279_v25  ;;  %v1602_v38 = vsel %vm820_vm8, %v6412_v36, -inf }
 0x7d1   :  { %969 = vrot.lane.b32.xlu1 %v6270_v17, %s5946_s2  ;;  %v1605_v18 = vsel %vm820_vm8, %v6395_v16, -inf }
 0x7d2   :  { %1606 = vmax.xlane.f32.xlu0 %v1605_v18  ;;  %v1716_v19 = vpop.f32.mrb[40].mxu1 }
 0x7d3   :  { %v4845_v20 = vpop.f32.mrb[41].mxu1  ;;  %v1723_v33 = vmul.f32 0.088388346, %v1716_v19 }
 0x7d4   :  { %v1719_v22 = vpop.f32.mrb[42].mxu1 }
 0x7d5   :  { %v1724_v23 = vmul.f32 0.088388346, %v1719_v22  ;;  %v4846_v26 = vpop.f32.mrb[43].mxu1  ;;  %v6417_v40 = vadd.f32 %v1723_v33, %v6277_v21 }
 0x7d7   :  { %v6402_v28 = vadd.f32 %v1724_v23, %v6279_v25  ;;  %v1727_v42 = vsel %vm820_vm8, %v6417_v40, -inf }
 0x7d9   :  { %v1730_v31 = vsel %vm820_vm8, %v6402_v28, -inf }
 0x7da   :  { %1731 = vmax.xlane.f32.xlu0 %v1730_v31 }
 0x7f5   :  { %1477 = vmax.xlane.f32.xlu1 %v1476_v34 }
 0x7f9   :  { %1603 = vmax.xlane.f32.xlu1 %v1602_v38 }
 0x7fd   :  { %1728 = vmax.xlane.f32.xlu1 %v1727_v42 }
 0x835   :  { %v947_v44 = vpop.xlane.xlu0 %946 }
 0x836   :  { %v951_v47 = vsub.f32 %v6350_v24, %v947_v44 }
 0x837   :  { %v950_v48 = vpop.xlane.xlu1 %949 }
 0x838   :  { %v953_v49 = vmul.f32 1.442695, %v951_v47  ;;  %v952_v51 = vsub.f32 %v6355_v27, %v950_v48 }
 0x83a   :  { %5394 = vpow2.f32 %v953_v49  ;;  %v955_v53 = vmul.f32 1.442695, %v952_v51 }
 0x83c   :  { %5396 = vpow2.f32 %v955_v53 }
 0x83d   :  { %v1073_v27 = vpop.xlane.xlu0 %1072 }
 0x83e   :  { %v1077_v1 = vsub.f32 %v6360_v35, %v1073_v27 }
 0x840   :  { %v1079_v3 = vmul.f32 1.442695, %v1077_v1 }
 0x841   :  { %v1076_v62 = vpop.xlane.xlu0 %1075 }
 0x842   :  { %v1078_v2 = vsub.f32 %v6365_v37, %v1076_v62  ;;  %5398 = vpow2.f32 %v1079_v3 }
 0x844   :  { %v6423_v54 = vpop.eup %5394  ;;  %v1081_v5 = vmul.f32 1.442695, %v1078_v2 }
 0x845   :  { %v957_v55 = vsel %vm820_vm8, %v6423_v54, 0.0  ;;  %v1198_v24 = vpop.xlane.xlu1 %1197 }
 0x846   :  { %v6427_v56 = vpop.eup %5396  ;;  %958 = vadd.xlane.f32.xlu1 %v957_v55  ;;  %v1202_v4 = vsub.f32 %v6370_v50, %v1198_v24  ;;  %5400 = vpow2.f32 %v1081_v5 }
 0x847   :  { %v960_v57 = vsel %vm820_vm8, %v6427_v56, 0.0  ;;  %v1201_v58 = vpop.xlane.xlu0 %1200 }
 0x848   :  { %961 = vadd.xlane.f32.xlu0 %v960_v57  ;;  %v1203_v7 = vsub.f32 %v6375_v52, %v1201_v58  ;;  %v1204_v9 = vmul.f32 1.442695, %v1202_v4 }
 0x84a   :  { %v1206_v12 = vmul.f32 1.442695, %v1203_v7  ;;  %5402 = vpow2.f32 %v1204_v9 }
 0x84c   :  { %5404 = vpow2.f32 %v1206_v12  ;;  %v6442_v15 = vpop.eup %5398 }
 0x84d   :  { %v1354_v59 = vpop.xlane.xlu1 %1353  ;;  %v1083_v52 = vsel %vm820_vm8, %v6442_v15, 0.0 }
 0x84e   :  { %v1358_v10 = vsub.f32 %v6380_v61, %v1354_v59 }
 0x84f   :  { %v1357_v8 = vpop.xlane.xlu0 %1356 }
 0x850   :  { %v1360_v35 = vmul.f32 1.442695, %v1358_v10  ;;  %v6444_v50 = vpop.eup %5400 }
 0x851   :  { %v970_v60 = vpop.permute.xlu1 %969  ;;  %v1086_v61 = vsel %vm820_vm8, %v6444_v50, 0.0 }
 0x852   :  { %4776 = vmatpush3.bf16.msra.mxu0 %v970_v60  ;;  %5406 = vpow2.f32 %v1360_v35 }
 0x853   :  { %4787 = vmatprep.subr.bf16.mxu0 %v5943_v46 }
 0x854   :  { %v6448_v18 = vpop.eup %5402 }
 0x855   :  { %v1208_v20 = vsel %vm820_vm8, %v6448_v18, 0.0 }
 0x857   :  { %1219 = vrot.lane.b32.xlu1 %v6270_v17, %s5947_s10  ;;  %v1481_v19 = vpop.xlane.xlu0 %1480 }
 0x858   :  { %v1483_v31 = vsub.f32 %v6390_v6, %v1481_v19 }
 0x85a   :  { %v1486_v42 = vmul.f32 1.442695, %v1483_v31 }
 0x85e   :  { %1094 = vrot.lane.b32.xlu0 %v6270_v17, %s5930_s7  ;;  %v1359_v17 = vsub.f32 %v6385_v63, %v1357_v8  ;;  %v6452_v63 = vpop.eup %5404 }
 0x85f   :  { %v6456_v22 = vpop.eup %5406  ;;  %v1211_v23 = vsel %vm820_vm8, %v6452_v63, 0.0  ;;  %v1607_v29 = vpop.xlane.xlu0 %1606 }
 0x860   :  { %v1362_v37 = vmul.f32 1.442695, %v1359_v17  ;;  %v1364_v33 = vsel %vm820_vm8, %v6456_v22, 0.0  ;;  %v1609_v44 = vsub.f32 %v6395_v16, %v1607_v29 }
 0x862   :  { %5408 = vpow2.f32 %v1362_v37  ;;  %v1612_v6 = vmul.f32 1.442695, %v1609_v44 }
 0x867   :  { %v1732_v49 = vpop.xlane.xlu0 %1731 }
 0x86c   :  { %v6460_v26 = vpop.eup %5408 }
 0x86d   :  { %v1367_v38 = vsel %vm820_vm8, %v6460_v26, 0.0 }
 0x87b   :  { %1084 = vadd.xlane.f32.xlu1 %v1083_v52 }
 0x87d   :  { %1087 = vadd.xlane.f32.xlu0 %v1086_v61 }
 0x87f   :  { %1209 = vadd.xlane.f32.xlu1 %v1208_v20 }
 0x881   :  { %1212 = vadd.xlane.f32.xlu0 %v1211_v23 }
 0x882   :  { %v1478_v32 = vpop.xlane.xlu1 %1477 }
 0x883   :  { %v1482_v34 = vsub.f32 %v6407_v30, %v1478_v32  ;;  %1365 = vadd.xlane.f32.xlu1 %v1364_v33  ;;  %v1734_v30 = vsub.f32 %v6402_v28, %v1732_v49 }
 0x885   :  { %v1484_v47 = vmul.f32 1.442695, %v1482_v34  ;;  %1368 = vadd.xlane.f32.xlu0 %v1367_v38  ;;  %v1737_v24 = vmul.f32 1.442695, %v1734_v30 }
 0x886   :  { %v1604_v48 = vpop.xlane.xlu1 %1603 }
 0x887   :  { %5410 = vpow2.f32 %v1484_v47  ;;  %v1608_v2 = vsub.f32 %v6412_v36, %v1604_v48 }
 0x888   :  { %5412 = vpow2.f32 %v1486_v42 }
 0x889   :  { %5414 = vpow2.f32 %v1612_v6  ;;  %v1610_v3 = vmul.f32 1.442695, %v1608_v2 }
 0x88a   :  { %v1729_v51 = vpop.xlane.xlu1 %1728 }
 0x88b   :  { %v1733_v53 = vsub.f32 %v6417_v40, %v1729_v51 }
 0x88d   :  { %v1735_v55 = vmul.f32 1.442695, %v1733_v53 }
 0x88f   :  { %5416 = vpow2.f32 %v1735_v55 }
 0x890   :  { %5418 = vpow2.f32 %v1737_v24 }
 0x891   :  { %v6471_v57 = vpop.eup %5410  ;;  %5420 = vpow2.f32 %v1610_v3 }
 0x892   :  { %v1488_v16 = vsel %vm820_vm8, %v6471_v57, 0.0  ;;  %v6475_v59 = vpop.eup %5412 }
 0x893   :  { %1489 = vadd.xlane.f32.xlu0 %v1488_v16  ;;  %v1491_v40 = vsel %vm820_vm8, %v6475_v59, 0.0  ;;  %v6481_v60 = vpop.eup %5414 }
 0x894   :  { %1500 = vrot.lane.b32.xlu1 %v6266_v13, %s5946_s2  ;;  %v1617_v28 = vsel %vm820_vm8, %v6481_v60, 0.0 }
 0x897   :  { %1492 = vadd.xlane.f32.xlu0 %v1491_v40 }
 0x899   :  { %v6485_v27 = vpop.eup %5416 }
 0x89a   :  { %v1739_v62 = vsel %vm820_vm8, %v6485_v27, 0.0  ;;  %v6489_v1 = vpop.eup %5418 }
 0x89b   :  { %1618 = vadd.xlane.f32.xlu0 %v1617_v28  ;;  %v1742_v58 = vsel %vm820_vm8, %v6489_v1, 0.0  ;;  %v6494_v4 = vpop.eup %5420 }
 0x89c   :  { %v1614_v5 = vsel %vm820_vm8, %v6494_v4, 0.0 }
 0x89f   :  { %1740 = vadd.xlane.f32.xlu0 %v1739_v62 }
 0x8a3   :  { %1743 = vadd.xlane.f32.xlu0 %v1742_v58 }
 0x8b8   :  { %1615 = vadd.xlane.f32.xlu1 %v1614_v5 }
 0x8b9   :  { %1625 = vrot.lane.b32.xlu0 %v6266_v13, %s5930_s7 }
 0x8c9   :  { %1750 = vrot.lane.b32.xlu1 %v6266_v13, %s5947_s10 }
 0x8d3   :  { %v959_v7 = vpop.xlane.xlu1 %958 }
 0x8d4   :  { %5422 = vrcp.f32 %v959_v7 }
 0x8d5   :  { %v962_v36 = vpop.xlane.xlu0 %961 }
 0x8d6   :  { %5424 = vrcp.f32 %v962_v36 }
 0x8d7   :  { %v1220_v37 = vpop.permute.xlu1 %1219 }
 0x8d9   :  { %v1095_v35 = vpop.permute.xlu0 %1094 }
 0x8de   :  { %v5423_v8 = vpop.eup %5422 }
 0x8df   :  { %v965_v10 = vmul.f32 %v5423_v8, %v6423_v54 }
 0x8e0   :  { %v5425_v9 = vpop.eup %5424 }
 0x8e1   :  { %v966_v12 = vmul.f32 %v5425_v9, %v6427_v56 }
 0x8e3   :  { %v967_v17 = vpack.c.bf16 %v966_v12, %v965_v10 }
 0x8e5   :  { %4778 = vmatmul.mubr.msk.bf16.vlgmr.msra.gmra.mrb[8].mxu0 %vm820_vm8, %v967_v17 }
 0x8e6   :  { %4788 = vmatpush3.bf16.msra.mxu0 %v1095_v35  ;;  %4789 = vmatprep.mubr.msk.bf16.mxu0 %vm5944_vm4, %v5943_v46 }
 0x8e7   :  { %4799 = vmatprep.subr.bf16.mxu0 %v5943_v46 }
 0x908   :  { %v1085_v52 = vpop.xlane.xlu1 %1084 }
 0x909   :  { %5426 = vrcp.f32 %v1085_v52 }
 0x90a   :  { %v1088_v61 = vpop.xlane.xlu0 %1087 }
 0x90b   :  { %5428 = vrcp.f32 %v1088_v61 }
 0x90c   :  { %v1210_v19 = vpop.xlane.xlu1 %1209 }
 0x90e   :  { %v1213_v20 = vpop.xlane.xlu0 %1212 }
 0x90f   :  { %5430 = vrcp.f32 %v1213_v20 }
 0x910   :  { %5432 = vrcp.f32 %v1210_v19  ;;  %v1366_v32 = vpop.xlane.xlu1 %1365 }
 0x912   :  { %v1369_v56 = vpop.xlane.xlu0 %1368 }
 0x913   :  { %v5427_v54 = vpop.eup %5426  ;;  %5434 = vrcp.f32 %v1369_v56 }
 0x914   :  { %v1091_v31 = vmul.f32 %v5427_v54, %v6442_v15  ;;  %5436 = vrcp.f32 %v1366_v32  ;;  %v1501_v53 = vpop.permute.xlu1 %1500 }
 0x915   :  { %v5429_v23 = vpop.eup %5428 }
 0x916   :  { %v1092_v29 = vmul.f32 %v5429_v23, %v6444_v50 }
 0x918   :  { %v1093_v33 = vpack.c.bf16 %v1092_v29, %v1091_v31 }
 0x919   :  { %v5431_v34 = vpop.eup %5430 }
 0x91a   :  { %4790 = vmatmul.mubr.msk.bf16.vlgmr.msra.gmra.mrb[12].mxu0 %vm820_vm8, %v1093_v33  ;;  %v5433_v38 = vpop.eup %5432  ;;  %v1217_v42 = vmul.f32 %v5431_v34, %v6452_v63  ;;  %v5290_v33 = vld [vmem:[%s7070_s30] sm:$0xff]   ;;  %v5291_v34 = vld [vmem:[%s7070_s30 + $0x8] sm:$0xff]  }
 0x91b   :  { %4800 = vmatpush3.bf16.msra.mxu0 %v1220_v37  ;;  %4801 = vmatprep.mubr.msk.bf16.mxu0 %vm5944_vm4, %v5943_v46  ;;  %v1216_v15 = vmul.f32 %v5433_v38, %v6448_v18  ;;  %v5292_v38 = vld [vmem:[%s7070_s30 + $0x10] sm:$0xff]  }
 0x91c   :  { %4811 = vmatprep.subr.bf16.mxu0 %v5943_v46  ;;  %4853 = vmatprep.subr.bf16.mxu1 %v5290_v33 }
 0x91d   :  { %v1218_v50 = vpack.c.bf16 %v1217_v42, %v1216_v15  ;;  %v5435_v47 = vpop.eup %5434  ;;  %4854 = vmatpush3.bf16.msra.mxu1 %v5290_v33 }
 0x91e   :  { %v5437_v48 = vpop.eup %5436  ;;  %v1373_v6 = vmul.f32 %v5435_v47, %v6460_v26  ;;  %4855 = vmatprep.subr.bf16.mxu1 %v5291_v34 }
 0x91f   :  { %v1372_v18 = vmul.f32 %v5437_v48, %v6456_v22 }
 0x920   :  { %v1490_v44 = vpop.xlane.xlu0 %1489 }
 0x921   :  { %5438 = vrcp.f32 %v1490_v44  ;;  %v1374_v51 = vpack.c.bf16 %v1373_v6, %v1372_v18  ;;  %4856 = vmatpush3.bf16.msra.mxu1 %v5291_v34  ;;  %v5294_v6 = vld [vmem:[%s7070_s30 + $0x20] sm:$0xff]   ;;  %v5296_v18 = vld [vmem:[%s7070_s30 + $0x30] sm:$0xff]  }
 0x922   :  { %4802 = vmatmul.mubr.msk.bf16.vlgmr.msra.gmra.mrb[16].mxu0 %vm820_vm8, %v1218_v50  ;;  %4857 = vmatprep.subr.bf16.mxu1 %v5292_v38  ;;  %v5293_v50 = vld [vmem:[%s7070_s30 + $0x18] sm:$0xff]  }
 0x923   :  { %4812 = vmatpush3.bf16.msra.mxu0 %v6266_v13  ;;  %4813 = vmatprep.mubr.msk.bf16.mxu0 %vm5944_vm4, %v5943_v46 }
 0x924   :  { %v1493_v49 = vpop.xlane.xlu0 %1492  ;;  %4823 = vmatprep.subr.bf16.mxu0 %v5943_v46 }
 0x925   :  { %5440 = vrcp.f32 %v1493_v49  ;;  %4858 = vmatpush3.bf16.msra.mxu1 %v5292_v38  ;;  %v5295_v49 = vld [vmem:[%s7070_s30 + $0x28] sm:$0xff]   ;;  %v4422_v38 = vld [vmem:[%s7071_s11] ss:$0 sm:$0xff] }
 0x926   :  { %4859 = vmatprep.subr.bf16.mxu1 %v5293_v50 }
 0x928   :  { %v1619_v63 = vpop.xlane.xlu0 %1618 }
 0x929   :  { %5442 = vrcp.f32 %v1619_v63  ;;  %4860 = vmatpush3.bf16.msra.mxu1 %v5293_v50 }
 0x92a   :  { %4814 = vmatmul.mubr.msk.bf16.vlgmr.msra.gmra.mrb[20].mxu0 %vm820_vm8, %v1374_v51  ;;  %4861 = vmatprep.subr.bf16.mxu1 %v5294_v6  ;;  %v5297_v51 = vld [vmem:[%s7070_s30 + $0x38] sm:$0xff]  }
 0x92b   :  { %4824 = vmatpush3.bf16.msra.mxu0 %v1501_v53  ;;  %4825 = vmatprep.mubr.msk.bf16.mxu0 %vm5944_vm4, %v5943_v46  ;;  %v5439_v30 = vpop.eup %5438 }
 0x92c   :  { %v1741_v13 = vpop.xlane.xlu0 %1740  ;;  %4835 = vmatprep.subr.bf16.mxu0 %v5943_v46  ;;  %v1496_v55 = vmul.f32 %v5439_v30, %v6471_v57 }
 0x92d   :  { %4862 = vmatpush3.bf16.msra.mxu1 %v5294_v6 }
 0x92e   :  { %4863 = vmatprep.subr.bf16.mxu1 %v5295_v49 }
 0x92f   :  { %v5441_v26 = vpop.eup %5440 }
 0x930   :  { %v1497_v24 = vmul.f32 %v5441_v26, %v6475_v59  ;;  %v1744_v16 = vpop.xlane.xlu0 %1743 }
 0x931   :  { %4864 = vmatpush3.bf16.msra.mxu1 %v5295_v49 }
 0x932   :  { %v1498_v22 = vpack.c.bf16 %v1497_v24, %v1496_v55  ;;  %4865 = vmatprep.subr.bf16.mxu1 %v5296_v18 }
 0x933   :  { %v5443_v62 = vpop.eup %5442 }
 0x934   :  { %4826 = vmatmul.mubr.msk.bf16.vlgmr.msra.gmra.mrb[24].mxu0 %vm820_vm8, %v1498_v22  ;;  %v1626_v40 = vpop.permute.xlu0 %1625  ;;  %v1623_v59 = vmul.f32 %v5443_v62, %v6481_v60 }
 0x935   :  { %4836 = vmatpush3.bf16.msra.mxu0 %v1626_v40  ;;  %4837 = vmatprep.mubr.msk.bf16.mxu0 %vm5944_vm4, %v5943_v46 }
 0x936   :  { %4847 = vmatprep.subr.bf16.mxu0 %v5943_v46  ;;  %4866 = vmatpush3.bf16.msra.mxu1 %v5296_v18 }
 0x937   :  { %4867 = vmatprep.subr.bf16.mxu1 %v5297_v51 }
 0x93a   :  { %4868 = vmatpush3.bf16.msra.mxu1 %v5297_v51 }
 0x945   :  { %v1616_v28 = vpop.xlane.xlu1 %1615 }
 0x946   :  { %5444 = vrcp.f32 %v1616_v28 }
 0x947   :  { %5446 = vrcp.f32 %v1744_v16 }
 0x948   :  { %5448 = vrcp.f32 %v1741_v13 }
 0x949   :  { %v1751_v5 = vpop.permute.xlu1 %1750 }
 0x950   :  { %v5445_v57 = vpop.eup %5444 }
 0x951   :  { %v1622_v2 = vmul.f32 %v5445_v57, %v6494_v4  ;;  %v5447_v3 = vpop.eup %5446 }
 0x952   :  { %v5449_v7 = vpop.eup %5448  ;;  %v1748_v36 = vmul.f32 %v5447_v3, %v6489_v1 }
 0x953   :  { %v1624_v58 = vpack.c.bf16 %v1623_v59, %v1622_v2  ;;  %v1747_v8 = vmul.f32 %v5449_v7, %v6485_v27 }
 0x955   :  { %4838 = vmatmul.mubr.msk.bf16.vlgmr.msra.gmra.mrb[28].mxu0 %vm820_vm8, %v1624_v58  ;;  %v1749_v9 = vpack.c.bf16 %v1748_v36, %v1747_v8 }
 0x956   :  { %4848 = vmatpush3.bf16.msra.mxu0 %v1751_v5  ;;  %4849 = vmatprep.mubr.msk.bf16.mxu0 %vm5944_vm4, %v5943_v46 }
 0x95d   :  { %4850 = vmatmul.mubr.msk.bf16.vlgmr.msra.gmra.mrb[32].mxu0 %vm820_vm8, %v1749_v9 }
 0x9b8   :  { %v1009_v60 = vpop.f32.mrb[8].mxu0 }
 0x9b9   :  { %v4779_v10 = vpop.f32.mrb[9].mxu0 }
 0x9ba   :  { %v1012_v4 = vpop.f32.mrb[10].mxu0 }
 0x9bb   :  { %v5198_v12 = vpack.i.bf16 %v1012_v4, %v1009_v60  ;;  %v4780_v17 = vpop.f32.mrb[11].mxu0 }
 0x9bd   :  { %5199 = vrot.lane.b32.xlu1 %v5198_v12, %s5947_s10 }
 0x9ed   :  { %v1134_v35 = vpop.f32.mrb[12].mxu0 }
 0x9ee   :  { %v4791_v37 = vpop.f32.mrb[13].mxu0 }
 0x9ef   :  { %v1137_v52 = vpop.f32.mrb[14].mxu0 }
 0x9f0   :  { %v5203_v61 = vpack.i.bf16 %v1137_v52, %v1134_v35  ;;  %v4792_v19 = vpop.f32.mrb[15].mxu0 }
 0x9f2   :  { %5204 = vrot.lane.b32.xlu1 %v5203_v61, %s5930_s7 }
 0x9f5   :  { %v1259_v27 = vpop.f32.mrb[16].mxu0 }
 0x9f6   :  { %v4803_v1 = vpop.f32.mrb[17].mxu0 }
 0x9f7   :  { %v1262_v20 = vpop.f32.mrb[18].mxu0 }
 0x9f8   :  { %v5208_v54 = vpack.i.bf16 %v1262_v20, %v1259_v27  ;;  %v4804_v56 = vpop.f32.mrb[19].mxu0 }
 0x9fa   :  { %5209 = vrot.lane.b32.xlu1 %v5208_v54, %s5946_s2 }
 0x9fd   :  { %v6544_v23 = vpop.f32.mrb[20].mxu0 }
 0x9fe   :  { %v4815_v31 = vpop.f32.mrb[21].mxu0 }
 0x9ff   :  { %v6546_v29 = vpop.f32.mrb[22].mxu0 }
 0xa00   :  { %v4816_v32 = vpop.f32.mrb[23].mxu0 }
 0xa07   :  { %v1540_v42 = vpop.f32.mrb[24].mxu0 }
 0xa08   :  { %v4827_v15 = vpop.f32.mrb[25].mxu0 }
 0xa09   :  { %v1543_v44 = vpop.f32.mrb[26].mxu0 }
 0xa0a   :  { %v5213_v47 = vpack.i.bf16 %v1543_v44, %v1540_v42  ;;  %v4828_v48 = vpop.f32.mrb[27].mxu0 }
 0xa0c   :  { %5214 = vrot.lane.b32.xlu1 %v5213_v47, %s5947_s10 }
 0xa28   :  { %v1665_v63 = vpop.f32.mrb[28].mxu0 }
 0xa29   :  { %v4839_v53 = vpop.f32.mrb[29].mxu0 }
 0xa2a   :  { %v1668_v13 = vpop.f32.mrb[30].mxu0 }
 0xa2b   :  { %v5218_v30 = vpack.i.bf16 %v1668_v13, %v1665_v63  ;;  %v4840_v26 = vpop.f32.mrb[31].mxu0 }
 0xa2d   :  { %5219 = vrot.lane.b32.xlu0 %v5218_v30, %s5930_s7 }
 0xa2f   :  { %v5200_v28 = vpop.permute.xlu1 %5199 }
 0xa30   :  { %v1790_v55 = vpop.f32.mrb[32].mxu0  ;;  %v5202_v57 = vunpack.i.h.bf16 %v5200_v28  ;;  %v5201_v59 = vunpack.i.l.bf16 %v5200_v28 }
 0xa31   :  { %v4851_v24 = vpop.f32.mrb[33].mxu0 }
 0xa32   :  { %v1793_v16 = vpop.f32.mrb[34].mxu0  ;;  %v1291_v5 = vsel %vm768_vm5, %v6347_v14, %v5202_v57  ;;  %v1290_v7 = vsel %vm768_vm5, %v6345_v11, %v5201_v59  ;;  %v5299_v57 = vld [vmem:[%s7072_s4 + $0x8] sm:$0xff]   ;;  %v5300_v59 = vld [vmem:[%s7072_s4 + $0x10] sm:$0xff]  }
 0xa33   :  { %v5223_v22 = vpack.i.bf16 %v1793_v16, %v1790_v55  ;;  %v4852_v40 = vpop.f32.mrb[35].mxu0 }
 0xa35   :  { %5224 = vrot.lane.b32.xlu1 %v5223_v22, %s5946_s2 }
 0xa64   :  { %v5205_v62 = vpop.permute.xlu1 %5204 }
 0xa65   :  { %v5207_v2 = vunpack.i.h.bf16 %v5205_v62  ;;  %v5206_v58 = vunpack.i.l.bf16 %v5205_v62 }
 0xa67   :  { %v1294_v9 = vsel %vm1292_vm9, %v1291_v5, %v5207_v2  ;;  %v1293_v60 = vsel %vm1292_vm9, %v1290_v7, %v5206_v58  ;;  %v5301_v2 = vld [vmem:[%s7072_s4 + $0x18] sm:$0xff]   ;;  %v5302_v58 = vld [vmem:[%s7072_s4 + $0x20] sm:$0xff]   ;;  %v5304_v5 = vld [vmem:[%s7072_s4 + $0x30] sm:$0xff]  }
 0xa68   :  { %v5305_v7 = vld [vmem:[%s7072_s4 + $0x38] sm:$0xff]  }
 0xa6c   :  { %v5210_v3 = vpop.permute.xlu1 %5209 }
 0xa6d   :  { %v5212_v36 = vunpack.i.h.bf16 %v5210_v3  ;;  %v5211_v8 = vunpack.i.l.bf16 %v5210_v3  ;;  %v5303_v3 = vld [vmem:[%s7072_s4 + $0x28] sm:$0xff]  }
 0xa6f   :  { %v1296_v10 = vsel %vm1295_vm10, %v1293_v60, %v5211_v8  ;;  %v1297_v4 = vsel %vm1295_vm10, %v1294_v9, %v5212_v36  ;;  %v5306_v36 = vld [vmem:[#allocation10] sm:$0xff]   ;;  %v5307_v8 = vld [vmem:[#allocation10 + $0x8] sm:$0xff]   ;;  %v5308_v9 = vld [vmem:[#allocation10 + $0x10] sm:$0xff]  }
 0xa70   :  { %v1827_v12 = vpack.c.bf16 %v1297_v4, %v1296_v10  ;;  %4893 = vmatprep.subr.bf16.mxu1 %v5306_v36  ;;  %v5309_v60 = vld [vmem:[#allocation10 + $0x18] sm:$0xff]   ;;  %v5310_v10 = vld [vmem:[#allocation10 + $0x20] sm:$0xff]   ;;  %v5311_v4 = vld [vmem:[#allocation10 + $0x28] sm:$0xff]  }
 0xa72   :  { %4869 = vmatprep.mubr.bf16.mxu1 %v1827_v12 }
 0xa7e   :  { %v5215_v17 = vpop.permute.xlu1 %5214 }
 0xa7f   :  { %v5217_v37 = vunpack.i.h.bf16 %v5215_v17  ;;  %v5216_v14 = vunpack.i.l.bf16 %v5215_v17 }
 0xa81   :  { %v1822_v19 = vsel %vm768_vm5, %v6546_v29, %v5217_v37  ;;  %v1821_v27 = vsel %vm768_vm5, %v6544_v23, %v5216_v14 }
 0xa9f   :  { %v5220_v35 = vpop.permute.xlu0 %5219 }
 0xaa0   :  { %v5222_v52 = vunpack.i.h.bf16 %v5220_v35  ;;  %v5221_v61 = vunpack.i.l.bf16 %v5220_v35 }
 0xaa2   :  { %v1824_v54 = vsel %vm1292_vm9, %v1822_v19, %v5222_v52  ;;  %v1823_v56 = vsel %vm1292_vm9, %v1821_v27, %v5221_v61 }
 0xaa7   :  { %v5225_v11 = vpop.permute.xlu1 %5224 }
 0xaa8   :  { %v5227_v1 = vunpack.i.h.bf16 %v5225_v11  ;;  %v5226_v20 = vunpack.i.l.bf16 %v5225_v11 }
 0xaaa   :  { %v1826_v31 = vsel %vm1295_vm10, %v1824_v54, %v5227_v1  ;;  %v1825_v32 = vsel %vm1295_vm10, %v1823_v56, %v5226_v20  ;;  %v4423_v56 = vld [vmem:[#allocation5] ss:$0 sm:$0xff] }
 0xaab   :  { %v1828_v33 = vpack.c.bf16 %v1826_v31, %v1825_v32 }
 0xaad   :  { %4870 = vmatmul.mubr.bf16.vlgmr.msra.gmra.mrb[44].mxu1 %v1828_v33 }
 0xaae   :  { %4894 = vmatpush3.bf16.msra.mxu1 %v5306_v36  ;;  %v4442_v36 = vld [vmem:[#allocation11] ss:$0 sm:$0xff] }
 0xaaf   :  { %4895 = vmatprep.subr.bf16.mxu1 %v5307_v8 }
 0xab2   :  { %4896 = vmatpush3.bf16.msra.mxu1 %v5307_v8 }
 0xab3   :  { %4897 = vmatprep.subr.bf16.mxu1 %v5308_v9 }
 0xab6   :  { %4898 = vmatpush3.bf16.msra.mxu1 %v5308_v9 }
 0xab7   :  { %4899 = vmatprep.subr.bf16.mxu1 %v5309_v60 }
 0xaba   :  { %4900 = vmatpush3.bf16.msra.mxu1 %v5309_v60 }
 0xabb   :  { %4901 = vmatprep.subr.bf16.mxu1 %v5310_v10 }
 0xabe   :  { %4902 = vmatpush3.bf16.msra.mxu1 %v5310_v10 }
 0xabf   :  { %4903 = vmatprep.subr.bf16.mxu1 %v5311_v4 }
 0xac2   :  { %4904 = vmatpush3.bf16.msra.mxu1 %v5311_v4 }
 0xb80   :  { %v4871_v34 = vpop.f32.mrb[44].mxu1 }
 0xb81   :  { %v1927_v42 = vpop.f32.mrb[45].mxu1  ;;  %v1944_v44 = vadd.f32 %v4871_v34, %v6210_v45  ;;  %v5298_v45 = vld [vmem:[%s7072_s4] sm:$0xff]  }
 0xb82   :  { %v1942_v29 = vadd.f32 %v1927_v42, %v6204_v41  ;;  %v4872_v15 = vpop.f32.mrb[46].mxu1  ;;  %4873 = vmatprep.subr.bf16.mxu0 %v5298_v45  ;;  %v4424_v42 = vld [vmem:[#allocation7] ss:$0 sm:$0xff] }
 0xb83   :  { %v1930_v23 = vpop.f32.mrb[47].mxu1  ;;  %v6584_v6 = vadd.f32 %v4422_v38, %v1944_v44  ;;  %v1945_v49 = vadd.f32 %v4872_v15, %v6208_v43  ;;  %4874 = vmatpush3.bf16.msra.mxu0 %v5298_v45 }
 0xb84   :  { %v6578_v50 = vadd.f32 %v4422_v38, %v1942_v29  ;;  %v1943_v47 = vadd.f32 %v1930_v23, %v6202_v39  ;;  %4875 = vmatprep.subr.bf16.mxu0 %v5299_v57 }
 0xb85   :  { %v6589_v41 = vadd.f32 %v4422_v38, %v1945_v49 }
 0xb86   :  { %v6581_v48 = vadd.f32 %v4422_v38, %v1943_v47  ;;  %1959 = vadd.xlane.f32.xlu0 %v6578_v50 }
 0xb87   :  { %4876 = vmatpush3.bf16.msra.mxu0 %v5299_v57 }
 0xb88   :  { %1961 = vadd.xlane.f32.xlu1 %v6581_v48  ;;  %4877 = vmatprep.subr.bf16.mxu0 %v5300_v59 }
 0xb8a   :  { %1963 = vadd.xlane.f32.xlu0 %v6584_v6 }
 0xb8b   :  { %4878 = vmatpush3.bf16.msra.mxu0 %v5300_v59 }
 0xb8c   :  { %4879 = vmatprep.subr.bf16.mxu0 %v5301_v2 }
 0xb8e   :  { %1965 = vadd.xlane.f32.xlu0 %v6589_v41 }
 0xb8f   :  { %4880 = vmatpush3.bf16.msra.mxu0 %v5301_v2 }
 0xb90   :  { %4881 = vmatprep.subr.bf16.mxu0 %v5302_v58 }
 0xb93   :  { %4882 = vmatpush3.bf16.msra.mxu0 %v5302_v58 }
 0xb94   :  { %4883 = vmatprep.subr.bf16.mxu0 %v5303_v3 }
 0xb97   :  { %4884 = vmatpush3.bf16.msra.mxu0 %v5303_v3 }
 0xb98   :  { %4885 = vmatprep.subr.bf16.mxu0 %v5304_v5 }
 0xb9b   :  { %4886 = vmatpush3.bf16.msra.mxu0 %v5304_v5 }
 0xb9c   :  { %4887 = vmatprep.subr.bf16.mxu0 %v5305_v7 }
 0xb9f   :  { %4888 = vmatpush3.bf16.msra.mxu0 %v5305_v7 }
 0xc13   :  { %v1960_v39 = vpop.xlane.xlu0 %1959 }
 0xc14   :  { %v1967_v18 = vmul.f32 0.0078125, %v1960_v39 }
 0xc15   :  { %v1962_v63 = vpop.xlane.xlu1 %1961 }
 0xc16   :  { %v6594_v51 = vsub.f32 %v6578_v50, %v1967_v18  ;;  %v1968_v53 = vmul.f32 0.0078125, %v1962_v63 }
 0xc17   :  { %v1964_v43 = vpop.xlane.xlu0 %1963 }
 0xc18   :  { %v6597_v13 = vsub.f32 %v6581_v48, %v1968_v53  ;;  %v1969_v30 = vmul.f32 0.0078125, %v1964_v43  ;;  %v1975_v26 = vmul.f32 %v6594_v51, %v6594_v51  ;;  %v5312_v43 = vld [vmem:[#allocation10 + $0x30] sm:$0xff]  }
 0xc19   :  { %4905 = vmatprep.subr.bf16.mxu1 %v5312_v43 }
 0xc1a   :  { %v6602_v55 = vsub.f32 %v6584_v6, %v1969_v30  ;;  %1979 = vadd.xlane.f32.xlu1 %v1975_v26  ;;  %v1976_v24 = vmul.f32 %v6597_v13, %v6597_v13  ;;  %4906 = vmatpush3.bf16.msra.mxu1 %v5312_v43  ;;  %v4425_v30 = vld [vmem:[#allocation8] ss:$0 sm:$0xff] }
 0xc1b   :  { %v1966_v16 = vpop.xlane.xlu0 %1965 }
 0xc1c   :  { %v1970_v22 = vmul.f32 0.0078125, %v1966_v16  ;;  %1981 = vadd.xlane.f32.xlu0 %v1976_v24  ;;  %v1977_v40 = vmul.f32 %v6602_v55, %v6602_v55 }
 0xc1e   :  { %v6609_v28 = vsub.f32 %v6589_v41, %v1970_v22  ;;  %1983 = vadd.xlane.f32.xlu1 %v1977_v40 }
 0xc20   :  { %v1978_v62 = vmul.f32 %v6609_v28, %v6609_v28 }
 0xc22   :  { %1985 = vadd.xlane.f32.xlu0 %v1978_v62 }
 0xca7   :  { %v1980_v12 = vpop.xlane.xlu1 %1979 }
 0xca8   :  { %v1987_v17 = vmul.f32 0.0078125, %v1980_v12 }
 0xca9   :  { %v1982_v35 = vpop.xlane.xlu0 %1981 }
 0xcaa   :  { %v1991_v37 = vadd.f32 1e-05, %v1987_v17  ;;  %v1988_v14 = vmul.f32 0.0078125, %v1982_v35 }
 0xcab   :  { %v1984_v52 = vpop.xlane.xlu1 %1983 }
 0xcac   :  { %5450 = vrsqrt.f32 %v1991_v37  ;;  %v1992_v61 = vadd.f32 1e-05, %v1988_v14  ;;  %v1989_v11 = vmul.f32 0.0078125, %v1984_v52 }
 0xcae   :  { %5452 = vrsqrt.f32 %v1992_v61  ;;  %v1993_v19 = vadd.f32 1e-05, %v1989_v11  ;;  %v5319_v61 = vld [vmem:[%s7073_s12 + $0x1c] ss:$12 sps:$4 sm:$0xff]  }
 0xcaf   :  { %v1986_v27 = vpop.xlane.xlu0 %1985 }
 0xcb0   :  { %5454 = vrsqrt.f32 %v1993_v19  ;;  %v1990_v1 = vmul.f32 0.0078125, %v1986_v27 }
 0xcb2   :  { %v1994_v20 = vadd.f32 1e-05, %v1990_v1 }
 0xcb4   :  { %5456 = vrsqrt.f32 %v1994_v20 }
 0xcb6   :  { %v5451_v54 = vpop.eup %5450 }
 0xcb7   :  { %v1999_v31 = vmul.f32 %v5451_v54, %v6594_v51 }
 0xcb8   :  { %v5453_v32 = vpop.eup %5452 }
 0xcb9   :  { %v2000_v33 = vmul.f32 %v5453_v32, %v6597_v13  ;;  %v2009_v34 = vmul.f32 %v4423_v56, %v1999_v31  ;;  %v5313_v13 = vld [vmem:[#allocation10 + $0x38] sm:$0xff]  }
 0xcba   :  { %v5455_v38 = vpop.eup %5454  ;;  %4907 = vmatprep.subr.bf16.mxu1 %v5313_v13  ;;  %v5322_v31 = vld [vmem:[%s7073_s12 + $0x34] ss:$12 sps:$4 sm:$0xff]   ;;  %v5320_v32 = vld [vmem:[%s7073_s12 + $0x30] ss:$12 sps:$4 sm:$0xff]  }
 0xcbb   :  { %v2001_v29 = vmul.f32 %v5455_v38, %v6602_v55  ;;  %v2010_v15 = vmul.f32 %v4423_v56, %v2000_v33  ;;  %v2019_v23 = vadd.f32 %v4424_v42, %v2009_v34  ;;  %4908 = vmatpush3.bf16.msra.mxu1 %v5313_v13  ;;  %v5325_v33 = vld [vmem:[%s7073_s12 + $0x4c] ss:$12 sps:$4 sm:$0xff]   ;;  %v5323_v34 = vld [vmem:[%s7073_s12 + $0x48] ss:$12 sps:$4 sm:$0xff]   ;;  %v5328_v38 = vld [vmem:[%s7073_s12 + $0x64] ss:$12 sps:$4 sm:$0xff]  }
 0xcbd   :  { %v2020_v44 = vadd.f32 %v4424_v42, %v2010_v15  ;;  %v2011_v39 = vmul.f32 %v4423_v56, %v2001_v29  ;;  %v5331_v29 = vld [vmem:[%s7073_s12 + $0x7c] ss:$12 sps:$4 sm:$0xff]   ;;  %v5329_v15 = vld [vmem:[%s7073_s12 + $0x78] ss:$12 sps:$4 sm:$0xff]  }
 0xcbe   :  { %v5457_v47 = vpop.eup %5456 }
 0xcbf   :  { %v2002_v49 = vmul.f32 %v5457_v47, %v6609_v28  ;;  %v2023_v45 = vpack.c.bf16 %v2020_v44, %v2019_v23  ;;  %v2021_v63 = vadd.f32 %v4424_v42, %v2011_v39  ;;  %v5334_v23 = vld [vmem:[%s7073_s12 + $0x94] ss:$12 sps:$4 sm:$0xff]   ;;  %v5332_v44 = vld [vmem:[%s7073_s12 + $0x90] ss:$12 sps:$4 sm:$0xff]   ;;  %v5337_v47 = vld [vmem:[%s7073_s12 + $0xac] ss:$12 sps:$4 sm:$0xff]  }
 0xcc0   :  { %v5339_v39 = vld [vmem:[%s7073_s12 + $0x20] ss:$12 sps:$4 sm:$0xff]  }
 0xcc1   :  { %4889 = vmatprep.mubr.bf16.mxu0 %v2023_v45  ;;  %v2012_v18 = vmul.f32 %v4423_v56, %v2002_v49  ;;  %v5335_v49 = vld [vmem:[%s7073_s12 + $0xa8] ss:$12 sps:$4 sm:$0xff]  }
 0xcc2   :  { %v5338_v45 = vld [vmem:[%s7073_s12 + $0x8] ss:$12 sps:$4 sm:$0xff]  }
 0xcc3   :  { %v2022_v51 = vadd.f32 %v4424_v42, %v2012_v18  ;;  %v5326_v42 = vld [vmem:[%s7073_s12 + $0x60] ss:$12 sps:$4 sm:$0xff]   ;;  %4913 = vmatprep.subr.bf16.mxu1 %v5338_v45 }
 0xcc5   :  { %v2024_v53 = vpack.c.bf16 %v2022_v51, %v2021_v63 }
 0xcc7   :  { %4890 = vmatmul.mubr.bf16.vlgmr.msra.gmra.mrb[36].mxu0 %v2024_v53 }
 0xcc8   :  { %2539 = vmatprep.mubr.bf16.mxu0 %v5941_v0 }
 0xd9a   :  { %v4891_v26 = vpop.f32.mrb[36].mxu0 }
 0xd9b   :  { %v2139_v55 = vadd.f32 %v4891_v26, %v4425_v30  ;;  %v2130_v24 = vpop.f32.mrb[37].mxu0 }
 0xd9c   :  { %v2131_v16 = vadd.f32 %v4425_v30, %v2130_v24  ;;  %v4892_v22 = vpop.f32.mrb[38].mxu0 }
 0xd9d   :  { %v2142_v40 = vadd.f32 %v4892_v22, %v4425_v30  ;;  %v2133_v28 = vpop.f32.mrb[39].mxu0  ;;  %v2147_v57 = vmax.f32 %v2139_v55, 0.0 }
 0xd9e   :  { %v2134_v62 = vadd.f32 %v4425_v30, %v2133_v28  ;;  %v2145_v2 = vmax.f32 %v2131_v16, 0.0 }
 0xd9f   :  { %v2148_v59 = vmax.f32 %v2142_v40, 0.0 }
 0xda0   :  { %v2146_v58 = vmax.f32 %v2134_v62, 0.0 }
 0xda1   :  { %v2150_v3 = vpack.c.bf16 %v2148_v59, %v2147_v57  ;;  %v4443_v57 = vld [vmem:[#allocation13] ss:$0 sm:$0xff] }
 0xda2   :  { %v2149_v5 = vpack.c.bf16 %v2146_v58, %v2145_v2 }
 0xda4   :  { %4909 = vmatprep.mubr.bf16.mxu1 %v2149_v5  ;;  %v4444_v5 = vld [vmem:[#allocation14] ss:$0 sm:$0xff] }
 0xda5   :  { %4910 = vmatmul.mubr.bf16.vlgmr.msra.gmra.mrb[48].mxu1 %v2150_v3 }
 0xda6   :  { %4914 = vmatpush3.bf16.msra.mxu1 %v5338_v45 }
 0xda7   :  { %4915 = vmatprep.subr.bf16.mxu1 %v5339_v39 }
 0xdaa   :  { %4916 = vmatpush3.bf16.msra.mxu1 %v5339_v39 }
 0xe78   :  { %v4911_v7 = vpop.f32.mrb[48].mxu1 }
 0xe79   :  { %v2266_v8 = vadd.f32 %v4911_v7, %v6584_v6  ;;  %v2249_v9 = vpop.f32.mrb[49].mxu1  ;;  %v5316_v6 = vld [vmem:[%s7073_s12 + $0x4] ss:$12 sps:$4 sm:$0xff]  }
 0xe7a   :  { %v2264_v60 = vadd.f32 %v2249_v9, %v6578_v50  ;;  %v4912_v10 = vpop.f32.mrb[50].mxu1  ;;  %v5314_v50 = vld [vmem:[%s7073_s12] ss:$12 sps:$4 sm:$0xff]   ;;  %2507 = vmatprep.subr.bf16.mxu0 %v5316_v6 }
 0xe7b   :  { %v6627_v4 = vadd.f32 %v4442_v36, %v2266_v8  ;;  %v2267_v12 = vadd.f32 %v4912_v10, %v6589_v41  ;;  %v2252_v17 = vpop.f32.mrb[51].mxu1  ;;  %2508 = vmatpush1.bf16.msra.mxu0 %v5314_v50  ;;  %v5317_v41 = vld [vmem:[%s7073_s12 + $0x18] ss:$12 sps:$4 sm:$0xff]   ;;  %v5341_v10 = vld [vmem:[%s7073_s12 + $0x50] ss:$12 sps:$4 sm:$0xff]  }
 0xe7c   :  { %v6630_v35 = vadd.f32 %v4442_v36, %v2264_v60  ;;  %v2265_v37 = vadd.f32 %v2252_v17, %v6581_v48  ;;  %2509 = vmatprep.subr.bf16.mxu0 %v5319_v61  ;;  %v5340_v60 = vld [vmem:[%s7073_s12 + $0x38] ss:$12 sps:$4 sm:$0xff]   ;;  %v5343_v17 = vld [vmem:[%s7073_s12 + $0x80] ss:$12 sps:$4 sm:$0xff]   ;;  %v5345_v50 = vld [vmem:[%s7073_s12 + $0xb0] ss:$12 sps:$4 sm:$0xff]  }
 0xe7d   :  { %v6633_v14 = vadd.f32 %v4442_v36, %v2267_v12  ;;  %4917 = vmatprep.subr.bf16.mxu1 %v5340_v60  ;;  %v5342_v12 = vld [vmem:[%s7073_s12 + $0x68] ss:$12 sps:$4 sm:$0xff]  }
 0xe7e   :  { %v6635_v52 = vadd.f32 %v4442_v36, %v2265_v37  ;;  %2281 = vadd.xlane.f32.xlu1 %v6630_v35  ;;  %4918 = vmatpush3.bf16.msra.mxu1 %v5340_v60  ;;  %v5344_v37 = vld [vmem:[%s7073_s12 + $0x98] ss:$12 sps:$4 sm:$0xff]  }
 0xe7f   :  { %2510 = vmatpush1.bf16.msra.mxu0 %v5317_v41  ;;  %4919 = vmatprep.subr.bf16.mxu1 %v5341_v10 }
 0xe80   :  { %2283 = vadd.xlane.f32.xlu0 %v6635_v52  ;;  %2511 = vmatprep.subr.bf16.mxu0 %v5322_v31 }
 0xe82   :  { %4920 = vmatpush3.bf16.msra.mxu1 %v5341_v10 }
 0xe83   :  { %2512 = vmatpush1.bf16.msra.mxu0 %v5320_v32  ;;  %4921 = vmatprep.subr.bf16.mxu1 %v5342_v12 }
 0xe84   :  { %2513 = vmatprep.subr.bf16.mxu0 %v5325_v33 }
 0xe86   :  { %4922 = vmatpush3.bf16.msra.mxu1 %v5342_v12 }
 0xe87   :  { %2514 = vmatpush1.bf16.msra.mxu0 %v5323_v34  ;;  %4923 = vmatprep.subr.bf16.mxu1 %v5343_v17 }
 0xe88   :  { %2515 = vmatprep.subr.bf16.mxu0 %v5328_v38 }
 0xe8a   :  { %4924 = vmatpush3.bf16.msra.mxu1 %v5343_v17 }
 0xe8b   :  { %2516 = vmatpush1.bf16.msra.mxu0 %v5326_v42  ;;  %4925 = vmatprep.subr.bf16.mxu1 %v5344_v37 }
 0xe8c   :  { %2517 = vmatprep.subr.bf16.mxu0 %v5331_v29 }
 0xe8e   :  { %4926 = vmatpush3.bf16.msra.mxu1 %v5344_v37 }
 0xe8f   :  { %2518 = vmatpush1.bf16.msra.mxu0 %v5329_v15  ;;  %4927 = vmatprep.subr.bf16.mxu1 %v5345_v50 }
 0xe90   :  { %2519 = vmatprep.subr.bf16.mxu0 %v5334_v23 }
 0xe92   :  { %4928 = vmatpush3.bf16.msra.mxu1 %v5345_v50 }
 0xe93   :  { %2520 = vmatpush1.bf16.msra.mxu0 %v5332_v44  ;;  %4951 = vmatprep.subr.bf16.mxu1 %v5943_v46 }
 0xe94   :  { %2521 = vmatprep.subr.bf16.mxu0 %v5337_v47 }
 0xe97   :  { %2522 = vmatpush1.bf16.msra.mxu0 %v5335_v49 }
 0xe98   :  { %4933 = vmatprep.subr.bf16.mxu0 %v5943_v46 }
 0xf0b   :  { %v2282_v11 = vpop.xlane.xlu1 %2281 }
 0xf0c   :  { %v2289_v48 = vmul.f32 0.0078125, %v2282_v11 }
 0xf0d   :  { %v2284_v19 = vpop.xlane.xlu0 %2283 }
 0xf0e   :  { %v2293_v27 = vsub.f32 %v6630_v35, %v2289_v48  ;;  %v2290_v1 = vmul.f32 0.0078125, %v2284_v19 }
 0xf10   :  { %v2294_v20 = vsub.f32 %v6635_v52, %v2290_v1  ;;  %v2297_v54 = vmul.f32 %v2293_v27, %v2293_v27 }
 0xf12   :  { %2301 = vadd.xlane.f32.xlu1 %v2297_v54  ;;  %v2298_v56 = vmul.f32 %v2294_v20, %v2294_v20 }
 0xf14   :  { %2303 = vadd.xlane.f32.xlu0 %v2298_v56 }
 0xf16   :  { %2285 = vadd.xlane.f32.xlu1 %v6627_v4 }
 0xf18   :  { %2287 = vadd.xlane.f32.xlu0 %v6633_v14 }
 0xf9f   :  { %v2302_v18 = vpop.xlane.xlu1 %2301 }
 0xfa0   :  { %v2309_v63 = vmul.f32 0.0078125, %v2302_v18 }
 0xfa1   :  { %v2304_v51 = vpop.xlane.xlu0 %2303 }
 0xfa2   :  { %v2313_v53 = vadd.f32 1e-05, %v2309_v63  ;;  %v2310_v43 = vmul.f32 0.0078125, %v2304_v51 }
 0xfa3   :  { %v2286_v13 = vpop.xlane.xlu1 %2285 }
 0xfa4   :  { %5458 = vrsqrt.f32 %v2313_v53  ;;  %v2314_v30 = vadd.f32 1e-05, %v2310_v43  ;;  %v2291_v26 = vmul.f32 0.0078125, %v2286_v13 }
 0xfa5   :  { %v2288_v55 = vpop.xlane.xlu0 %2287 }
 0xfa6   :  { %5460 = vrsqrt.f32 %v2314_v30  ;;  %v2295_v24 = vsub.f32 %v6627_v4, %v2291_v26  ;;  %v2292_v16 = vmul.f32 0.0078125, %v2288_v55 }
 0xfa8   :  { %v2296_v22 = vsub.f32 %v6633_v14, %v2292_v16  ;;  %v2299_v40 = vmul.f32 %v2295_v24, %v2295_v24 }
 0xfaa   :  { %2305 = vadd.xlane.f32.xlu1 %v2299_v40  ;;  %v2300_v28 = vmul.f32 %v2296_v22, %v2296_v22 }
 0xfac   :  { %2307 = vadd.xlane.f32.xlu0 %v2300_v28 }
 0xfae   :  { %v5459_v62 = vpop.eup %5458 }
 0xfaf   :  { %v2321_v59 = vmul.f32 %v5459_v62, %v2293_v27 }
 0xfb0   :  { %v5461_v2 = vpop.eup %5460 }
 0xfb1   :  { %v2322_v58 = vmul.f32 %v5461_v2, %v2294_v20  ;;  %v2331_v3 = vmul.f32 %v4443_v57, %v2321_v59 }
 0xfb3   :  { %v2332_v7 = vmul.f32 %v4443_v57, %v2322_v58  ;;  %v2341_v36 = vadd.f32 %v4444_v5, %v2331_v3 }
 0xfb5   :  { %v2342_v8 = vadd.f32 %v4444_v5, %v2332_v7 }
 0xfb7   :  { %v2345_v9 = vpack.c.bf16 %v2342_v8, %v2341_v36 }
 0xfb9   :  { %2540 = vmatmul.mubr.bf16.vlgmr.msra.gmra.mrb[40].mxu0 %v2345_v9  ;;  %4929 = vmatprep.mubr.bf16.mxu1 %v2345_v9 }
 0xfba   :  { %2549 = vmatprep.mubr.bf16.mxu0 %v5941_v0 }
0x1037   :  { %v2306_v6 = vpop.xlane.xlu1 %2305 }
0x1038   :  { %v2311_v0 = vmul.f32 0.0078125, %v2306_v6 }
0x1039   :  { %v2308_v61 = vpop.xlane.xlu0 %2307 }
0x103a   :  { %v2315_v41 = vadd.f32 1e-05, %v2311_v0  ;;  %v2312_v11 = vmul.f32 0.0078125, %v2308_v61 }
0x103c   :  { %5462 = vrsqrt.f32 %v2315_v41  ;;  %v2316_v48 = vadd.f32 1e-05, %v2312_v11 }
0x103e   :  { %5464 = vrsqrt.f32 %v2316_v48 }
0x1046   :  { %v5463_v19 = vpop.eup %5462 }
0x1047   :  { %v2323_v27 = vmul.f32 %v5463_v19, %v2295_v24 }
0x1048   :  { %v5465_v1 = vpop.eup %5464 }
0x1049   :  { %v2324_v20 = vmul.f32 %v5465_v1, %v2296_v22  ;;  %v2333_v54 = vmul.f32 %v4443_v57, %v2323_v27 }
0x104b   :  { %v2334_v56 = vmul.f32 %v4443_v57, %v2324_v20  ;;  %v2343_v31 = vadd.f32 %v4444_v5, %v2333_v54 }
0x104d   :  { %v2344_v32 = vadd.f32 %v4444_v5, %v2334_v56 }
0x104f   :  { %v2346_v33 = vpack.c.bf16 %v2344_v32, %v2343_v31 }
0x1051   :  { %2550 = vmatmul.mubr.bf16.gmra.mrb[44].mxu0 %v2346_v33  ;;  %4930 = vmatmul.mubr.bf16.vlgmr.msra.gmra.mrb[52].mxu1 %v2346_v33 }
0x1052   :  { %4935 = vmatprep.mubr.msk.bf16.mxu0 %vm5944_vm4, %v5943_v46  ;;  %4953 = vmatprep.mubr.msk.bf16.mxu1 %vm5944_vm4, %v5943_v46 }
0x108c   :  { %v2541_v34 = vpop.f32.mrb[40].mxu0 }
0x108d   :  { %v2543_v38 = vpop.f32.mrb[41].mxu0 }
0x108e   :  { %v2545_v42 = vpop.f32.mrb[42].mxu0 }
0x108f   :  { %v2609_v29 = vpack.c.bf16 %v2545_v42, %v2541_v34  ;;  %v2547_v15 = vpop.f32.mrb[43].mxu0 }
0x1090   :  { %v2610_v23 = vpack.c.bf16 %v2547_v15, %v2543_v38 }
0x1092   :  { %v2616_v44 = vsel %vm768_vm5, %v2610_v23, 0 }
0x1093   :  { %4934 = vmatpush3.bf16.xpose.msra.mxu0 %v2616_v44 }
0x1094   :  { %4939 = vmatprep.subr.bf16.mxu0 %v5943_v46 }
0x109a   :  { %4936 = vmatmul.mubr.msk.bf16.vlgmr.msra.gmra.mrb[48].mxu0 %vm768_vm5, %v2609_v29 }
0x109b   :  { %4941 = vmatprep.mubr.msk.bf16.mxu0 %vm5944_vm4, %v5943_v46 }
0x1124   :  { %v2551_v47 = vpop.f32.mrb[44].mxu0  ;;  %v4931_v49 = vpop.f32.mrb[52].mxu1 }
0x1125   :  { %v2553_v45 = vpop.f32.mrb[45].mxu0  ;;  %v2594_v39 = vpop.f32.mrb[53].mxu1 }
0x1126   :  { %v2555_v18 = vpop.f32.mrb[46].mxu0  ;;  %v4932_v63 = vpop.f32.mrb[54].mxu1 }
0x1127   :  { %v6681_v51 = vpack.c.bf16 %v2555_v18, %v2551_v47  ;;  %v6683_v53 = vpack.c.bf16 %v4932_v63, %v4931_v49  ;;  %v2557_v43 = vpop.f32.mrb[47].mxu0  ;;  %v2597_v13 = vpop.f32.mrb[55].mxu1 }
0x1128   :  { %v6685_v30 = vpack.c.bf16 %v2557_v43, %v2553_v45  ;;  %v6687_v26 = vpack.c.bf16 %v2597_v13, %v2594_v39 }
0x112a   :  { %4940 = vmatpush3.bf16.msra.mxu0 %v6687_v26  ;;  %v3145_v32 = vsel %vm768_vm5, %v6685_v30, 0 }
0x112b   :  { %4945 = vmatprep.subr.bf16.mxu0 %v5943_v46 }
0x116d   :  { %v2652_v55 = vpop.f32.mrb[48].mxu0 }
0x116e   :  { %v2659_v24 = vmul.f32 0.088388346, %v2652_v55  ;;  %v4937_v16 = vpop.f32.mrb[49].mxu0 }
0x116f   :  { %v2655_v22 = vpop.f32.mrb[50].mxu0 }
0x1170   :  { %v2660_v40 = vmul.f32 0.088388346, %v2655_v22  ;;  %v4938_v28 = vpop.f32.mrb[51].mxu0  ;;  %v2661_v62 = vadd.f32 %v2659_v24, %v6277_v21 }
0x1172   :  { %v2663_v57 = vsel %vm820_vm8, %v2661_v62, -inf  ;;  %v2662_v59 = vadd.f32 %v2660_v40, %v6279_v25 }
0x1173   :  { %2664 = vmax.xlane.f32.xlu1 %v2663_v57 }
0x1174   :  { %v2666_v2 = vsel %vm820_vm8, %v2662_v59, -inf }
0x1175   :  { %2667 = vmax.xlane.f32.xlu0 %v2666_v2 }
0x1200   :  { %v2665_v58 = vpop.xlane.xlu1 %2664 }
0x1201   :  { %v2669_v3 = vsub.f32 %v2661_v62, %v2665_v58 }
0x1202   :  { %v2668_v5 = vpop.xlane.xlu0 %2667 }
0x1203   :  { %v2671_v7 = vmul.f32 1.442695, %v2669_v3  ;;  %v2670_v36 = vsub.f32 %v2662_v59, %v2668_v5 }
0x1205   :  { %5466 = vpow2.f32 %v2671_v7  ;;  %v2673_v8 = vmul.f32 1.442695, %v2670_v36 }
0x1207   :  { %5468 = vpow2.f32 %v2673_v8 }
0x120f   :  { %v5467_v9 = vpop.eup %5466 }
0x1210   :  { %v2675_v60 = vsel %vm820_vm8, %v5467_v9, 0.0 }
0x1211   :  { %v5469_v10 = vpop.eup %5468  ;;  %2676 = vadd.xlane.f32.xlu1 %v2675_v60 }
0x1212   :  { %v2678_v12 = vsel %vm820_vm8, %v5469_v10, 0.0 }
0x1213   :  { %2679 = vadd.xlane.f32.xlu0 %v2678_v12 }
0x1222   :  { %2734 = vrot.lane.b32.xlu1 %v2610_v23, %s5946_s2 }
0x1226   :  { %2860 = vrot.lane.b32.xlu1 %v2610_v23, %s5930_s7 }
0x1229   :  { %2731 = vrot.lane.b32.xlu0 %v2609_v29, %s5946_s2 }
0x122a   :  { %2858 = vrot.lane.b32.xlu1 %v2609_v29, %s5930_s7 }
0x122d   :  { %2985 = vrot.lane.b32.xlu0 %v2610_v23, %s5947_s10 }
0x122e   :  { %2983 = vrot.lane.b32.xlu1 %v2609_v29, %s5947_s10 }
0x1231   :  { %3263 = vrot.lane.b32.xlu0 %v6685_v30, %s5946_s2 }
0x1232   :  { %3260 = vrot.lane.b32.xlu1 %v6681_v51, %s5946_s2 }
0x1235   :  { %3389 = vrot.lane.b32.xlu0 %v6685_v30, %s5930_s7 }
0x1236   :  { %3387 = vrot.lane.b32.xlu1 %v6681_v51, %s5930_s7 }
0x1239   :  { %3514 = vrot.lane.b32.xlu0 %v6685_v30, %s5947_s10 }
0x123a   :  { %3512 = vrot.lane.b32.xlu1 %v6681_v51, %s5947_s10 }
0x129e   :  { %v2677_v17 = vpop.xlane.xlu1 %2676 }
0x129f   :  { %5470 = vrcp.f32 %v2677_v17 }
0x12a0   :  { %v2680_v37 = vpop.xlane.xlu0 %2679 }
0x12a1   :  { %5472 = vrcp.f32 %v2680_v37 }
0x12a2   :  { %v2735_v41 = vpop.permute.xlu1 %2734 }
0x12a3   :  { %v2740_v48 = vsel %vm768_vm5, %v2735_v41, 0 }
0x12a4   :  { %v2732_v27 = vpop.permute.xlu0 %2731 }
0x12a6   :  { %v2861_v19 = vpop.permute.xlu1 %2860 }
0x12a7   :  { %v2866_v1 = vsel %vm768_vm5, %v2861_v19, 0 }
0x12a8   :  { %v2986_v20 = vpop.permute.xlu0 %2985 }
0x12a9   :  { %v5471_v50 = vpop.eup %5470  ;;  %v2991_v56 = vsel %vm768_vm5, %v2986_v20, 0 }
0x12aa   :  { %v2683_v0 = vmul.f32 %v5471_v50, %v5467_v9  ;;  %v2859_v54 = vpop.permute.xlu1 %2858 }
0x12ab   :  { %v5473_v6 = vpop.eup %5472 }
0x12ac   :  { %v2684_v61 = vmul.f32 %v5473_v6, %v5469_v10  ;;  %v3264_v33 = vpop.permute.xlu0 %3263 }
0x12ad   :  { %v3269_v34 = vsel %vm768_vm5, %v3264_v33, 0 }
0x12ae   :  { %v2685_v11 = vpack.c.bf16 %v2684_v61, %v2683_v0  ;;  %v2984_v31 = vpop.permute.xlu1 %2983 }
0x12b0   :  { %4942 = vmatmul.mubr.msk.bf16.vlgmr.msra.gmra.mrb[52].mxu0 %vm820_vm8, %v2685_v11  ;;  %v3390_v38 = vpop.permute.xlu0 %3389 }
0x12b1   :  { %4946 = vmatpush3.bf16.xpose.msra.mxu0 %v2740_v48  ;;  %4947 = vmatprep.mubr.msk.bf16.mxu0 %vm5944_vm4, %v5943_v46  ;;  %v3395_v29 = vsel %vm768_vm5, %v3390_v38, 0 }
0x12b2   :  { %4957 = vmatprep.subr.bf16.mxu0 %v5943_v46  ;;  %v3261_v42 = vpop.permute.xlu1 %3260 }
0x12b4   :  { %v3515_v15 = vpop.permute.xlu0 %3514 }
0x12b5   :  { %v3520_v44 = vsel %vm768_vm5, %v3515_v15, 0 }
0x12b6   :  { %v3388_v23 = vpop.permute.xlu1 %3387 }
0x12b8   :  { %4948 = vmatmul.mubr.msk.bf16.vlgmr.msra.gmra.mrb[56].mxu0 %vm768_vm5, %v2732_v27 }
0x12b9   :  { %4958 = vmatpush3.bf16.xpose.msra.mxu0 %v2866_v1  ;;  %4959 = vmatprep.mubr.msk.bf16.mxu0 %vm5944_vm4, %v5943_v46 }
0x12ba   :  { %4969 = vmatprep.subr.bf16.mxu0 %v5943_v46  ;;  %v3513_v47 = vpop.permute.xlu1 %3512 }
0x12c0   :  { %4960 = vmatmul.mubr.msk.bf16.vlgmr.msra.gmra.mrb[60].mxu0 %vm768_vm5, %v2859_v54 }
0x12c1   :  { %4970 = vmatpush3.bf16.xpose.msra.mxu0 %v2991_v56  ;;  %4971 = vmatprep.mubr.msk.bf16.mxu0 %vm5944_vm4, %v5943_v46 }
0x12c2   :  { %4981 = vmatprep.subr.bf16.mxu0 %v5943_v46 }
0x12c8   :  { %4972 = vmatmul.mubr.msk.bf16.vlgmr.msra.gmra.mrb[64].mxu0 %vm768_vm5, %v2984_v31 }
0x12c9   :  { %4982 = vmatpush3.bf16.xpose.msra.mxu0 %v3145_v32  ;;  %4983 = vmatprep.mubr.msk.bf16.mxu0 %vm5944_vm4, %v5943_v46 }
0x12ca   :  { %4993 = vmatprep.subr.bf16.mxu0 %v5943_v46 }
0x12d0   :  { %4984 = vmatmul.mubr.msk.bf16.vlgmr.msra.gmra.mrb[68].mxu0 %vm768_vm5, %v6681_v51 }
0x12d1   :  { %4994 = vmatpush3.bf16.xpose.msra.mxu0 %v3269_v34  ;;  %4995 = vmatprep.mubr.msk.bf16.mxu0 %vm5944_vm4, %v5943_v46 }
0x12d2   :  { %5005 = vmatprep.subr.bf16.mxu0 %v5943_v46 }
0x12d8   :  { %4996 = vmatmul.mubr.msk.bf16.vlgmr.msra.gmra.mrb[72].mxu0 %vm768_vm5, %v3261_v42 }
0x12d9   :  { %5006 = vmatpush3.bf16.xpose.msra.mxu0 %v3395_v29  ;;  %5007 = vmatprep.mubr.msk.bf16.mxu0 %vm5944_vm4, %v5943_v46 }
0x12da   :  { %5017 = vmatprep.subr.bf16.mxu0 %v5943_v46 }
0x12e0   :  { %5008 = vmatmul.mubr.msk.bf16.vlgmr.msra.gmra.mrb[76].mxu0 %vm768_vm5, %v3388_v23 }
0x12e1   :  { %5018 = vmatpush3.bf16.xpose.msra.mxu0 %v3520_v44  ;;  %5019 = vmatprep.mubr.msk.bf16.mxu0 %vm5944_vm4, %v5943_v46 }
0x12e8   :  { %5020 = vmatmul.mubr.msk.bf16.vlgmr.msra.gmra.mrb[80].mxu0 %vm768_vm5, %v3513_v47 }
0x1383   :  { %v6752_v49 = vpop.f32.mrb[52].mxu0 }
0x1384   :  { %v4943_v45 = vpop.f32.mrb[53].mxu0 }
0x1385   :  { %v6754_v39 = vpop.f32.mrb[54].mxu0 }
0x1386   :  { %v4944_v18 = vpop.f32.mrb[55].mxu0 }
0x138b   :  { %v2776_v63 = vpop.f32.mrb[56].mxu0 }
0x138c   :  { %v2783_v51 = vmul.f32 0.088388346, %v2776_v63  ;;  %v4949_v43 = vpop.f32.mrb[57].mxu0 }
0x138d   :  { %v2779_v13 = vpop.f32.mrb[58].mxu0 }
0x138e   :  { %v6757_v30 = vadd.f32 %v2783_v51, %v6277_v21  ;;  %v2784_v55 = vmul.f32 0.088388346, %v2779_v13  ;;  %v4950_v24 = vpop.f32.mrb[59].mxu0 }
0x1390   :  { %v6760_v16 = vadd.f32 %v2784_v55, %v6279_v25  ;;  %v2787_v22 = vsel %vm820_vm8, %v6757_v30, -inf }
0x1391   :  { %2788 = vmax.xlane.f32.xlu0 %v2787_v22 }
0x1392   :  { %v2790_v40 = vsel %vm820_vm8, %v6760_v16, -inf }
0x1393   :  { %2791 = vmax.xlane.f32.xlu1 %v2790_v40  ;;  %v2902_v28 = vpop.f32.mrb[60].mxu0 }
0x1394   :  { %v2909_v62 = vmul.f32 0.088388346, %v2902_v28  ;;  %v4961_v57 = vpop.f32.mrb[61].mxu0 }
0x1395   :  { %v2905_v59 = vpop.f32.mrb[62].mxu0 }
0x1396   :  { %v6767_v2 = vadd.f32 %v2909_v62, %v6277_v21  ;;  %v2910_v58 = vmul.f32 0.088388346, %v2905_v59  ;;  %v4962_v3 = vpop.f32.mrb[63].mxu0 }
0x1398   :  { %v6770_v5 = vadd.f32 %v2910_v58, %v6279_v25  ;;  %v2913_v7 = vsel %vm820_vm8, %v6767_v2, -inf }
0x1399   :  { %2914 = vmax.xlane.f32.xlu0 %v2913_v7 }
0x139a   :  { %v2916_v60 = vsel %vm820_vm8, %v6770_v5, -inf }
0x139b   :  { %v3027_v36 = vpop.f32.mrb[64].mxu0 }
0x139c   :  { %v3034_v8 = vmul.f32 0.088388346, %v3027_v36  ;;  %v4973_v9 = vpop.f32.mrb[65].mxu0 }
0x139d   :  { %2917 = vmax.xlane.f32.xlu0 %v2916_v60  ;;  %v3030_v10 = vpop.f32.mrb[66].mxu0 }
0x139e   :  { %v6777_v12 = vadd.f32 %v3034_v8, %v6277_v21  ;;  %v3035_v17 = vmul.f32 0.088388346, %v3030_v10  ;;  %v4974_v37 = vpop.f32.mrb[67].mxu0 }
0x13a0   :  { %v6780_v50 = vadd.f32 %v3035_v17, %v6279_v25  ;;  %v3038_v6 = vsel %vm820_vm8, %v6777_v12, -inf }
0x13a1   :  { %3039 = vmax.xlane.f32.xlu1 %v3038_v6 }
0x13a2   :  { %v3041_v0 = vsel %vm820_vm8, %v6780_v50, -inf }
0x13a3   :  { %3042 = vmax.xlane.f32.xlu0 %v3041_v0  ;;  %v3181_v61 = vpop.f32.mrb[68].mxu0 }
0x13a4   :  { %v3188_v41 = vmul.f32 0.088388346, %v3181_v61  ;;  %v4985_v11 = vpop.f32.mrb[69].mxu0 }
0x13a5   :  { %v3184_v48 = vpop.f32.mrb[70].mxu0 }
0x13a6   :  { %v6787_v19 = vadd.f32 %v3188_v41, %v6277_v21  ;;  %v3189_v27 = vmul.f32 0.088388346, %v3184_v48  ;;  %v4986_v1 = vpop.f32.mrb[71].mxu0 }
0x13a8   :  { %v6790_v20 = vadd.f32 %v3189_v27, %v6279_v25  ;;  %v3192_v54 = vsel %vm820_vm8, %v6787_v19, -inf }
0x13a9   :  { %3193 = vmax.xlane.f32.xlu1 %v3192_v54 }
0x13aa   :  { %v3195_v56 = vsel %vm820_vm8, %v6790_v20, -inf }
0x13ab   :  { %3196 = vmax.xlane.f32.xlu0 %v3195_v56  ;;  %v3305_v31 = vpop.f32.mrb[72].mxu0 }
0x13ac   :  { %v4997_v32 = vpop.f32.mrb[73].mxu0  ;;  %v3312_v28 = vmul.f32 0.088388346, %v3305_v31 }
0x13ad   :  { %v3308_v33 = vpop.f32.mrb[74].mxu0 }
0x13ae   :  { %v3313_v34 = vmul.f32 0.088388346, %v3308_v33  ;;  %v4998_v38 = vpop.f32.mrb[75].mxu0  ;;  %v6814_v62 = vadd.f32 %v3312_v28, %v6277_v21 }
0x13b0   :  { %v6797_v42 = vadd.f32 %v3313_v34, %v6279_v25  ;;  %v3316_v3 = vsel %vm820_vm8, %v6814_v62, -inf }
0x13b2   :  { %v3319_v29 = vsel %vm820_vm8, %v6797_v42, -inf }
0x13b3   :  { %3320 = vmax.xlane.f32.xlu0 %v3319_v29  ;;  %v3431_v15 = vpop.f32.mrb[76].mxu0 }
0x13b4   :  { %v5009_v23 = vpop.f32.mrb[77].mxu0  ;;  %v3438_v57 = vmul.f32 0.088388346, %v3431_v15 }
0x13b5   :  { %v3434_v44 = vpop.f32.mrb[78].mxu0 }
0x13b6   :  { %v3439_v47 = vmul.f32 0.088388346, %v3434_v44  ;;  %v5010_v45 = vpop.f32.mrb[79].mxu0  ;;  %v6817_v59 = vadd.f32 %v3438_v57, %v6277_v21 }
0x13b8   :  { %v6802_v18 = vadd.f32 %v3439_v47, %v6279_v25  ;;  %v3442_v7 = vsel %vm820_vm8, %v6817_v59, -inf }
0x13ba   :  { %2811 = vrot.lane.b32.xlu1 %v6687_v26, %s5946_s2  ;;  %v3445_v63 = vsel %vm820_vm8, %v6802_v18, -inf }
0x13bb   :  { %3446 = vmax.xlane.f32.xlu0 %v3445_v63  ;;  %v3556_v51 = vpop.f32.mrb[80].mxu0 }
0x13bc   :  { %v5021_v43 = vpop.f32.mrb[81].mxu0  ;;  %v3563_v58 = vmul.f32 0.088388346, %v3556_v51 }
0x13bd   :  { %v3559_v13 = vpop.f32.mrb[82].mxu0 }
0x13be   :  { %v3564_v55 = vmul.f32 0.088388346, %v3559_v13  ;;  %v5022_v24 = vpop.f32.mrb[83].mxu0 }
0x13c0   :  { %v6809_v22 = vadd.f32 %v3564_v55, %v6279_v25  ;;  %v6822_v25 = vadd.f32 %v3563_v58, %v6277_v21 }
0x13c2   :  { %v3570_v40 = vsel %vm820_vm8, %v6809_v22, -inf  ;;  %v3567_v36 = vsel %vm820_vm8, %v6822_v25, -inf }
0x13c3   :  { %3571 = vmax.xlane.f32.xlu0 %v3570_v40 }
0x13de   :  { %3317 = vmax.xlane.f32.xlu1 %v3316_v3 }
0x13e2   :  { %3443 = vmax.xlane.f32.xlu1 %v3442_v7 }
0x13e6   :  { %3568 = vmax.xlane.f32.xlu1 %v3567_v36 }
0x141e   :  { %v2789_v8 = vpop.xlane.xlu0 %2788 }
0x141f   :  { %v2793_v9 = vsub.f32 %v6757_v30, %v2789_v8 }
0x1420   :  { %v2792_v60 = vpop.xlane.xlu1 %2791 }
0x1421   :  { %v2795_v10 = vmul.f32 1.442695, %v2793_v9  ;;  %v2794_v17 = vsub.f32 %v6760_v16, %v2792_v60 }
0x1423   :  { %5474 = vpow2.f32 %v2795_v10  ;;  %v2797_v37 = vmul.f32 1.442695, %v2794_v17 }
0x1425   :  { %5476 = vpow2.f32 %v2797_v37 }
0x1426   :  { %v2915_v16 = vpop.xlane.xlu0 %2914 }
0x1427   :  { %v2919_v27 = vsub.f32 %v6767_v2, %v2915_v16 }
0x1429   :  { %v2921_v56 = vmul.f32 1.442695, %v2919_v27 }
0x142a   :  { %v2918_v48 = vpop.xlane.xlu0 %2917 }
0x142b   :  { %v2920_v1 = vsub.f32 %v6770_v5, %v2918_v48  ;;  %5478 = vpow2.f32 %v2921_v56 }
0x142d   :  { %v6830_v21 = vpop.eup %5474  ;;  %v2923_v32 = vmul.f32 1.442695, %v2920_v1 }
0x142e   :  { %v2799_v6 = vsel %vm820_vm8, %v6830_v21, 0.0  ;;  %v3040_v30 = vpop.xlane.xlu1 %3039 }
0x142f   :  { %v6834_v0 = vpop.eup %5476  ;;  %2800 = vadd.xlane.f32.xlu1 %v2799_v6  ;;  %v3044_v31 = vsub.f32 %v6777_v12, %v3040_v30  ;;  %5480 = vpow2.f32 %v2923_v32 }
0x1430   :  { %v2802_v61 = vsel %vm820_vm8, %v6834_v0, 0.0  ;;  %v3043_v54 = vpop.xlane.xlu0 %3042 }
0x1431   :  { %2803 = vadd.xlane.f32.xlu0 %v2802_v61  ;;  %v3045_v33 = vsub.f32 %v6780_v50, %v3043_v54  ;;  %v3046_v38 = vmul.f32 1.442695, %v3044_v31 }
0x1433   :  { %v3048_v15 = vmul.f32 1.442695, %v3045_v33  ;;  %5482 = vpow2.f32 %v3046_v38 }
0x1435   :  { %5484 = vpow2.f32 %v3048_v15  ;;  %v6849_v23 = vpop.eup %5478 }
0x1436   :  { %v3194_v41 = vpop.xlane.xlu1 %3193  ;;  %v2925_v50 = vsel %vm820_vm8, %v6849_v23, 0.0 }
0x1437   :  { %v3198_v29 = vsub.f32 %v6787_v19, %v3194_v41 }
0x1438   :  { %v3197_v34 = vpop.xlane.xlu0 %3196 }
0x1439   :  { %v3200_v2 = vmul.f32 1.442695, %v3198_v29  ;;  %v6851_v12 = vpop.eup %5480 }
0x143a   :  { %v2812_v11 = vpop.permute.xlu1 %2811  ;;  %v2928_v19 = vsel %vm820_vm8, %v6851_v12, 0.0 }
0x143b   :  { %4952 = vmatpush3.bf16.msra.mxu1 %v2812_v11  ;;  %5486 = vpow2.f32 %v3200_v2 }
0x143c   :  { %4963 = vmatprep.subr.bf16.mxu1 %v5943_v46 }
0x143d   :  { %v6855_v44 = vpop.eup %5482 }
0x143e   :  { %v3050_v45 = vsel %vm820_vm8, %v6855_v44, 0.0 }
0x1440   :  { %3061 = vrot.lane.b32.xlu1 %v6687_v26, %s5947_s10  ;;  %v3321_v47 = vpop.xlane.xlu0 %3320 }
0x1441   :  { %v3323_v13 = vsub.f32 %v6797_v42, %v3321_v47 }
0x1443   :  { %v3326_v58 = vmul.f32 1.442695, %v3323_v13 }
0x1447   :  { %2936 = vrot.lane.b32.xlu0 %v6687_v26, %s5930_s7  ;;  %v3199_v26 = vsub.f32 %v6790_v20, %v3197_v34  ;;  %v6859_v20 = vpop.eup %5484 }
0x1448   :  { %v6863_v63 = vpop.eup %5486  ;;  %v3053_v51 = vsel %vm820_vm8, %v6859_v20, 0.0  ;;  %v3447_v55 = vpop.xlane.xlu0 %3446 }
0x1449   :  { %v3202_v5 = vmul.f32 1.442695, %v3199_v26  ;;  %v3204_v40 = vsel %vm820_vm8, %v6863_v63, 0.0  ;;  %v3449_v3 = vsub.f32 %v6802_v18, %v3447_v55 }
0x144b   :  { %5488 = vpow2.f32 %v3202_v5  ;;  %v3452_v42 = vmul.f32 1.442695, %v3449_v3 }
0x1450   :  { %v3572_v8 = vpop.xlane.xlu0 %3571 }
0x1455   :  { %v6867_v43 = vpop.eup %5488 }
0x1456   :  { %v3207_v57 = vsel %vm820_vm8, %v6867_v43, 0.0 }
0x1464   :  { %2926 = vadd.xlane.f32.xlu1 %v2925_v50 }
0x1466   :  { %2929 = vadd.xlane.f32.xlu0 %v2928_v19 }
0x1468   :  { %3051 = vadd.xlane.f32.xlu1 %v3050_v45 }
0x146a   :  { %3054 = vadd.xlane.f32.xlu0 %v3053_v51 }
0x146b   :  { %v3318_v24 = vpop.xlane.xlu1 %3317 }
0x146c   :  { %v3322_v28 = vsub.f32 %v6814_v62, %v3318_v24  ;;  %3205 = vadd.xlane.f32.xlu1 %v3204_v40  ;;  %v3574_v62 = vsub.f32 %v6809_v22, %v3572_v8 }
0x146e   :  { %v3324_v7 = vmul.f32 1.442695, %v3322_v28  ;;  %3208 = vadd.xlane.f32.xlu0 %v3207_v57  ;;  %v3577_v37 = vmul.f32 1.442695, %v3574_v62 }
0x146f   :  { %v3444_v36 = vpop.xlane.xlu1 %3443 }
0x1470   :  { %5490 = vpow2.f32 %v3324_v7  ;;  %v3448_v16 = vsub.f32 %v6817_v59, %v3444_v36 }
0x1471   :  { %5492 = vpow2.f32 %v3326_v58 }
0x1472   :  { %5494 = vpow2.f32 %v3452_v42  ;;  %v3450_v27 = vmul.f32 1.442695, %v3448_v16 }
0x1473   :  { %v3569_v9 = vpop.xlane.xlu1 %3568 }
0x1474   :  { %v3573_v60 = vsub.f32 %v6822_v25, %v3569_v9 }
0x1476   :  { %v3575_v10 = vmul.f32 1.442695, %v3573_v60 }
0x1478   :  { %5496 = vpow2.f32 %v3575_v10 }
0x1479   :  { %5498 = vpow2.f32 %v3577_v37 }
0x147a   :  { %v6878_v17 = vpop.eup %5490  ;;  %5500 = vpow2.f32 %v3450_v27 }
0x147b   :  { %v3328_v18 = vsel %vm820_vm8, %v6878_v17, 0.0  ;;  %v6882_v6 = vpop.eup %5492 }
0x147c   :  { %3329 = vadd.xlane.f32.xlu0 %v3328_v18  ;;  %v3331_v25 = vsel %vm820_vm8, %v6882_v6, 0.0  ;;  %v6888_v61 = vpop.eup %5494 }
0x147d   :  { %3340 = vrot.lane.b32.xlu1 %v6683_v53, %s5946_s2  ;;  %v3457_v22 = vsel %vm820_vm8, %v6888_v61, 0.0 }
0x1480   :  { %3332 = vadd.xlane.f32.xlu0 %v3331_v25 }
0x1482   :  { %v6892_v30 = vpop.eup %5496 }
0x1483   :  { %v3579_v41 = vsel %vm820_vm8, %v6892_v30, 0.0  ;;  %v6896_v11 = vpop.eup %5498 }
0x1484   :  { %3458 = vadd.xlane.f32.xlu0 %v3457_v22  ;;  %v3582_v48 = vsel %vm820_vm8, %v6896_v11, 0.0  ;;  %v6901_v1 = vpop.eup %5500 }
0x1485   :  { %v3454_v54 = vsel %vm820_vm8, %v6901_v1, 0.0 }
0x1488   :  { %3580 = vadd.xlane.f32.xlu0 %v3579_v41 }
0x148c   :  { %3583 = vadd.xlane.f32.xlu0 %v3582_v48 }
0x14a1   :  { %3455 = vadd.xlane.f32.xlu1 %v3454_v54 }
0x14a2   :  { %3465 = vrot.lane.b32.xlu0 %v6683_v53, %s5930_s7 }
0x14b2   :  { %3590 = vrot.lane.b32.xlu1 %v6683_v53, %s5947_s10 }
0x14bc   :  { %v2801_v56 = vpop.xlane.xlu1 %2800 }
0x14bd   :  { %5502 = vrcp.f32 %v2801_v56 }
0x14be   :  { %v2804_v59 = vpop.xlane.xlu0 %2803 }
0x14bf   :  { %5504 = vrcp.f32 %v2804_v59 }
0x14c0   :  { %v3062_v15 = vpop.permute.xlu1 %3061 }
0x14c2   :  { %v2937_v29 = vpop.permute.xlu0 %2936 }
0x14c7   :  { %v5503_v31 = vpop.eup %5502 }
0x14c8   :  { %v2807_v33 = vmul.f32 %v5503_v31, %v6830_v21 }
0x14c9   :  { %v5505_v32 = vpop.eup %5504 }
0x14ca   :  { %v2808_v34 = vmul.f32 %v5505_v32, %v6834_v0 }
0x14cc   :  { %v2809_v38 = vpack.c.bf16 %v2808_v34, %v2807_v33 }
0x14ce   :  { %4954 = vmatmul.mubr.msk.bf16.vlgmr.msra.gmra.mrb[56].mxu1 %vm820_vm8, %v2809_v38 }
0x14cf   :  { %4964 = vmatpush3.bf16.msra.mxu1 %v2937_v29  ;;  %4965 = vmatprep.mubr.msk.bf16.mxu1 %vm5944_vm4, %v5943_v46 }
0x14d0   :  { %4975 = vmatprep.subr.bf16.mxu1 %v5943_v46 }
0x14f1   :  { %v2927_v26 = vpop.xlane.xlu1 %2926 }
0x14f2   :  { %5506 = vrcp.f32 %v2927_v26 }
0x14f3   :  { %v2930_v2 = vpop.xlane.xlu0 %2929 }
0x14f4   :  { %5508 = vrcp.f32 %v2930_v2 }
0x14f5   :  { %v3052_v5 = vpop.xlane.xlu1 %3051 }
0x14f7   :  { %v3055_v50 = vpop.xlane.xlu0 %3054 }
0x14f8   :  { %5510 = vrcp.f32 %v3055_v50 }
0x14f9   :  { %5512 = vrcp.f32 %v3052_v5  ;;  %v3206_v51 = vpop.xlane.xlu1 %3205 }
0x14fb   :  { %v3209_v0 = vpop.xlane.xlu0 %3208 }
0x14fc   :  { %v5507_v21 = vpop.eup %5506  ;;  %5514 = vrcp.f32 %v3209_v0 }
0x14fd   :  { %v2933_v47 = vmul.f32 %v5507_v21, %v6849_v23  ;;  %5516 = vrcp.f32 %v3206_v51  ;;  %v3341_v42 = vpop.permute.xlu1 %3340 }
0x14fe   :  { %v5509_v19 = vpop.eup %5508 }
0x14ff   :  { %v2934_v45 = vmul.f32 %v5509_v19, %v6851_v12  ;;  %v5346_v19 = vld [vmem:[%s7074_s0] sm:$0xff]  }
0x1500   :  { %5029 = vmatprep.subr.bf16.mxu0 %v5346_v19 }
0x1501   :  { %v2935_v13 = vpack.c.bf16 %v2934_v45, %v2933_v47  ;;  %v5347_v47 = vld [vmem:[%s7074_s0 + $0x8] sm:$0xff]   ;;  %5030 = vmatpush3.bf16.msra.mxu0 %v5346_v19  ;;  %v5348_v45 = vld [vmem:[%s7074_s0 + $0x10] sm:$0xff]  }
0x1502   :  { %v5511_v55 = vpop.eup %5510  ;;  %5031 = vmatprep.subr.bf16.mxu0 %v5347_v47 }
0x1503   :  { %4966 = vmatmul.mubr.msk.bf16.vlgmr.msra.gmra.mrb[60].mxu1 %vm820_vm8, %v2935_v13  ;;  %v5513_v24 = vpop.eup %5512  ;;  %v3059_v40 = vmul.f32 %v5511_v55, %v6859_v20 }
0x1504   :  { %4976 = vmatpush3.bf16.msra.mxu1 %v3062_v15  ;;  %4977 = vmatprep.mubr.msk.bf16.mxu1 %vm5944_vm4, %v5943_v46  ;;  %v3058_v23 = vmul.f32 %v5513_v24, %v6855_v44  ;;  %v5349_v24 = vld [vmem:[%s7074_s0 + $0x18] sm:$0xff]  }
0x1505   :  { %4987 = vmatprep.subr.bf16.mxu1 %v5943_v46  ;;  %5032 = vmatpush3.bf16.msra.mxu0 %v5347_v47 }
0x1506   :  { %v3060_v12 = vpack.c.bf16 %v3059_v40, %v3058_v23  ;;  %v5515_v57 = vpop.eup %5514  ;;  %5033 = vmatprep.subr.bf16.mxu0 %v5348_v45 }
0x1507   :  { %v5517_v58 = vpop.eup %5516  ;;  %v3213_v3 = vmul.f32 %v5515_v57, %v6867_v43  ;;  %v5352_v57 = vld [vmem:[%s7074_s0 + $0x30] sm:$0xff]  }
0x1508   :  { %v3212_v44 = vmul.f32 %v5517_v58, %v6863_v63 }
0x1509   :  { %v3330_v28 = vpop.xlane.xlu0 %3329  ;;  %5034 = vmatpush3.bf16.msra.mxu0 %v5348_v45 }
0x150a   :  { %5518 = vrcp.f32 %v3330_v28  ;;  %v3214_v36 = vpack.c.bf16 %v3213_v3, %v3212_v44  ;;  %5035 = vmatprep.subr.bf16.mxu0 %v5349_v24  ;;  %v5350_v28 = vld [vmem:[%s7074_s0 + $0x20] sm:$0xff]   ;;  %v5353_v3 = vld [vmem:[%s7074_s0 + $0x38] sm:$0xff]  }
0x150b   :  { %4978 = vmatmul.mubr.msk.bf16.vlgmr.msra.gmra.mrb[64].mxu1 %vm820_vm8, %v3060_v12  ;;  %v5351_v12 = vld [vmem:[%s7074_s0 + $0x28] sm:$0xff]  }
0x150c   :  { %4988 = vmatpush3.bf16.msra.mxu1 %v6683_v53  ;;  %4989 = vmatprep.mubr.msk.bf16.mxu1 %vm5944_vm4, %v5943_v46 }
0x150d   :  { %v3333_v7 = vpop.xlane.xlu0 %3332  ;;  %4999 = vmatprep.subr.bf16.mxu1 %v5943_v46  ;;  %5036 = vmatpush3.bf16.msra.mxu0 %v5349_v24 }
0x150e   :  { %5520 = vrcp.f32 %v3333_v7  ;;  %5037 = vmatprep.subr.bf16.mxu0 %v5350_v28 }
0x1511   :  { %v3459_v20 = vpop.xlane.xlu0 %3458  ;;  %5038 = vmatpush3.bf16.msra.mxu0 %v5350_v28 }
0x1512   :  { %5522 = vrcp.f32 %v3459_v20  ;;  %5039 = vmatprep.subr.bf16.mxu0 %v5351_v12 }
0x1513   :  { %4990 = vmatmul.mubr.msk.bf16.vlgmr.msra.gmra.mrb[68].mxu1 %vm820_vm8, %v3214_v36 }
0x1514   :  { %5000 = vmatpush3.bf16.msra.mxu1 %v3341_v42  ;;  %5001 = vmatprep.mubr.msk.bf16.mxu1 %vm5944_vm4, %v5943_v46  ;;  %v5519_v8 = vpop.eup %5518 }
0x1515   :  { %v3581_v53 = vpop.xlane.xlu0 %3580  ;;  %5011 = vmatprep.subr.bf16.mxu1 %v5943_v46  ;;  %v3336_v9 = vmul.f32 %v5519_v8, %v6878_v17  ;;  %5040 = vmatpush3.bf16.msra.mxu0 %v5351_v12 }
0x1516   :  { %5041 = vmatprep.subr.bf16.mxu0 %v5352_v57 }
0x1518   :  { %v5521_v43 = vpop.eup %5520 }
0x1519   :  { %v3337_v60 = vmul.f32 %v5521_v43, %v6882_v6  ;;  %v3584_v62 = vpop.xlane.xlu0 %3583  ;;  %5042 = vmatpush3.bf16.msra.mxu0 %v5352_v57 }
0x151a   :  { %5043 = vmatprep.subr.bf16.mxu0 %v5353_v3 }
0x151b   :  { %v3338_v63 = vpack.c.bf16 %v3337_v60, %v3336_v9 }
0x151c   :  { %v5523_v18 = vpop.eup %5522 }
0x151d   :  { %5002 = vmatmul.mubr.msk.bf16.vlgmr.msra.gmra.mrb[72].mxu1 %vm820_vm8, %v3338_v63  ;;  %v3466_v10 = vpop.permute.xlu0 %3465  ;;  %v3463_v6 = vmul.f32 %v5523_v18, %v6888_v61  ;;  %5044 = vmatpush3.bf16.msra.mxu0 %v5353_v3 }
0x151e   :  { %5012 = vmatpush3.bf16.msra.mxu1 %v3466_v10  ;;  %5013 = vmatprep.mubr.msk.bf16.mxu1 %vm5944_vm4, %v5943_v46 }
0x151f   :  { %5023 = vmatprep.subr.bf16.mxu1 %v5943_v46 }
0x152e   :  { %v3456_v37 = vpop.xlane.xlu1 %3455 }
0x152f   :  { %5524 = vrcp.f32 %v3456_v37 }
0x1530   :  { %5526 = vrcp.f32 %v3584_v62 }
0x1531   :  { %5528 = vrcp.f32 %v3581_v53 }
0x1532   :  { %v3591_v16 = vpop.permute.xlu1 %3590 }
0x1539   :  { %v5525_v17 = vpop.eup %5524 }
0x153a   :  { %v3462_v25 = vmul.f32 %v5525_v17, %v6901_v1  ;;  %v5527_v41 = vpop.eup %5526 }
0x153b   :  { %v5529_v48 = vpop.eup %5528  ;;  %v3588_v27 = vmul.f32 %v5527_v41, %v6896_v11 }
0x153c   :  { %v3464_v22 = vpack.c.bf16 %v3463_v6, %v3462_v25  ;;  %v3587_v54 = vmul.f32 %v5529_v48, %v6892_v30 }
0x153e   :  { %5014 = vmatmul.mubr.msk.bf16.vlgmr.msra.gmra.mrb[76].mxu1 %vm820_vm8, %v3464_v22  ;;  %v3589_v56 = vpack.c.bf16 %v3588_v27, %v3587_v54 }
0x153f   :  { %5024 = vmatpush3.bf16.msra.mxu1 %v3591_v16  ;;  %5025 = vmatprep.mubr.msk.bf16.mxu1 %vm5944_vm4, %v5943_v46 }
0x1546   :  { %5026 = vmatmul.mubr.msk.bf16.vlgmr.msra.gmra.mrb[80].mxu1 %vm820_vm8, %v3589_v56 }
0x15a1   :  { %v2851_v61 = vpop.f32.mrb[56].mxu1 }
0x15a2   :  { %v4955_v59 = vpop.f32.mrb[57].mxu1 }
0x15a3   :  { %v2854_v1 = vpop.f32.mrb[58].mxu1 }
0x15a4   :  { %v5228_v31 = vpack.i.bf16 %v2854_v1, %v2851_v61  ;;  %v4956_v32 = vpop.f32.mrb[59].mxu1 }
0x15a6   :  { %5229 = vrot.lane.b32.xlu1 %v5228_v31, %s5947_s10 }
0x15d6   :  { %v2976_v33 = vpop.f32.mrb[60].mxu1 }
0x15d7   :  { %v4967_v34 = vpop.f32.mrb[61].mxu1 }
0x15d8   :  { %v2979_v38 = vpop.f32.mrb[62].mxu1 }
0x15d9   :  { %v5233_v46 = vpack.i.bf16 %v2979_v38, %v2976_v33  ;;  %v4968_v29 = vpop.f32.mrb[63].mxu1 }
0x15db   :  { %5234 = vrot.lane.b32.xlu1 %v5233_v46, %s5930_s7 }
0x15de   :  { %v3101_v30 = vpop.f32.mrb[64].mxu1 }
0x15df   :  { %v4979_v11 = vpop.f32.mrb[65].mxu1 }
0x15e0   :  { %v3104_v15 = vpop.f32.mrb[66].mxu1 }
0x15e1   :  { %v5238_v26 = vpack.i.bf16 %v3104_v15, %v3101_v30  ;;  %v4980_v2 = vpop.f32.mrb[67].mxu1 }
0x15e3   :  { %5239 = vrot.lane.b32.xlu1 %v5238_v26, %s5946_s2 }
0x15e6   :  { %v6951_v5 = vpop.f32.mrb[68].mxu1 }
0x15e7   :  { %v4991_v50 = vpop.f32.mrb[69].mxu1 }
0x15e8   :  { %v6953_v21 = vpop.f32.mrb[70].mxu1  ;;  %v4493_v50 = vld [vmem:[#allocation16] ss:$0 sm:$0xff] }
0x15e9   :  { %v4992_v0 = vpop.f32.mrb[71].mxu1 }
0x15f0   :  { %v3380_v51 = vpop.f32.mrb[72].mxu1 }
0x15f1   :  { %v5003_v13 = vpop.f32.mrb[73].mxu1 }
0x15f2   :  { %v3383_v55 = vpop.f32.mrb[74].mxu1 }
0x15f3   :  { %v5243_v40 = vpack.i.bf16 %v3383_v55, %v3380_v51  ;;  %v5004_v23 = vpop.f32.mrb[75].mxu1 }
0x15f5   :  { %5244 = vrot.lane.b32.xlu1 %v5243_v40, %s5947_s10 }
0x1611   :  { %v3505_v58 = vpop.f32.mrb[76].mxu1 }
0x1612   :  { %v5015_v7 = vpop.f32.mrb[77].mxu1 }
0x1613   :  { %v3508_v44 = vpop.f32.mrb[78].mxu1 }
0x1614   :  { %v5248_v20 = vpack.i.bf16 %v3508_v44, %v3505_v58  ;;  %v5016_v36 = vpop.f32.mrb[79].mxu1 }
0x1616   :  { %5249 = vrot.lane.b32.xlu0 %v5248_v20, %s5930_s7  ;;  %s7075_s7 = sld [smem:[#allocation45_spill]] }
0x1618   :  { %v5230_v60 = vpop.permute.xlu1 %5229 }
0x1619   :  { %v3630_v42 = vpop.f32.mrb[80].mxu1  ;;  %v5232_v63 = vunpack.i.h.bf16 %v5230_v60  ;;  %v5231_v10 = vunpack.i.l.bf16 %v5230_v60  ;;  %v5357_v60 = vld [vmem:[#allocation20 + $0x18] sm:$0xff]  }
0x161a   :  { %v5027_v53 = vpop.f32.mrb[81].mxu1 }
0x161b   :  { %v3633_v8 = vpop.f32.mrb[82].mxu1  ;;  %v3133_v6 = vsel %vm768_vm5, %v6754_v39, %v5232_v63  ;;  %v3132_v25 = vsel %vm768_vm5, %v6752_v49, %v5231_v10  ;;  %v5359_v63 = vld [vmem:[#allocation20 + $0x28] sm:$0xff]   ;;  %v5360_v10 = vld [vmem:[#allocation20 + $0x30] sm:$0xff]  }
0x161c   :  { %v5253_v43 = vpack.i.bf16 %v3633_v8, %v3630_v42  ;;  %v5028_v9 = vpop.f32.mrb[83].mxu1 }
0x161d   :  { %v5356_v9 = vld [vmem:[#allocation20 + $0x10] sm:$0xff]  }
0x161e   :  { %5254 = vrot.lane.b32.xlu1 %v5253_v43, %s5946_s2  ;;  %v5355_v43 = vld [vmem:[#allocation20 + $0x8] sm:$0xff]  }
0x164d   :  { %v5235_v62 = vpop.permute.xlu1 %5234 }
0x164e   :  { %v5237_v37 = vunpack.i.h.bf16 %v5235_v62  ;;  %v5236_v18 = vunpack.i.l.bf16 %v5235_v62  ;;  %v5358_v62 = vld [vmem:[#allocation20 + $0x20] sm:$0xff]  }
0x1650   :  { %v3135_v16 = vsel %vm1292_vm9, %v3133_v6, %v5237_v37  ;;  %v3134_v48 = vsel %vm1292_vm9, %v3132_v25, %v5236_v18  ;;  %v5361_v37 = vld [vmem:[#allocation20 + $0x38] sm:$0xff]   ;;  %v5362_v18 = vld [vmem:[#allocation23] sm:$0xff]  }
0x1651   :  { %5069 = vmatprep.subr.bf16.mxu0 %v5362_v18  ;;  %v5364_v6 = vld [vmem:[#allocation23 + $0x10] sm:$0xff]   ;;  %v5365_v25 = vld [vmem:[#allocation23 + $0x18] sm:$0xff]  }
0x1655   :  { %v5240_v17 = vpop.permute.xlu1 %5239 }
0x1656   :  { %v5242_v22 = vunpack.i.h.bf16 %v5240_v17  ;;  %v5241_v41 = vunpack.i.l.bf16 %v5240_v17  ;;  %v5363_v17 = vld [vmem:[#allocation23 + $0x8] sm:$0xff]  }
0x1658   :  { %v3136_v27 = vsel %vm1295_vm10, %v3134_v48, %v5241_v41  ;;  %v3137_v54 = vsel %vm1295_vm10, %v3135_v16, %v5242_v22  ;;  %v5366_v22 = vld [vmem:[#allocation23 + $0x20] sm:$0xff]   ;;  %v5367_v41 = vld [vmem:[#allocation23 + $0x28] sm:$0xff]  }
0x1659   :  { %v3667_v56 = vpack.c.bf16 %v3137_v54, %v3136_v27 }
0x165b   :  { %5045 = vmatprep.mubr.bf16.mxu0 %v3667_v56 }
0x1667   :  { %v5245_v61 = vpop.permute.xlu1 %5244 }
0x1668   :  { %v5247_v1 = vunpack.i.h.bf16 %v5245_v61  ;;  %v5246_v31 = vunpack.i.l.bf16 %v5245_v61 }
0x166a   :  { %v3662_v49 = vsel %vm768_vm5, %v6953_v21, %v5247_v1  ;;  %v3661_v34 = vsel %vm768_vm5, %v6951_v5, %v5246_v31 }
0x1688   :  { %v5250_v59 = vpop.permute.xlu0 %5249 }
0x1689   :  { %v5252_v39 = vunpack.i.h.bf16 %v5250_v59  ;;  %v5251_v32 = vunpack.i.l.bf16 %v5250_v59 }
0x168b   :  { %v3664_v29 = vsel %vm1292_vm9, %v3662_v49, %v5252_v39  ;;  %v3663_v30 = vsel %vm1292_vm9, %v3661_v34, %v5251_v32  ;;  %v4494_v34 = vld [vmem:[#allocation17] ss:$0 sm:$0xff] }
0x1690   :  { %v5255_v33 = vpop.permute.xlu1 %5254 }
0x1691   :  { %v5257_v38 = vunpack.i.h.bf16 %v5255_v33  ;;  %v5256_v46 = vunpack.i.l.bf16 %v5255_v33 }
0x1693   :  { %v3666_v11 = vsel %vm1295_vm10, %v3664_v29, %v5257_v38  ;;  %v3665_v15 = vsel %vm1295_vm10, %v3663_v30, %v5256_v46 }
0x1694   :  { %v3668_v26 = vpack.c.bf16 %v3666_v11, %v3665_v15  ;;  %v4495_v15 = vld [vmem:[#allocation19] ss:$0 sm:$0xff] }
0x1696   :  { %5046 = vmatmul.mubr.bf16.vlgmr.msra.gmra.mrb[84].mxu0 %v3668_v26 }
0x1697   :  { %5070 = vmatpush3.bf16.msra.mxu0 %v5362_v18 }
0x1698   :  { %5071 = vmatprep.subr.bf16.mxu0 %v5363_v17 }
0x169b   :  { %5072 = vmatpush3.bf16.msra.mxu0 %v5363_v17 }
0x169c   :  { %5073 = vmatprep.subr.bf16.mxu0 %v5364_v6 }
0x169f   :  { %5074 = vmatpush3.bf16.msra.mxu0 %v5364_v6 }
0x16a0   :  { %5075 = vmatprep.subr.bf16.mxu0 %v5365_v25 }
0x16a3   :  { %5076 = vmatpush3.bf16.msra.mxu0 %v5365_v25 }
0x16a4   :  { %5077 = vmatprep.subr.bf16.mxu0 %v5366_v22 }
0x16a7   :  { %5078 = vmatpush3.bf16.msra.mxu0 %v5366_v22 }
0x16a8   :  { %5079 = vmatprep.subr.bf16.mxu0 %v5367_v41 }
0x16ab   :  { %5080 = vmatpush3.bf16.msra.mxu0 %v5367_v41 }
0x1769   :  { %v5047_v2 = vpop.f32.mrb[84].mxu0 }
0x176a   :  { %v3767_v0 = vpop.f32.mrb[85].mxu0  ;;  %v3784_v5 = vadd.f32 %v5047_v2, %v6627_v4  ;;  %v5354_v4 = vld [vmem:[#allocation20] sm:$0xff]  }
0x176b   :  { %v3782_v21 = vadd.f32 %v3767_v0, %v6630_v35  ;;  %v5048_v19 = vpop.f32.mrb[86].mxu0  ;;  %5049 = vmatprep.subr.bf16.mxu1 %v5354_v4 }
0x176c   :  { %v3770_v47 = vpop.f32.mrb[87].mxu0  ;;  %v6990_v55 = vadd.f32 %v4493_v50, %v3784_v5  ;;  %v3785_v24 = vadd.f32 %v5048_v19, %v6633_v14  ;;  %5050 = vmatpush3.bf16.msra.mxu1 %v5354_v4 }
0x176d   :  { %v6984_v45 = vadd.f32 %v4493_v50, %v3782_v21  ;;  %v3783_v51 = vadd.f32 %v3770_v47, %v6635_v52  ;;  %5051 = vmatprep.subr.bf16.mxu1 %v5355_v43 }
0x176e   :  { %v6995_v35 = vadd.f32 %v4493_v50, %v3785_v24 }
0x176f   :  { %v6987_v13 = vadd.f32 %v4493_v50, %v3783_v51  ;;  %3799 = vadd.xlane.f32.xlu0 %v6984_v45 }
0x1770   :  { %5052 = vmatpush3.bf16.msra.mxu1 %v5355_v43 }
0x1771   :  { %3801 = vadd.xlane.f32.xlu1 %v6987_v13  ;;  %5053 = vmatprep.subr.bf16.mxu1 %v5356_v9 }
0x1773   :  { %3803 = vadd.xlane.f32.xlu0 %v6990_v55 }
0x1774   :  { %5054 = vmatpush3.bf16.msra.mxu1 %v5356_v9 }
0x1775   :  { %5055 = vmatprep.subr.bf16.mxu1 %v5357_v60 }
0x1777   :  { %3805 = vadd.xlane.f32.xlu0 %v6995_v35 }
0x1778   :  { %5056 = vmatpush3.bf16.msra.mxu1 %v5357_v60 }
0x1779   :  { %5057 = vmatprep.subr.bf16.mxu1 %v5358_v62 }
0x177c   :  { %5058 = vmatpush3.bf16.msra.mxu1 %v5358_v62  ;;  %v4513_v62 = vld [vmem:[%s7075_s7] ss:$0 sm:$0xff] }
0x177d   :  { %5059 = vmatprep.subr.bf16.mxu1 %v5359_v63 }
0x1780   :  { %5060 = vmatpush3.bf16.msra.mxu1 %v5359_v63 }
0x1781   :  { %5061 = vmatprep.subr.bf16.mxu1 %v5360_v10 }
0x1784   :  { %5062 = vmatpush3.bf16.msra.mxu1 %v5360_v10 }
0x1785   :  { %5063 = vmatprep.subr.bf16.mxu1 %v5361_v37 }
0x1788   :  { %5064 = vmatpush3.bf16.msra.mxu1 %v5361_v37 }
0x17fc   :  { %v3800_v52 = vpop.xlane.xlu0 %3799 }
0x17fd   :  { %v3807_v40 = vmul.f32 0.0078125, %v3800_v52 }
0x17fe   :  { %v3802_v23 = vpop.xlane.xlu1 %3801 }
0x17ff   :  { %v6999_v28 = vsub.f32 %v6984_v45, %v3807_v40  ;;  %v3808_v12 = vmul.f32 0.0078125, %v3802_v23  ;;  %v5368_v40 = vld [vmem:[#allocation23 + $0x30] sm:$0xff]   ;;  %v5369_v23 = vld [vmem:[#allocation23 + $0x38] sm:$0xff]  }
0x1800   :  { %v3804_v57 = vpop.xlane.xlu0 %3803  ;;  %5081 = vmatprep.subr.bf16.mxu0 %v5368_v40 }
0x1801   :  { %v7002_v14 = vsub.f32 %v6987_v13, %v3808_v12  ;;  %v3809_v58 = vmul.f32 0.0078125, %v3804_v57  ;;  %v3815_v3 = vmul.f32 %v6999_v28, %v6999_v28  ;;  %5082 = vmatpush3.bf16.msra.mxu0 %v5368_v40 }
0x1802   :  { %5083 = vmatprep.subr.bf16.mxu0 %v5369_v23 }
0x1803   :  { %v7007_v7 = vsub.f32 %v6990_v55, %v3809_v58  ;;  %3819 = vadd.xlane.f32.xlu1 %v3815_v3  ;;  %v3816_v44 = vmul.f32 %v7002_v14, %v7002_v14 }
0x1804   :  { %v3806_v20 = vpop.xlane.xlu0 %3805 }
0x1805   :  { %v3810_v36 = vmul.f32 0.0078125, %v3806_v20  ;;  %3821 = vadd.xlane.f32.xlu0 %v3816_v44  ;;  %v3817_v42 = vmul.f32 %v7007_v7, %v7007_v7  ;;  %5084 = vmatpush3.bf16.msra.mxu0 %v5369_v23 }
0x1807   :  { %v7014_v53 = vsub.f32 %v6995_v35, %v3810_v36  ;;  %3823 = vadd.xlane.f32.xlu1 %v3817_v42 }
0x1809   :  { %v3818_v8 = vmul.f32 %v7014_v53, %v7014_v53 }
0x180b   :  { %3825 = vadd.xlane.f32.xlu0 %v3818_v8 }
0x1890   :  { %v3820_v16 = vpop.xlane.xlu1 %3819 }
0x1891   :  { %v3827_v48 = vmul.f32 0.0078125, %v3820_v16 }
0x1892   :  { %v3822_v27 = vpop.xlane.xlu0 %3821 }
0x1893   :  { %v3831_v54 = vadd.f32 1e-05, %v3827_v48  ;;  %v3828_v56 = vmul.f32 0.0078125, %v3822_v27  ;;  %v5370_v27 = vld [vmem:[%s6092_s5] sm:$0xff]  }
0x1894   :  { %v3824_v61 = vpop.xlane.xlu1 %3823  ;;  %5089 = vmatprep.subr.bf16.mxu1 %v5370_v27 }
0x1895   :  { %5530 = vrsqrt.f32 %v3831_v54  ;;  %v3832_v59 = vadd.f32 1e-05, %v3828_v56  ;;  %v3829_v1 = vmul.f32 0.0078125, %v3824_v61 }
0x1897   :  { %5532 = vrsqrt.f32 %v3832_v59  ;;  %v3833_v31 = vadd.f32 1e-05, %v3829_v1 }
0x1898   :  { %v3826_v39 = vpop.xlane.xlu0 %3825 }
0x1899   :  { %5534 = vrsqrt.f32 %v3833_v31  ;;  %v3830_v32 = vmul.f32 0.0078125, %v3826_v39 }
0x189b   :  { %v3834_v33 = vadd.f32 1e-05, %v3830_v32 }
0x189d   :  { %5536 = vrsqrt.f32 %v3834_v33 }
0x189f   :  { %v5531_v49 = vpop.eup %5530 }
0x18a0   :  { %v3839_v38 = vmul.f32 %v5531_v49, %v6999_v28  ;;  %v4496_v28 = vld [vmem:[#allocation22] ss:$0 sm:$0xff] }
0x18a1   :  { %v5533_v46 = vpop.eup %5532 }
0x18a2   :  { %v3840_v29 = vmul.f32 %v5533_v46, %v7002_v14  ;;  %v3849_v30 = vmul.f32 %v4494_v34, %v3839_v38  ;;  %v5371_v46 = vld [vmem:[%s6092_s5 + $0x8] sm:$0xff]  }
0x18a3   :  { %v5535_v11 = vpop.eup %5534 }
0x18a4   :  { %v3841_v26 = vmul.f32 %v5535_v11, %v7007_v7  ;;  %v3850_v2 = vmul.f32 %v4494_v34, %v3840_v29  ;;  %v3859_v50 = vadd.f32 %v4495_v15, %v3849_v30  ;;  %v5372_v29 = vld [vmem:[%s6092_s5 + $0x10] sm:$0xff]   ;;  %v5373_v30 = vld [vmem:[%s6092_s5 + $0x18] sm:$0xff]   ;;  %v5374_v11 = vld [vmem:[%s6092_s5 + $0x20] sm:$0xff]  }
0x18a6   :  { %v3860_v0 = vadd.f32 %v4495_v15, %v3850_v2  ;;  %v3851_v5 = vmul.f32 %v4494_v34, %v3841_v26  ;;  %v5376_v26 = vld [vmem:[%s6092_s5 + $0x30] sm:$0xff]   ;;  %v5377_v2 = vld [vmem:[%s6092_s5 + $0x38] sm:$0xff]  }
0x18a7   :  { %v5537_v21 = vpop.eup %5536 }
0x18a8   :  { %v3842_v19 = vmul.f32 %v5537_v21, %v7014_v53  ;;  %v3863_v47 = vpack.c.bf16 %v3860_v0, %v3859_v50  ;;  %v3861_v24 = vadd.f32 %v4495_v15, %v3851_v5 }
0x18aa   :  { %5065 = vmatprep.mubr.bf16.mxu1 %v3863_v47  ;;  %v3852_v51 = vmul.f32 %v4494_v34, %v3842_v19 }
0x18ac   :  { %v3862_v4 = vadd.f32 %v4495_v15, %v3852_v51  ;;  %v5375_v15 = vld [vmem:[%s6092_s5 + $0x28] sm:$0xff]   ;;  %s5948_s5 = smov [#allocation25]  }
0x18ae   :  { %v3864_v52 = vpack.c.bf16 %v3862_v4, %v3861_v24 }
0x18b0   :  { %5066 = vmatmul.mubr.bf16.vlgmr.msra.gmra.mrb[84].mxu1 %v3864_v52 }
0x18b1   :  { %5090 = vmatpush3.bf16.msra.mxu1 %v5370_v27 }
0x18b2   :  { %5091 = vmatprep.subr.bf16.mxu1 %v5371_v46 }
0x18b5   :  { %5092 = vmatpush3.bf16.msra.mxu1 %v5371_v46 }
0x18b6   :  { %5093 = vmatprep.subr.bf16.mxu1 %v5372_v29 }
0x18b9   :  { %5094 = vmatpush3.bf16.msra.mxu1 %v5372_v29 }
0x18ba   :  { %5095 = vmatprep.subr.bf16.mxu1 %v5373_v30 }
0x18bd   :  { %5096 = vmatpush3.bf16.msra.mxu1 %v5373_v30 }
0x18be   :  { %5097 = vmatprep.subr.bf16.mxu1 %v5374_v11 }
0x18c1   :  { %5098 = vmatpush3.bf16.msra.mxu1 %v5374_v11 }
0x18c2   :  { %5099 = vmatprep.subr.bf16.mxu1 %v5375_v15 }
0x18c5   :  { %5100 = vmatpush3.bf16.msra.mxu1 %v5375_v15 }
0x18c6   :  { %5101 = vmatprep.subr.bf16.mxu1 %v5376_v26 }
0x18c9   :  { %5102 = vmatpush3.bf16.msra.mxu1 %v5376_v26 }
0x18ca   :  { %5103 = vmatprep.subr.bf16.mxu1 %v5377_v2 }
0x18cd   :  { %5104 = vmatpush3.bf16.msra.mxu1 %v5377_v2 }
0x1983   :  { %v5067_v12 = vpop.f32.mrb[84].mxu1 }
0x1984   :  { %v3979_v57 = vadd.f32 %v5067_v12, %v4496_v28  ;;  %v3970_v14 = vpop.f32.mrb[85].mxu1  ;;  %v4514_v12 = vld [vmem:[%s7076_s16] ss:$0 sm:$0xff] }
0x1985   :  { %v3971_v58 = vadd.f32 %v4496_v28, %v3970_v14  ;;  %v5068_v3 = vpop.f32.mrb[86].mxu1 }
0x1986   :  { %v3982_v7 = vadd.f32 %v5068_v3, %v4496_v28  ;;  %v3973_v44 = vpop.f32.mrb[87].mxu1  ;;  %v3987_v36 = vmax.f32 %v3979_v57, 0.0 }
0x1987   :  { %v3974_v20 = vadd.f32 %v4496_v28, %v3973_v44  ;;  %v3985_v53 = vmax.f32 %v3971_v58, 0.0  ;;  %v4515_v44 = vld [vmem:[%s6087_s9] ss:$0 sm:$0xff]  ;;  %s4316_s9 = sshll.u32 %s5948_s5, 4  ;;  %s4317_s9 = int_to_ptr.vmem [resolvable:$true] %s4316_s9 }
0x1988   :  { %v3988_v42 = vmax.f32 %v3982_v7, 0.0  ;;  %s5854_s6 = scalar_lea.vmem %s4317_s9, 512  ;;  %p5859_p1 = scmp.lt.s32.totalorder %s4317_s9, %s4317_s9 }
0x1989   :  { %v3986_v8 = vmax.f32 %v3974_v20, 0.0  ;;  %p5855_p0 = scmp.ne.s32.totalorder %s4317_s9, %s5854_s6  ;;  %p5860_p2 = scmp.lt.s32.totalorder %s5854_s6, %s5854_s6 }
0x198a   :  { %v3990_v43 = vpack.c.bf16 %v3988_v42, %v3987_v36 }
0x198b   :  { %v3989_v9 = vpack.c.bf16 %v3986_v8, %v3985_v53  ;;  %p5861_p3 = por %p5860_p2, %p5859_p1 }
0x198d   :  { %5085 = vmatprep.mubr.bf16.mxu0 %v3989_v9  ;;  %p5862_p4 = pnand %p5861_p3, %p5855_p0 }
0x198e   :  { %5086 = vmatmul.mubr.bf16.vlgmr.msra.gmra.mrb[88].mxu0 %v3990_v43 }
0x1a61   :  { %v5087_v60 = vpop.f32.mrb[88].mxu0 }
0x1a62   :  { %v4089_v63 = vpop.f32.mrb[89].mxu0  ;;  %v4106_v17 = vadd.f32 %v5087_v60, %v6990_v55 }
0x1a63   :  { %v4104_v10 = vadd.f32 %v4089_v63, %v6984_v45  ;;  %v5088_v37 = vpop.f32.mrb[90].mxu0 }
0x1a64   :  { %v4092_v18 = vpop.f32.mrb[91].mxu0  ;;  %v4107_v22 = vadd.f32 %v5088_v37, %v6995_v35  ;;  %v4117_v16 = vadd.f32 %v4513_v62, %v4106_v17 }
0x1a65   :  { %v4115_v6 = vadd.f32 %v4513_v62, %v4104_v10  ;;  %v4105_v25 = vadd.f32 %v4092_v18, %v6987_v13  ;;  %v4516_v18 = vld [vmem:[%s6097_s17] ss:$0 sm:$0xff] }
0x1a66   :  { %v4118_v48 = vadd.f32 %v4513_v62, %v4107_v22 }
0x1a67   :  { %v4116_v41 = vadd.f32 %v4513_v62, %v4105_v25  ;;  %4121 = vadd.xlane.f32.xlu1 %v4115_v6 }
0x1a69   :  { %4123 = vadd.xlane.f32.xlu0 %v4116_v41 }
0x1a6b   :  { %4125 = vadd.xlane.f32.xlu1 %v4117_v16 }
0x1a6d   :  { %4127 = vadd.xlane.f32.xlu0 %v4118_v48 }
0x1af4   :  { %v4122_v45 = vpop.xlane.xlu1 %4121 }
0x1af5   :  { %v4129_v54 = vmul.f32 0.0078125, %v4122_v45 }
0x1af6   :  { %v4124_v56 = vpop.xlane.xlu0 %4123 }
0x1af7   :  { %v4133_v61 = vsub.f32 %v4115_v6, %v4129_v54  ;;  %v4130_v55 = vmul.f32 0.0078125, %v4124_v56 }
0x1af8   :  { %v4126_v59 = vpop.xlane.xlu1 %4125 }
0x1af9   :  { %v4134_v13 = vsub.f32 %v4116_v41, %v4130_v55  ;;  %v4131_v1 = vmul.f32 0.0078125, %v4126_v59  ;;  %v4137_v35 = vmul.f32 %v4133_v61, %v4133_v61 }
0x1afa   :  { %v4128_v31 = vpop.xlane.xlu0 %4127 }
0x1afb   :  { %v4135_v39 = vsub.f32 %v4117_v16, %v4131_v1  ;;  %v4132_v32 = vmul.f32 0.0078125, %v4128_v31  ;;  %4141 = vadd.xlane.f32.xlu1 %v4137_v35  ;;  %v4138_v33 = vmul.f32 %v4134_v13, %v4134_v13 }
0x1afd   :  { %v4136_v49 = vsub.f32 %v4118_v48, %v4132_v32  ;;  %4143 = vadd.xlane.f32.xlu0 %v4138_v33  ;;  %v4139_v34 = vmul.f32 %v4135_v39, %v4135_v39 }
0x1aff   :  { %4145 = vadd.xlane.f32.xlu1 %v4139_v34  ;;  %v4140_v38 = vmul.f32 %v4136_v49, %v4136_v49 }
0x1b01   :  { %4147 = vadd.xlane.f32.xlu0 %v4140_v38 }
0x1b88   :  { %v4142_v50 = vpop.xlane.xlu1 %4141 }
0x1b89   :  { %v4149_v0 = vmul.f32 0.0078125, %v4142_v50 }
0x1b8a   :  { %v4144_v21 = vpop.xlane.xlu0 %4143 }
0x1b8b   :  { %v4153_v19 = vadd.f32 1e-05, %v4149_v0  ;;  %v4150_v47 = vmul.f32 0.0078125, %v4144_v21 }
0x1b8c   :  { %v4146_v5 = vpop.xlane.xlu1 %4145 }
0x1b8d   :  { %5538 = vrsqrt.f32 %v4153_v19  ;;  %v4154_v51 = vadd.f32 1e-05, %v4150_v47  ;;  %v4151_v24 = vmul.f32 0.0078125, %v4146_v5 }
0x1b8e   :  { %v4148_v4 = vpop.xlane.xlu0 %4147 }
0x1b8f   :  { %5540 = vrsqrt.f32 %v4154_v51  ;;  %v4155_v52 = vadd.f32 1e-05, %v4151_v24  ;;  %v4152_v40 = vmul.f32 0.0078125, %v4148_v4 }
0x1b91   :  { %5542 = vrsqrt.f32 %v4155_v52  ;;  %v4156_v23 = vadd.f32 1e-05, %v4152_v40 }
0x1b93   :  { %5544 = vrsqrt.f32 %v4156_v23 }
0x1b97   :  { %v5539_v28 = vpop.eup %5538 }
0x1b98   :  { %v4161_v57 = vmul.f32 %v5539_v28, %v4133_v61 }
0x1b99   :  { %v5541_v14 = vpop.eup %5540 }
0x1b9a   :  { %v4162_v58 = vmul.f32 %v5541_v14, %v4134_v13  ;;  %v4171_v3 = vmul.f32 %v4514_v12, %v4161_v57 }
0x1b9b   :  { %v5543_v7 = vpop.eup %5542 }
0x1b9c   :  { %v4163_v20 = vmul.f32 %v5543_v7, %v4135_v39  ;;  %v4172_v36 = vmul.f32 %v4514_v12, %v4162_v58  ;;  %v4181_v8 = vadd.f32 %v4515_v44, %v4171_v3 }
0x1b9d   :  { %v5545_v42 = vpop.eup %5544 }
0x1b9e   :  { %v4164_v53 = vmul.f32 %v5545_v42, %v4136_v49  ;;  %v4182_v43 = vadd.f32 %v4515_v44, %v4172_v36  ;;  %v4173_v9 = vmul.f32 %v4514_v12, %v4163_v20 }
0x1ba0   :  { %v4185_v60 = vpack.c.bf16 %v4182_v43, %v4181_v8  ;;  %v4174_v62 = vmul.f32 %v4514_v12, %v4164_v53  ;;  %v4183_v63 = vadd.f32 %v4515_v44, %v4173_v9 }
0x1ba2   :  { %5105 = vmatprep.mubr.bf16.mxu1 %v4185_v60  ;;  %v4184_v10 = vadd.f32 %v4515_v44, %v4174_v62 }
0x1ba4   :  { %v4186_v37 = vpack.c.bf16 %v4184_v10, %v4183_v63 }
0x1ba6   :  { %5106 = vmatmul.mubr.bf16.vlgmr.msra.gmra.mrb[88].mxu1 %v4186_v37 }
0x1c79   :  { %v5107_v17 = vpop.f32.mrb[88].mxu1 }
0x1c7a   :  { %v4301_v6 = vadd.f32 %v5107_v17, %v4516_v18  ;;  %v4292_v25 = vpop.f32.mrb[89].mxu1 }
0x1c7b   :  { %v4293_v22 = vadd.f32 %v4516_v18, %v4292_v25  ;;  %v5108_v41 = vpop.f32.mrb[90].mxu1 }
0x1c7c   :  { %4309 = vst [vmem:[#allocation25 + $0x10] sm:$0xff] %v4301_v6  ;;  %v4304_v16 = vadd.f32 %v5108_v41, %v4516_v18  ;;  %v4295_v48 = vpop.f32.mrb[91].mxu1 }
0x1c7d   :  { %4307 = vst [vmem:[#allocation25] sm:$0xff] %v4293_v22  ;;  %v4296_v27 = vadd.f32 %v4516_v18, %v4295_v48 }
0x1c7e   :  { %4310 = vst [vmem:[#allocation25 + $0x18] sm:$0xff] %v4304_v16 }
0x1c7f   :  { %4308 = vst [vmem:[#allocation25 + $0x8] sm:$0xff] %v4296_v27 }
0x1c80   :  { %5865 = shalt.err (!%p5862_p4)
}
0x1c81   :  { %s5866_s17 = scalar_lea.hbm %s6102_s25, 512 }
0x1c82   :  { %p5867_p5 = scmp.ne.s32.totalorder %s6102_s25, %s5866_s17  ;;  %p5870_p6 = scmp.lt.u32.totalorder %s5866_s17, %s6102_s25 }
0x1c84   :  { %p5872_p7 = pnand %p5870_p6, %p5867_p5 }
0x1c86   :  { %5875 = shalt.err (!%p5872_p7)
}
0x1c87   :  { %4322 = dma.vmem_to_hbm [thread:$0]  %s4317_s9, 512, %s6102_s25, [#allocation4], %s5932_s24, %s5932_s24, %s5933_s15  }
0x1c88   :  { %5892 = dma.done.wait [#allocation4], 512  }
0x1c89   :  { %5893 = vsyncadd [#allocation4], 4294966784 }
0x1c8a   :  { %4326 = vsyncpa [#allocation3], 1 }
0x1c8b   :  { %4327 = vsyncpa [#allocation6], 1 }
0x1c8c   :  { %4328 = vsyncpa [#allocation9], 1 }
0x1c8d   :  { %4329 = vsyncpa [#allocation12], 1 }
0x1c8e   :  { %4330 = vsyncpa [#allocation15], 1 }
0x1c8f   :  { %4331 = vsyncpa [#allocation18], 1 }
0x1c90   :  { %4332 = vsyncpa [#allocation21], 1 }
0x1c91   :  { %4333 = vsyncpa [#allocation24], 1 }
0x1c92   :  { %4334 = vsyncpa [#allocation4], 1 }

</bundles_post_ra>
